<compile_context>
chip_gen: v5e
topology: v5e:2x2
jax: 0.10.0
libtpu: 0.0.40
codegen_flags: <defaults>
</compile_context>

<pallas_src>
import numpy as np
import jax
import jax.numpy as jnp
from jax import lax
from jax.experimental import pallas as pl
from jax.experimental.pallas import tpu as pltpu

EPS = 1e-5
_VMEM_LIMIT = 32 * 1024 * 1024  # scoped VMEM request (safe on v5e/v6e/v7x)


# ----------------------------- tile sizing -----------------------------------

def _pick_tile_rows(Hu, Wu, Cin, Cout, max_rows=8, vmem_budget=12 * 1024 * 1024):
    """Largest even row tile that divides Hu, respects max_rows and a rough VMEM budget
    (pipelined input/output blocks are double-buffered; tap matrices live once)."""
    best = 2
    k = 9 * max(Cin, Cout) + Cin
    for th in range(2, min(Hu, max_rows) + 1, 2):
        if Hu % th:
            continue
        io = ((th // 2 + 2) * (Wu + 2) * Cin          # conv1 halo block
              + (th + 2) * (Wu + 2) * Cout            # conv2 halo block
              + (th // 2) * Wu * Cin                  # shortcut block
              + 2 * th * Wu * Cout) * 4               # output blocks
        tmp = ((th + 2) * (Wu + 2) * max(Cin, Cout)   # in-kernel upsampled / activated block
               + 2 * th * Wu * k) * 4                 # tap matrix (+ cast copy)
        if 2 * io + tmp <= vmem_budget:
            best = th
    return best


# ----------------------------- Pallas kernels --------------------------------

def _make_conv1_kernel(TH, RS, Wp2, Wu, H_src, Cin, Cout, compute_dtype):
    """BN1 affine + ReLU + nearest 2x upsample (H fused) + 3x3 conv1 as one long-K matmul."""
    TH2 = TH // 2

    def kernel(x_ref, s_ref, t_ref, w_ref, o_ref):
        rb = pl.program_id(1)
        x = x_ref[...].astype(jnp.float32)                       # (RS, Wp2, Cin)
        h = jnp.maximum(x * s_ref[...] + t_ref[...], 0.0)        # BN1 affine + ReLU (f32)
        # zero out everything that is the conv's zero padding (outside the real image)
        row = rb * TH2 + lax.broadcasted_iota(jnp.int32, (RS, 1, 1), 0)
        col = lax.broadcasted_iota(jnp.int32, (1, Wp2, 1), 1)
        valid = (row >= 1) & (row <= H_src) & (col >= 1) & (col <= Wu)
        h = jnp.where(valid, h, 0.0).astype(compute_dtype)
        # nearest-neighbour 2x upsample along H (W was pre-duplicated in glue):
        # upsampled+padded local row j reads source padded local row (j+1)//2.
        rows = [h[0:1]]
        for i in range(1, RS - 1):
            rows.append(h[i:i + 1])
            rows.append(h[i:i + 1])
        rows.append(h[RS - 1:RS])
        hu = jnp.concatenate(rows, axis=0)                       # (TH+2, Wp2, Cin)
        # 9 shifted taps -> (TH*Wu, 9*Cin): ONE long-K MXU matmul, f32 accumulation.
        taps = jnp.concatenate(
            [hu[ky:ky + TH, kx:kx + Wu, :] for ky in range(3) for kx in range(3)],
            axis=-1)                                             # (TH, Wu, 9*Cin)
        acc = jnp.dot(taps.reshape(TH * Wu, 9 * Cin), w_ref[...],
                      preferred_element_type=jnp.float32)
        # conv1 bias intentionally omitted: cancelled exactly by the train-mode BN2 that follows.
        o_ref[...] = acc.reshape(TH, Wu, Cout)

    return kernel


def _make_conv2_kernel(TH, Wp2, Wu, Hu, Cin, Cout, compute_dtype):
    """BN2 affine + ReLU + 3x3 conv2, with the 1x1 shortcut folded in as an extra K block."""
    RS = TH + 2
    K = 9 * Cout + Cin

    def kernel(y_ref, xsc_ref, s_ref, t_ref, w_ref, bias_ref, o_ref):
        rb = pl.program_id(1)
        y = y_ref[...].astype(jnp.float32)                       # (TH+2, Wp2, Cout)
        a = jnp.maximum(y * s_ref[...] + t_ref[...], 0.0)        # BN2 affine + ReLU (f32)
        row = rb * TH + lax.broadcasted_iota(jnp.int32, (RS, 1, 1), 0)
        col = lax.broadcasted_iota(jnp.int32, (1, Wp2, 1), 1)
        valid = (row >= 1) & (row <= Hu) & (col >= 1) & (col <= Wu)
        a = jnp.where(valid, a, 0.0).astype(compute_dtype)
        taps = jnp.concatenate(
            [a[ky:ky + TH, kx:kx + Wu, :] for ky in range(3) for kx in range(3)],
            axis=-1)                                             # (TH, Wu, 9*Cout)
        # shortcut operand: W-pre-upsampled x rows, duplicate each row 2x (H upsample).
        # The bypass path has NO BN/ReLU.
        xs = xsc_ref[...].astype(compute_dtype)                  # (TH//2, Wu, Cin)
        rows = []
        for i in range(TH // 2):
            rows.append(xs[i:i + 1])
            rows.append(xs[i:i + 1])
        xsu = jnp.concatenate(rows, axis=0)                      # (TH, Wu, Cin)
        ops = jnp.concatenate([taps, xsu], axis=-1)              # (TH, Wu, 9*Cout+Cin)
        acc = jnp.dot(ops.reshape(TH * Wu, K), w_ref[...],
                      preferred_element_type=jnp.float32)
        acc = acc + bias_ref[...]                                # fused b2 + bsc
        o_ref[...] = acc.reshape(TH, Wu, Cout)

    return kernel


# ----------------------------- pallas_call wrappers ---------------------------

def _conv1_call(x_halo, scale1, shift1, w1_cat, *, N, NRB, TH, Wu, H_src, Cin, Cout,
                compute_dtype):
    RS = TH // 2 + 2
    Wp2 = Wu + 2
    kernel = _make_conv1_kernel(TH, RS, Wp2, Wu, H_src, Cin, Cout, compute_dtype)
    return pl.pallas_call(
        kernel,
        out_shape=jax.ShapeDtypeStruct((N, 2 * H_src, Wu, Cout), jnp.float32),
        grid=(N, NRB),
        in_specs=[
            pl.BlockSpec((None, None, RS, Wp2, Cin), lambda n, rb: (n, rb, 0, 0, 0)),
            pl.BlockSpec((1, Cin), lambda n, rb: (0, 0)),
            pl.BlockSpec((1, Cin), lambda n, rb: (0, 0)),
            pl.BlockSpec((9 * Cin, Cout), lambda n, rb: (0, 0)),
        ],
        out_specs=pl.BlockSpec((None, TH, Wu, Cout), lambda n, rb: (n, rb, 0, 0)),
        compiler_params=pltpu.CompilerParams(
            dimension_semantics=("parallel", "parallel"),
            vmem_limit_bytes=_VMEM_LIMIT),
    )(x_halo, scale1, shift1, w1_cat)


def _conv2_call(y1_halo, xw, scale2, shift2, w_all, bias_all, *, N, NRB, TH, Wu, Hu, Cin,
                Cout, compute_dtype):
    Wp2 = Wu + 2
    K = 9 * Cout + Cin
    kernel = _make_conv2_kernel(TH, Wp2, Wu, Hu, Cin, Cout, compute_dtype)
    return pl.pallas_call(
        kernel,
        out_shape=jax.ShapeDtypeStruct((N, Hu, Wu, Cout), jnp.float32),
        grid=(N, NRB),
        in_specs=[
            pl.BlockSpec((None, None, TH + 2, Wp2, Cout), lambda n, rb: (n, rb, 0, 0, 0)),
            pl.BlockSpec((None, TH // 2, Wu, Cin), lambda n, rb: (n, rb, 0, 0)),
            pl.BlockSpec((1, Cout), lambda n, rb: (0, 0)),
            pl.BlockSpec((1, Cout), lambda n, rb: (0, 0)),
            pl.BlockSpec((K, Cout), lambda n, rb: (0, 0)),
            pl.BlockSpec((1, Cout), lambda n, rb: (0, 0)),
        ],
        out_specs=pl.BlockSpec((None, TH, Wu, Cout), lambda n, rb: (n, rb, 0, 0)),
        compiler_params=pltpu.CompilerParams(
            dimension_semantics=("parallel", "parallel"),
            vmem_limit_bytes=_VMEM_LIMIT),
    )(y1_halo, xw, scale2, shift2, w_all, bias_all)


# ----------------------------- Forward (glue + kernels) -----------------------

def res_block_generator_forward(x_nchw, params, *, compute_dtype=jnp.bfloat16,
                                max_tile_rows=8):
    """x_nchw: (N, Cin, H, W) f32 -> (N, Cout, 2H, 2W) f32 (stride=2 ResBlockGenerator)."""
    N, Cin, H, W = x_nchw.shape
    Cout = params["w1"].shape[0]
    Hu, Wu = 2 * H, 2 * W
    x = jnp.transpose(x_nchw, (0, 2, 3, 1)).astype(jnp.float32)          # NHWC

    TH = _pick_tile_rows(Hu, Wu, Cin, Cout, max_rows=max_tile_rows)
    TH2 = TH // 2
    NRB = Hu // TH

    # ---- BN1 pass 1: batch statistics (cheap memory-bound reduction, left to XLA) ----
    mean1 = jnp.mean(x, axis=(0, 1, 2))
    var1 = jnp.mean(jnp.square(x - mean1), axis=(0, 1, 2))
    rstd1 = lax.rsqrt(var1 + EPS)
    scale1 = (params["bn1_g"] * rstd1).reshape(1, Cin).astype(jnp.float32)
    shift1 = (params["bn1_b"] - mean1 * params["bn1_g"] * rstd1).reshape(1, Cin).astype(jnp.float32)

    # ---- W-axis 2x nearest upsample + zero pad (glue; H-axis 2x is fused in-kernel) ----
    xw = jnp.repeat(x, 2, axis=2)                                        # (N, H, Wu, Cin)
    xw_pad = jnp.pad(xw, ((0, 0), (1, 1), (1, 1), (0, 0)))               # (N, H+2, Wu+2, Cin)
    # row blocks with a 1-source-row halo each side (BlockSpec windows cannot overlap)
    x_halo = jnp.stack([xw_pad[:, rb * TH2: rb * TH2 + TH2 + 2] for rb in range(NRB)],
                       axis=1).astype(compute_dtype)                     # (N, NRB, TH2+2, Wu+2, Cin)

    w1_cat = jnp.transpose(params["w1"], (2, 3, 1, 0)).reshape(9 * Cin, Cout).astype(compute_dtype)

    # ---- Kernel 1: BN1 + ReLU + upsample + conv1 (bias dropped: cancelled by BN2) ----
    y1 = _conv1_call(x_halo, scale1, shift1, w1_cat, N=N, NRB=NRB, TH=TH, Wu=Wu,
                     H_src=H, Cin=Cin, Cout=Cout, compute_dtype=compute_dtype)

    # ---- BN2 pass 1: batch statistics of conv1 output ----
    mean2 = jnp.mean(y1, axis=(0, 1, 2))
    var2 = jnp.mean(jnp.square(y1 - mean2), axis=(0, 1, 2))
    rstd2 = lax.rsqrt(var2 + EPS)
    scale2 = (params["bn2_g"] * rstd2).reshape(1, Cout).astype(jnp.float32)
    shift2 = (params["bn2_b"] - mean2 * params["bn2_g"] * rstd2).reshape(1, Cout).astype(jnp.float32)

    y1_pad = jnp.pad(y1, ((0, 0), (1, 1), (1, 1), (0, 0)))
    y1_halo = jnp.stack([y1_pad[:, rb * TH: rb * TH + TH + 2] for rb in range(NRB)],
                        axis=1).astype(compute_dtype)                    # (N, NRB, TH+2, Wu+2, Cout)

    w2_cat = jnp.transpose(params["w2"], (2, 3, 1, 0)).reshape(9 * Cout, Cout)
    wsc_mat = jnp.transpose(params["wsc"], (2, 3, 1, 0)).reshape(Cin, Cout)
    w_all = jnp.concatenate([w2_cat, wsc_mat], axis=0).astype(compute_dtype)  # (9*Cout+Cin, Cout)
    bias_all = (params["b2"] + params["bsc"]).reshape(1, Cout).astype(jnp.float32)

    # ---- Kernel 2: BN2 + ReLU + conv2 + 1x1 shortcut + residual add ----
    y = _conv2_call(y1_halo, xw.astype(compute_dtype), scale2, shift2, w_all, bias_all,
                    N=N, NRB=NRB, TH=TH, Wu=Wu, Hu=Hu, Cin=Cin, Cout=Cout,
                    compute_dtype=compute_dtype)
    return jnp.transpose(y, (0, 3, 1, 2))                                # back to NCHW


# ----------------------------- Pure-JAX reference -----------------------------

def _ref_bn_train(x, gamma, beta):
    mean = x.mean(axis=(0, 2, 3), keepdims=True)
    var = ((x - mean) ** 2).mean(axis=(0, 2, 3), keepdims=True)
    return ((x - mean) / jnp.sqrt(var + EPS)) * gamma.reshape(1, -1, 1, 1) \
        + beta.reshape(1, -1, 1, 1)


def _ref_conv(x, w, b, pad):
    y = lax.conv_general_dilated(x, w, (1, 1), [(pad, pad), (pad, pad)],
                                 dimension_numbers=("NCHW", "OIHW", "NCHW"))
    return y + b.reshape(1, -1, 1, 1)


def ref_forward(x, p):
    h = jax.nn.relu(_ref_bn_train(x, p["bn1_g"], p["bn1_b"]))
    h = jnp.repeat(jnp.repeat(h, 2, axis=2), 2, axis=3)
    h = _ref_conv(h, p["w1"], p["b1"], 1)
    h = jax.nn.relu(_ref_bn_train(h, p["bn2_g"], p["bn2_b"]))
    h = _ref_conv(h, p["w2"], p["b2"], 1)
    sc = jnp.repeat(jnp.repeat(x, 2, axis=2), 2, axis=3)
    sc = _ref_conv(sc, p["wsc"], p["bsc"], 0)
    return h + sc


# ----------------------------- Param init (deterministic) ---------------------

def _xavier_uniform(key, shape, fan_in, fan_out):
    limit = float(np.sqrt(6.0 / (fan_in + fan_out)))
    return jax.random.uniform(key, shape, jnp.float32, -limit, limit)


def _bias_uniform(key, shape, fan_in):
    bound = float(1.0 / np.sqrt(fan_in))
    return jax.random.uniform(key, shape, jnp.float32, -bound, bound)


def init_params(key, in_channels, out_channels):
    ks = jax.random.split(key, 6)
    return {
        "w1": _xavier_uniform(ks[0], (out_channels, in_channels, 3, 3),
                              in_channels * 9, out_channels * 9),
        "b1": _bias_uniform(ks[1], (out_channels,), in_channels * 9),
        "w2": _xavier_uniform(ks[2], (out_channels, out_channels, 3, 3),
                              out_channels * 9, out_channels * 9),
        "b2": _bias_uniform(ks[3], (out_channels,), out_channels * 9),
        "wsc": _xavier_uniform(ks[4], (out_channels, in_channels, 1, 1),
                               in_channels, out_channels),
        "bsc": _bias_uniform(ks[5], (out_channels,), in_channels),
        "bn1_g": jnp.ones((in_channels,), jnp.float32),
        "bn1_b": jnp.zeros((in_channels,), jnp.float32),
        "bn2_g": jnp.ones((out_channels,), jnp.float32),
        "bn2_b": jnp.zeros((out_channels,), jnp.float32),
    }


# ----------------------------- Main --------------------------------------------

if __name__ == "__main__":
    N, Cin, Cout, H, W = 2, 4, 8, 16, 16  # stride=2 ResBlockGenerator, small test config
    key = jax.random.PRNGKey(0)
    kx, kp = jax.random.split(key)
    x = jax.random.normal(kx, (N, Cin, H, W), jnp.float32)
    params = init_params(kp, Cin, Cout)

    ref = jax.block_until_ready(ref_forward(x, params))

    # exactness check: f32 MXU operands
    fwd_f32 = jax.jit(lambda a, p: res_block_generator_forward(a, p, compute_dtype=jnp.float32))
    out_f32 = jax.block_until_ready(fwd_f32(x, params))
    assert out_f32.shape == (N, Cout, 2 * H, 2 * W), out_f32.shape
    np.testing.assert_allclose(np.asarray(out_f32), np.asarray(ref), rtol=1e-4, atol=1e-4)

    # fast path: bf16 MXU operands with f32 accumulation (looser tolerance)
    fwd_bf16 = jax.jit(lambda a, p: res_block_generator_forward(a, p, compute_dtype=jnp.bfloat16))
    out_bf16 = jax.block_until_ready(fwd_bf16(x, params))
    np.testing.assert_allclose(np.asarray(out_bf16), np.asarray(ref), rtol=1e-1, atol=1e-1)

    print("KERNEL_OK")
</pallas_src>

<mosaic_0001>
module attributes {stable_mosaic.version = 11 : i64} {
  func.func @kernel(%arg0: i32, %arg1: i32, %arg2: memref<1x1x6x34x4xf32, #tpu.memory_space<vmem>>, %arg3: memref<1x4xf32, #tpu.memory_space<vmem>>, %arg4: memref<1x4xf32, #tpu.memory_space<vmem>>, %arg5: memref<36x8xf32, #tpu.memory_space<vmem>>, %arg6: memref<1x8x32x8xf32, #tpu.memory_space<vmem>>) attributes {dimension_semantics = [#tpu.dimension_semantics<parallel>, #tpu.dimension_semantics<parallel>], iteration_bounds = array<i64: 2, 4>, scalar_prefetch = 0 : i64, scratch_operands = 0 : i64, tpu.core_type = #tpu.core_type<tc>, window_params = [{transform_indices = @transform_0, window_bounds = array<i64: 1, 1, 6, 34, 4>}, {pipeline_mode = #tpu.pipeline_mode<synchronous>, transform_indices = @transform_1, window_bounds = array<i64: 1, 4>}, {pipeline_mode = #tpu.pipeline_mode<synchronous>, transform_indices = @transform_2, window_bounds = array<i64: 1, 4>}, {pipeline_mode = #tpu.pipeline_mode<synchronous>, transform_indices = @transform_3, window_bounds = array<i64: 36, 8>}, {transform_indices = @transform_4, window_bounds = array<i64: 1, 8, 32, 8>}]} {
    %c0 = arith.constant 0 : index
    %c0_0 = arith.constant 0 : index
    %c0_1 = arith.constant 0 : index
    %c0_2 = arith.constant 0 : index
    %c0_3 = arith.constant 0 : index
    %0 = vector.load %arg2[%c0, %c0_0, %c0_1, %c0_2, %c0_3] : memref<1x1x6x34x4xf32, #tpu.memory_space<vmem>>, vector<1x1x6x34x4xf32>
    %1 = vector.shape_cast %0 : vector<1x1x6x34x4xf32> to vector<6x34x4xf32>
    %c0_4 = arith.constant 0 : index
    %c0_5 = arith.constant 0 : index
    %2 = vector.load %arg3[%c0_4, %c0_5] : memref<1x4xf32, #tpu.memory_space<vmem>>, vector<1x4xf32>
    %3 = vector.shape_cast %2 : vector<1x4xf32> to vector<1x1x4xf32>
    %4 = vector.broadcast %3 : vector<1x1x4xf32> to vector<6x34x4xf32>
    %5 = arith.mulf %1, %4 : vector<6x34x4xf32>
    %c0_6 = arith.constant 0 : index
    %c0_7 = arith.constant 0 : index
    %6 = vector.load %arg4[%c0_6, %c0_7] : memref<1x4xf32, #tpu.memory_space<vmem>>, vector<1x4xf32>
    %7 = vector.shape_cast %6 : vector<1x4xf32> to vector<1x1x4xf32>
    %8 = vector.broadcast %7 : vector<1x1x4xf32> to vector<6x34x4xf32>
    %9 = arith.addf %5, %8 : vector<6x34x4xf32>
    %cst = arith.constant 0.000000e+00 : f32
    %10 = vector.broadcast %cst : f32 to vector<6x34x4xf32>
    %11 = arith.maximumf %9, %10 : vector<6x34x4xf32>
    %c4_i32 = arith.constant 4 : i32
    %12 = arith.muli %arg1, %c4_i32 : i32
    %13 = tpu.iota {dimensions = array<i32: 0>} : vector<6x1x1xi32>
    %14 = vector.broadcast %12 : i32 to vector<6x1x1xi32>
    %15 = arith.addi %14, %13 : vector<6x1x1xi32>
    %16 = tpu.iota {dimensions = array<i32: 1>} : vector<1x34x1xi32>
    %c1_i32 = arith.constant 1 : i32
    %17 = vector.broadcast %c1_i32 : i32 to vector<6x1x1xi32>
    %18 = arith.cmpi sge, %15, %17 : vector<6x1x1xi32>
    %c16_i32 = arith.constant 16 : i32
    %19 = vector.broadcast %c16_i32 : i32 to vector<6x1x1xi32>
    %20 = arith.cmpi sle, %15, %19 : vector<6x1x1xi32>
    %21 = arith.andi %18, %20 : vector<6x1x1xi1>
    %c1_i32_8 = arith.constant 1 : i32
    %22 = vector.broadcast %c1_i32_8 : i32 to vector<1x34x1xi32>
    %23 = arith.cmpi sge, %16, %22 : vector<1x34x1xi32>
    %24 = vector.broadcast %21 : vector<6x1x1xi1> to vector<6x34x1xi1>
    %25 = vector.broadcast %23 : vector<1x34x1xi1> to vector<6x34x1xi1>
    %26 = arith.andi %24, %25 : vector<6x34x1xi1>
    %c32_i32 = arith.constant 32 : i32
    %27 = vector.broadcast %c32_i32 : i32 to vector<1x34x1xi32>
    %28 = arith.cmpi sle, %16, %27 : vector<1x34x1xi32>
    %29 = vector.broadcast %28 : vector<1x34x1xi1> to vector<6x34x1xi1>
    %30 = arith.andi %26, %29 : vector<6x34x1xi1>
    %cst_9 = arith.constant 0.000000e+00 : f32
    %31 = vector.shape_cast %30 : vector<6x34x1xi1> to vector<6x34x1xi1>
    %32 = vector.broadcast %31 : vector<6x34x1xi1> to vector<6x34x4xi1>
    %33 = vector.broadcast %cst_9 : f32 to vector<6x34x4xf32>
    %34 = arith.select %32, %11, %33 : vector<6x34x4xi1>, vector<6x34x4xf32>
    %35 = vector.extract_strided_slice %34 {offsets = [0, 0, 0], sizes = [1, 34, 4], strides = [1, 1, 1]} : vector<6x34x4xf32> to vector<1x34x4xf32>
    %36 = vector.extract_strided_slice %34 {offsets = [1, 0, 0], sizes = [1, 34, 4], strides = [1, 1, 1]} : vector<6x34x4xf32> to vector<1x34x4xf32>
    %37 = vector.extract_strided_slice %34 {offsets = [1, 0, 0], sizes = [1, 34, 4], strides = [1, 1, 1]} : vector<6x34x4xf32> to vector<1x34x4xf32>
    %38 = vector.extract_strided_slice %34 {offsets = [2, 0, 0], sizes = [1, 34, 4], strides = [1, 1, 1]} : vector<6x34x4xf32> to vector<1x34x4xf32>
    %39 = vector.extract_strided_slice %34 {offsets = [2, 0, 0], sizes = [1, 34, 4], strides = [1, 1, 1]} : vector<6x34x4xf32> to vector<1x34x4xf32>
    %40 = vector.extract_strided_slice %34 {offsets = [3, 0, 0], sizes = [1, 34, 4], strides = [1, 1, 1]} : vector<6x34x4xf32> to vector<1x34x4xf32>
    %41 = vector.extract_strided_slice %34 {offsets = [3, 0, 0], sizes = [1, 34, 4], strides = [1, 1, 1]} : vector<6x34x4xf32> to vector<1x34x4xf32>
    %42 = vector.extract_strided_slice %34 {offsets = [4, 0, 0], sizes = [1, 34, 4], strides = [1, 1, 1]} : vector<6x34x4xf32> to vector<1x34x4xf32>
    %43 = vector.extract_strided_slice %34 {offsets = [4, 0, 0], sizes = [1, 34, 4], strides = [1, 1, 1]} : vector<6x34x4xf32> to vector<1x34x4xf32>
    %44 = vector.extract_strided_slice %34 {offsets = [5, 0, 0], sizes = [1, 34, 4], strides = [1, 1, 1]} : vector<6x34x4xf32> to vector<1x34x4xf32>
    %45 = tpu.concatenate %35, %36, %37, %38, %39, %40, %41, %42, %43, %44 in 0 : vector<1x34x4xf32>, vector<1x34x4xf32>, vector<1x34x4xf32>, vector<1x34x4xf32>, vector<1x34x4xf32>, vector<1x34x4xf32>, vector<1x34x4xf32>, vector<1x34x4xf32>, vector<1x34x4xf32>, vector<1x34x4xf32> -> vector<10x34x4xf32>
    %46 = vector.extract_strided_slice %45 {offsets = [0, 0, 0], sizes = [8, 32, 4], strides = [1, 1, 1]} : vector<10x34x4xf32> to vector<8x32x4xf32>
    %47 = vector.extract_strided_slice %45 {offsets = [0, 1, 0], sizes = [8, 32, 4], strides = [1, 1, 1]} : vector<10x34x4xf32> to vector<8x32x4xf32>
    %48 = vector.extract_strided_slice %45 {offsets = [0, 2, 0], sizes = [8, 32, 4], strides = [1, 1, 1]} : vector<10x34x4xf32> to vector<8x32x4xf32>
    %49 = vector.extract_strided_slice %45 {offsets = [1, 0, 0], sizes = [8, 32, 4], strides = [1, 1, 1]} : vector<10x34x4xf32> to vector<8x32x4xf32>
    %50 = vector.extract_strided_slice %45 {offsets = [1, 1, 0], sizes = [8, 32, 4], strides = [1, 1, 1]} : vector<10x34x4xf32> to vector<8x32x4xf32>
    %51 = vector.extract_strided_slice %45 {offsets = [1, 2, 0], sizes = [8, 32, 4], strides = [1, 1, 1]} : vector<10x34x4xf32> to vector<8x32x4xf32>
    %52 = vector.extract_strided_slice %45 {offsets = [2, 0, 0], sizes = [8, 32, 4], strides = [1, 1, 1]} : vector<10x34x4xf32> to vector<8x32x4xf32>
    %53 = vector.extract_strided_slice %45 {offsets = [2, 1, 0], sizes = [8, 32, 4], strides = [1, 1, 1]} : vector<10x34x4xf32> to vector<8x32x4xf32>
    %54 = vector.extract_strided_slice %45 {offsets = [2, 2, 0], sizes = [8, 32, 4], strides = [1, 1, 1]} : vector<10x34x4xf32> to vector<8x32x4xf32>
    %55 = tpu.concatenate %46, %47, %48, %49, %50, %51, %52, %53, %54 in 2 : vector<8x32x4xf32>, vector<8x32x4xf32>, vector<8x32x4xf32>, vector<8x32x4xf32>, vector<8x32x4xf32>, vector<8x32x4xf32>, vector<8x32x4xf32>, vector<8x32x4xf32>, vector<8x32x4xf32> -> vector<8x32x36xf32>
    %56 = vector.shape_cast %55 : vector<8x32x36xf32> to vector<256x36xf32>
    %c0_10 = arith.constant 0 : index
    %c0_11 = arith.constant 0 : index
    %57 = vector.load %arg5[%c0_10, %c0_11] : memref<36x8xf32, #tpu.memory_space<vmem>>, vector<36x8xf32>
    %cst_12 = arith.constant dense<0.000000e+00> : vector<256x8xf32>
    %58 = tpu.matmul %56, %57, %cst_12 {dimension_numbers = #tpu.dot_dimension_numbers<[1], [0], [0], [1], [0, 0, 1, 1], [], []>} : vector<256x36xf32>, vector<36x8xf32>, vector<256x8xf32> -> vector<256x8xf32>
    %59 = vector.shape_cast %58 : vector<256x8xf32> to vector<8x32x8xf32>
    %c0_13 = arith.constant 0 : index
    %c0_14 = arith.constant 0 : index
    %c0_15 = arith.constant 0 : index
    %c0_16 = arith.constant 0 : index
    %60 = vector.load %arg6[%c0_13, %c0_14, %c0_15, %c0_16] : memref<1x8x32x8xf32, #tpu.memory_space<vmem>>, vector<1x8x32x8xf32>
    %61 = vector.shape_cast %60 : vector<1x8x32x8xf32> to vector<8x32x8xf32>
    %62 = vector.shape_cast %59 : vector<8x32x8xf32> to vector<1x8x32x8xf32>
    tpu.vector_store %arg6[%c0_13, %c0_14, %c0_15, %c0_16], %62 {strides = array<i32>} : memref<1x8x32x8xf32, #tpu.memory_space<vmem>>, vector<1x8x32x8xf32>,
    return
  }
  func.func @transform_0(%arg0: i32, %arg1: i32) -> (i32, i32, i32, i32, i32) {
    %c0_i32 = arith.constant 0 : i32
    %c0_i32_0 = arith.constant 0 : i32
    %c0_i32_1 = arith.constant 0 : i32
    %c0_i32_2 = arith.constant 0 : i32
    return %arg0, %arg1, %c0_i32, %c0_i32_0, %c0_i32_1 : i32, i32, i32, i32, i32
  }
  func.func @transform_1(%arg0: i32, %arg1: i32) -> (i32, i32) {
    %c0_i32 = arith.constant 0 : i32
    %c0_i32_0 = arith.constant 0 : i32
    %c0_i32_1 = arith.constant 0 : i32
    return %c0_i32, %c0_i32_0 : i32, i32
  }
  func.func @transform_2(%arg0: i32, %arg1: i32) -> (i32, i32) {
    %c0_i32 = arith.constant 0 : i32
    %c0_i32_0 = arith.constant 0 : i32
    %c0_i32_1 = arith.constant 0 : i32
    return %c0_i32, %c0_i32_0 : i32, i32
  }
  func.func @transform_3(%arg0: i32, %arg1: i32) -> (i32, i32) {
    %c0_i32 = arith.constant 0 : i32
    %c0_i32_0 = arith.constant 0 : i32
    %c0_i32_1 = arith.constant 0 : i32
    return %c0_i32, %c0_i32_0 : i32, i32
  }
  func.func @transform_4(%arg0: i32, %arg1: i32) -> (i32, i32, i32, i32) {
    %c0_i32 = arith.constant 0 : i32
    %c0_i32_0 = arith.constant 0 : i32
    %c0_i32_1 = arith.constant 0 : i32
    return %arg0, %arg1, %c0_i32, %c0_i32_0 : i32, i32, i32, i32
  }
}

module attributes {stable_mosaic.version = 11 : i64} {
  func.func @kernel(%arg0: i32, %arg1: i32, %arg2: memref<1x1x10x34x8xf32, #tpu.memory_space<vmem>>, %arg3: memref<1x4x32x4xf32, #tpu.memory_space<vmem>>, %arg4: memref<1x8xf32, #tpu.memory_space<vmem>>, %arg5: memref<1x8xf32, #tpu.memory_space<vmem>>, %arg6: memref<76x8xf32, #tpu.memory_space<vmem>>, %arg7: memref<1x8xf32, #tpu.memory_space<vmem>>, %arg8: memref<1x8x32x8xf32, #tpu.memory_space<vmem>>) attributes {dimension_semantics = [#tpu.dimension_semantics<parallel>, #tpu.dimension_semantics<parallel>], iteration_bounds = array<i64: 2, 4>, scalar_prefetch = 0 : i64, scratch_operands = 0 : i64, tpu.core_type = #tpu.core_type<tc>, window_params = [{transform_indices = @transform_0, window_bounds = array<i64: 1, 1, 10, 34, 8>}, {transform_indices = @transform_1, window_bounds = array<i64: 1, 4, 32, 4>}, {pipeline_mode = #tpu.pipeline_mode<synchronous>, transform_indices = @transform_2, window_bounds = array<i64: 1, 8>}, {pipeline_mode = #tpu.pipeline_mode<synchronous>, transform_indices = @transform_3, window_bounds = array<i64: 1, 8>}, {pipeline_mode = #tpu.pipeline_mode<synchronous>, transform_indices = @transform_4, window_bounds = array<i64: 76, 8>}, {pipeline_mode = #tpu.pipeline_mode<synchronous>, transform_indices = @transform_5, window_bounds = array<i64: 1, 8>}, {transform_indices = @transform_6, window_bounds = array<i64: 1, 8, 32, 8>}]} {
    %c0 = arith.constant 0 : index
    %c0_0 = arith.constant 0 : index
    %c0_1 = arith.constant 0 : index
    %c0_2 = arith.constant 0 : index
    %c0_3 = arith.constant 0 : index
    %0 = vector.load %arg2[%c0, %c0_0, %c0_1, %c0_2, %c0_3] : memref<1x1x10x34x8xf32, #tpu.memory_space<vmem>>, vector<1x1x10x34x8xf32>
    %1 = vector.shape_cast %0 : vector<1x1x10x34x8xf32> to vector<10x34x8xf32>
    %c0_4 = arith.constant 0 : index
    %c0_5 = arith.constant 0 : index
    %2 = vector.load %arg4[%c0_4, %c0_5] : memref<1x8xf32, #tpu.memory_space<vmem>>, vector<1x8xf32>
    %3 = vector.shape_cast %2 : vector<1x8xf32> to vector<1x1x8xf32>
    %4 = vector.broadcast %3 : vector<1x1x8xf32> to vector<10x34x8xf32>
    %5 = arith.mulf %1, %4 : vector<10x34x8xf32>
    %c0_6 = arith.constant 0 : index
    %c0_7 = arith.constant 0 : index
    %6 = vector.load %arg5[%c0_6, %c0_7] : memref<1x8xf32, #tpu.memory_space<vmem>>, vector<1x8xf32>
    %7 = vector.shape_cast %6 : vector<1x8xf32> to vector<1x1x8xf32>
    %8 = vector.broadcast %7 : vector<1x1x8xf32> to vector<10x34x8xf32>
    %9 = arith.addf %5, %8 : vector<10x34x8xf32>
    %cst = arith.constant 0.000000e+00 : f32
    %10 = vector.broadcast %cst : f32 to vector<10x34x8xf32>
    %11 = arith.maximumf %9, %10 : vector<10x34x8xf32>
    %c8_i32 = arith.constant 8 : i32
    %12 = arith.muli %arg1, %c8_i32 : i32
    %13 = tpu.iota {dimensions = array<i32: 0>} : vector<10x1x1xi32>
    %14 = vector.broadcast %12 : i32 to vector<10x1x1xi32>
    %15 = arith.addi %14, %13 : vector<10x1x1xi32>
    %16 = tpu.iota {dimensions = array<i32: 1>} : vector<1x34x1xi32>
    %c1_i32 = arith.constant 1 : i32
    %17 = vector.broadcast %c1_i32 : i32 to vector<10x1x1xi32>
    %18 = arith.cmpi sge, %15, %17 : vector<10x1x1xi32>
    %c32_i32 = arith.constant 32 : i32
    %19 = vector.broadcast %c32_i32 : i32 to vector<10x1x1xi32>
    %20 = arith.cmpi sle, %15, %19 : vector<10x1x1xi32>
    %21 = arith.andi %18, %20 : vector<10x1x1xi1>
    %c1_i32_8 = arith.constant 1 : i32
    %22 = vector.broadcast %c1_i32_8 : i32 to vector<1x34x1xi32>
    %23 = arith.cmpi sge, %16, %22 : vector<1x34x1xi32>
    %24 = vector.broadcast %21 : vector<10x1x1xi1> to vector<10x34x1xi1>
    %25 = vector.broadcast %23 : vector<1x34x1xi1> to vector<10x34x1xi1>
    %26 = arith.andi %24, %25 : vector<10x34x1xi1>
    %c32_i32_9 = arith.constant 32 : i32
    %27 = vector.broadcast %c32_i32_9 : i32 to vector<1x34x1xi32>
    %28 = arith.cmpi sle, %16, %27 : vector<1x34x1xi32>
    %29 = vector.broadcast %28 : vector<1x34x1xi1> to vector<10x34x1xi1>
    %30 = arith.andi %26, %29 : vector<10x34x1xi1>
    %cst_10 = arith.constant 0.000000e+00 : f32
    %31 = vector.shape_cast %30 : vector<10x34x1xi1> to vector<10x34x1xi1>
    %32 = vector.broadcast %31 : vector<10x34x1xi1> to vector<10x34x8xi1>
    %33 = vector.broadcast %cst_10 : f32 to vector<10x34x8xf32>
    %34 = arith.select %32, %11, %33 : vector<10x34x8xi1>, vector<10x34x8xf32>
    %35 = vector.extract_strided_slice %34 {offsets = [0, 0, 0], sizes = [8, 32, 8], strides = [1, 1, 1]} : vector<10x34x8xf32> to vector<8x32x8xf32>
    %36 = vector.extract_strided_slice %34 {offsets = [0, 1, 0], sizes = [8, 32, 8], strides = [1, 1, 1]} : vector<10x34x8xf32> to vector<8x32x8xf32>
    %37 = vector.extract_strided_slice %34 {offsets = [0, 2, 0], sizes = [8, 32, 8], strides = [1, 1, 1]} : vector<10x34x8xf32> to vector<8x32x8xf32>
    %38 = vector.extract_strided_slice %34 {offsets = [1, 0, 0], sizes = [8, 32, 8], strides = [1, 1, 1]} : vector<10x34x8xf32> to vector<8x32x8xf32>
    %39 = vector.extract_strided_slice %34 {offsets = [1, 1, 0], sizes = [8, 32, 8], strides = [1, 1, 1]} : vector<10x34x8xf32> to vector<8x32x8xf32>
    %40 = vector.extract_strided_slice %34 {offsets = [1, 2, 0], sizes = [8, 32, 8], strides = [1, 1, 1]} : vector<10x34x8xf32> to vector<8x32x8xf32>
    %41 = vector.extract_strided_slice %34 {offsets = [2, 0, 0], sizes = [8, 32, 8], strides = [1, 1, 1]} : vector<10x34x8xf32> to vector<8x32x8xf32>
    %42 = vector.extract_strided_slice %34 {offsets = [2, 1, 0], sizes = [8, 32, 8], strides = [1, 1, 1]} : vector<10x34x8xf32> to vector<8x32x8xf32>
    %43 = vector.extract_strided_slice %34 {offsets = [2, 2, 0], sizes = [8, 32, 8], strides = [1, 1, 1]} : vector<10x34x8xf32> to vector<8x32x8xf32>
    %44 = tpu.concatenate %35, %36, %37, %38, %39, %40, %41, %42, %43 in 2 : vector<8x32x8xf32>, vector<8x32x8xf32>, vector<8x32x8xf32>, vector<8x32x8xf32>, vector<8x32x8xf32>, vector<8x32x8xf32>, vector<8x32x8xf32>, vector<8x32x8xf32>, vector<8x32x8xf32> -> vector<8x32x72xf32>
    %c0_11 = arith.constant 0 : index
    %c0_12 = arith.constant 0 : index
    %c0_13 = arith.constant 0 : index
    %c0_14 = arith.constant 0 : index
    %45 = vector.load %arg3[%c0_11, %c0_12, %c0_13, %c0_14] : memref<1x4x32x4xf32, #tpu.memory_space<vmem>>, vector<1x4x32x4xf32>
    %46 = vector.shape_cast %45 : vector<1x4x32x4xf32> to vector<4x32x4xf32>
    %47 = vector.extract_strided_slice %46 {offsets = [0, 0, 0], sizes = [1, 32, 4], strides = [1, 1, 1]} : vector<4x32x4xf32> to vector<1x32x4xf32>
    %48 = vector.extract_strided_slice %46 {offsets = [0, 0, 0], sizes = [1, 32, 4], strides = [1, 1, 1]} : vector<4x32x4xf32> to vector<1x32x4xf32>
    %49 = vector.extract_strided_slice %46 {offsets = [1, 0, 0], sizes = [1, 32, 4], strides = [1, 1, 1]} : vector<4x32x4xf32> to vector<1x32x4xf32>
    %50 = vector.extract_strided_slice %46 {offsets = [1, 0, 0], sizes = [1, 32, 4], strides = [1, 1, 1]} : vector<4x32x4xf32> to vector<1x32x4xf32>
    %51 = vector.extract_strided_slice %46 {offsets = [2, 0, 0], sizes = [1, 32, 4], strides = [1, 1, 1]} : vector<4x32x4xf32> to vector<1x32x4xf32>
    %52 = vector.extract_strided_slice %46 {offsets = [2, 0, 0], sizes = [1, 32, 4], strides = [1, 1, 1]} : vector<4x32x4xf32> to vector<1x32x4xf32>
    %53 = vector.extract_strided_slice %46 {offsets = [3, 0, 0], sizes = [1, 32, 4], strides = [1, 1, 1]} : vector<4x32x4xf32> to vector<1x32x4xf32>
    %54 = vector.extract_strided_slice %46 {offsets = [3, 0, 0], sizes = [1, 32, 4], strides = [1, 1, 1]} : vector<4x32x4xf32> to vector<1x32x4xf32>
    %55 = tpu.concatenate %47, %48, %49, %50, %51, %52, %53, %54 in 0 : vector<1x32x4xf32>, vector<1x32x4xf32>, vector<1x32x4xf32>, vector<1x32x4xf32>, vector<1x32x4xf32>, vector<1x32x4xf32>, vector<1x32x4xf32>, vector<1x32x4xf32> -> vector<8x32x4xf32>
    %56 = tpu.concatenate %44, %55 in 2 : vector<8x32x72xf32>, vector<8x32x4xf32> -> vector<8x32x76xf32>
    %57 = vector.shape_cast %56 : vector<8x32x76xf32> to vector<256x76xf32>
    %c0_15 = arith.constant 0 : index
    %c0_16 = arith.constant 0 : index
    %58 = vector.load %arg6[%c0_15, %c0_16] : memref<76x8xf32, #tpu.memory_space<vmem>>, vector<76x8xf32>
    %cst_17 = arith.constant dense<0.000000e+00> : vector<256x8xf32>
    %59 = tpu.matmul %57, %58, %cst_17 {dimension_numbers = #tpu.dot_dimension_numbers<[1], [0], [0], [1], [0, 0, 1, 1], [], []>} : vector<256x76xf32>, vector<76x8xf32>, vector<256x8xf32> -> vector<256x8xf32>
    %c0_18 = arith.constant 0 : index
    %c0_19 = arith.constant 0 : index
    %60 = vector.load %arg7[%c0_18, %c0_19] : memref<1x8xf32, #tpu.memory_space<vmem>>, vector<1x8xf32>
    %61 = vector.broadcast %60 : vector<1x8xf32> to vector<256x8xf32>
    %62 = arith.addf %59, %61 : vector<256x8xf32>
    %63 = vector.shape_cast %62 : vector<256x8xf32> to vector<8x32x8xf32>
    %c0_20 = arith.constant 0 : index
    %c0_21 = arith.constant 0 : index
    %c0_22 = arith.constant 0 : index
    %c0_23 = arith.constant 0 : index
    %64 = vector.load %arg8[%c0_20, %c0_21, %c0_22, %c0_23] : memref<1x8x32x8xf32, #tpu.memory_space<vmem>>, vector<1x8x32x8xf32>
    %65 = vector.shape_cast %64 : vector<1x8x32x8xf32> to vector<8x32x8xf32>
    %66 = vector.shape_cast %63 : vector<8x32x8xf32> to vector<1x8x32x8xf32>
    tpu.vector_store %arg8[%c0_20, %c0_21, %c0_22, %c0_23], %66 {strides = array<i32>} : memref<1x8x32x8xf32, #tpu.memory_space<vmem>>, vector<1x8x32x8xf32>,
    return
  }
  func.func @transform_0(%arg0: i32, %arg1: i32) -> (i32, i32, i32, i32, i32) {
    %c0_i32 = arith.constant 0 : i32
    %c0_i32_0 = arith.constant 0 : i32
    %c0_i32_1 = arith.constant 0 : i32
    %c0_i32_2 = arith.constant 0 : i32
    return %arg0, %arg1, %c0_i32, %c0_i32_0, %c0_i32_1 : i32, i32, i32, i32, i32
  }
  func.func @transform_1(%arg0: i32, %arg1: i32) -> (i32, i32, i32, i32) {
    %c0_i32 = arith.constant 0 : i32
    %c0_i32_0 = arith.constant 0 : i32
    %c0_i32_1 = arith.constant 0 : i32
    return %arg0, %arg1, %c0_i32, %c0_i32_0 : i32, i32, i32, i32
  }
  func.func @transform_2(%arg0: i32, %arg1: i32) -> (i32, i32) {
    %c0_i32 = arith.constant 0 : i32
    %c0_i32_0 = arith.constant 0 : i32
    %c0_i32_1 = arith.constant 0 : i32
    return %c0_i32, %c0_i32_0 : i32, i32
  }
  func.func @transform_3(%arg0: i32, %arg1: i32) -> (i32, i32) {
    %c0_i32 = arith.constant 0 : i32
    %c0_i32_0 = arith.constant 0 : i32
    %c0_i32_1 = arith.constant 0 : i32
    return %c0_i32, %c0_i32_0 : i32, i32
  }
  func.func @transform_4(%arg0: i32, %arg1: i32) -> (i32, i32) {
    %c0_i32 = arith.constant 0 : i32
    %c0_i32_0 = arith.constant 0 : i32
    %c0_i32_1 = arith.constant 0 : i32
    return %c0_i32, %c0_i32_0 : i32, i32
  }
  func.func @transform_5(%arg0: i32, %arg1: i32) -> (i32, i32) {
    %c0_i32 = arith.constant 0 : i32
    %c0_i32_0 = arith.constant 0 : i32
    %c0_i32_1 = arith.constant 0 : i32
    return %c0_i32, %c0_i32_0 : i32, i32
  }
  func.func @transform_6(%arg0: i32, %arg1: i32) -> (i32, i32, i32, i32) {
    %c0_i32 = arith.constant 0 : i32
    %c0_i32_0 = arith.constant 0 : i32
    %c0_i32_1 = arith.constant 0 : i32
    return %arg0, %arg1, %c0_i32, %c0_i32_0 : i32, i32, i32, i32
  }
}

</mosaic_0001>

<bundles_post_ra>
// kernel: _lambda_.2
= control target key start
LH: loop header
LB: loop body
LE: loop exit
PB: predicated region body
PF: predicated region fallthrough
CT: control target
= control target key end

     0   :  { %s1950_s15 = smov 0   ;;  %s1952_s16 = smov 0   ;;  %s3487_s0 = inlined_call_operand.vmem [shape: f32[2,4,6,34,4], index: 0, kind: input, shape index: {}]   ;;  %s3488_s1 = inlined_call_operand.vmem [shape: f32[1,4], index: 1, kind: input, shape index: {}]   ;;  %s3489_s2 = inlined_call_operand.vmem [shape: f32[1,4], index: 2, kind: input, shape index: {}]   ;;  %s3490_s3 = inlined_call_operand.vmem [shape: f32[36,8], index: 3, kind: input, shape index: {}]   ;;  %s3491_s4 = inlined_call_operand.vmem [shape: f32[2,32,32,8], index: 4, kind: output, shape index: {}]  }
   0x1   :  { %s1954_s17 = smov 0   ;;  %s1956_s18 = smov 0  }
   0x2   :  { %s1958_s19 = smov 0  }
   0x3 LB: > { %s23_s20 = sadd.s32 1, %s1907_s17  ;;  %s26_s21 = sadd.s32 1, %s1911_s18  ;;  %s1915_s19 = sphi %s1958_s19, %s14_s19   ;;  %s1911_s18 = sphi %s1956_s18, %s3576_s18   ;;  %s1907_s17 = sphi %s1954_s17, %s3575_s17   ;;  %s1903_s16 = sphi %s1952_s16, %s3574_s16   ;;  %s1899_s15 = sphi %s1950_s15, %s3573_s15  }
   0x4   : > { %p24_p0 = scmp.ge.s32.totalorder %s23_s20, 4  ;;  %p1766_p1 = scmp.ge.s32.totalorder %s1915_s19, 1 }
   0x5   : > { %p182_p2 = scmp.lt.s32.totalorder %s1915_s19, 9 }
   0x6   : > { %s3578_s20 = smov (%p24_p0, %s23_s20), 0  ;;  %s3580_s21 = smov (!%p24_p0, %s26_s21), %s1911_s18 }
   0x7   : > { %p183_p3 = pnand %p1766_p1, %p182_p2  ;;  %p28_p4 = scmp.ge.s32.totalorder %s3580_s21, 2 }
   0x9   : > { %s3582_s21 = smov (%p28_p4, %s3580_s21), 0  ;;  %186 = sbr.rel (%p183_p3) target bundleno = 679 (0x2a7), region = 36 }
   0xe   : > { %p217_p5 = scmp.lt.s32.totalorder %s1903_s16, 1  ;;  %p219_p6 = scmp.lt.s32.totalorder %s1899_s15, 3  ;;  %v372_v1 = vlaneseq  ;;  %v1999_v5 = vld [vmem:[%s3488_s1] ss:$0 sm:$0xff]  ;;  %vm613_vm3 = vcmask 1046528  }
   0xf   : > { %s1772_s22 = sshll.u32 %s1899_s15, 2  ;;  %v2012_v7 = vld [vmem:[%s3489_s2] ss:$0 sm:$0xff]  ;;  %s1917_s9 = smov 4  }
  0x10   : > { %s3584_s16 = smov (!%p217_p5, %s1903_s16), 1  ;;  %v1986_v0 = vstv %s1772_s22  ;;  %v1991_v3 = vshrl.u32 %v372_v1, 7  ;;  %s1918_s10 = smov 8  }
  0x11   : > { %3521 = vst [vmem:[#allocation2_spill] sm:$0xff] %v1986_v0  ;;  %s220_s23 = scalar_select %p219_p6, %s1899_s15, 3  ;;  %v367_v2 = vadd.s32 1, %v1986_v0  ;;  %v1994_v4 = vadd.s32 2, %v1986_v0  ;;  %vm378_vm4 = vcmp.ge.s32.totalorder %v1986_v0, 1  ;;  %vm384_vm6 = vcmp.le.s32.totalorder %v1986_v0, 16 }
  0x12   : > { %s1824_s24 = smul.u32 120, %s3584_s16  ;;  %3522 = vst [vmem:[#allocation3_spill] sm:$0xff] %v1991_v3  ;;  %v2002_v6 = vadd.s32 32, %v1991_v3  ;;  %vm396_vm5 = vcmp.ge.s32.totalorder %v1991_v3, 1  ;;  %vm2045_vm10 = vmand %vm378_vm4, %vm384_vm6  ;;  %v369_v59 = vadd.s32 3, %v1986_v0  ;;  %s1919_s11 = smov 12  }
  0x13   : > { %s1823_s25 = smul.u32 30, %s220_s23  ;;  %vm379_vm0 = vcmp.ge.s32.totalorder %v367_v2, 1  ;;  %vm385_vm1 = vcmp.le.s32.totalorder %v367_v2, 16  ;;  %vm380_vm7 = vcmp.ge.s32.totalorder %v1994_v4, 1  ;;  %vm386_vm8 = vcmp.le.s32.totalorder %v1994_v4, 16  ;;  %vm423_vm12 = vmand %vm2045_vm10, %vm396_vm5  ;;  %s1920_s12 = smov 16  }
  0x14   : > { %3523 = vst [vmem:[#allocation4_spill] sm:$0xff] %v2002_v6  ;;  %vm2014_vm2 = vmand %vm379_vm0, %vm385_vm1  ;;  %vm457_vm9 = vcmp.le.s32.totalorder %v2002_v6, 32  ;;  %vm387_vm4 = vcmp.le.s32.totalorder %v369_v59, 16  ;;  %s1921_s13 = smov 20   ;;  %s1922_s14 = smov 24  }
  0x15   : > { %s223_s26 = sadd.s32 %s1824_s24, %s1823_s25  ;;  %vm428_vm11 = vmand %vm2014_vm2, %vm396_vm5  ;;  %s1923_s22 = smov 32  }
  0x16   : > { %s1767_s29 = sshll.u32 %s223_s26, 3  ;;  %vm2105_vm13 = vmand %vm2045_vm10, %vm457_vm9  ;;  %s1924_s23 = smov 28  }
  0x17   : > { %s2007_s6 = scalar_lea.vmem %s3487_s0, %s1767_s29  ;;  %vm2119_vm14 = vmand %vm380_vm7, %vm386_vm8 }
  0x18   : > { %v242_v9 = vld [vmem:[%s2007_s6 + $0x28] sm:$0xff]  ;;  %v243_v10 = vld [vmem:[%s2007_s6 + $0x30] sm:$0xff]  ;;  %v240_v14 = vld [vmem:[%s2007_s6 + $0x18] sm:$0xff] }
  0x19   : > { %v239_v11 = vld [vmem:[%s2007_s6 + $0x10] sm:$0xff]  ;;  %v276_v12 = vmul.f32 %v1999_v5, %v242_v9  ;;  %v277_v13 = vmul.f32 %v1999_v5, %v243_v10  ;;  %v237_v16 = vld [vmem:[%s2007_s6] sm:$0xff]  ;;  %v238_v17 = vld [vmem:[%s2007_s6 + $0x8] sm:$0xff]  ;;  %v274_v18 = vmul.f32 %v1999_v5, %v240_v14 }
  0x1a   : > { %v273_v15 = vmul.f32 %v1999_v5, %v239_v11  ;;  %v271_v19 = vmul.f32 %v1999_v5, %v237_v16  ;;  %v272_v20 = vmul.f32 %v1999_v5, %v238_v17  ;;  %v244_v21 = vld [vmem:[%s2007_s6 + $0x38] sm:$0xff]  ;;  %v241_v22 = vld [vmem:[%s2007_s6 + $0x20] sm:$0x3]  ;;  %v247_v48 = vld [vmem:[%s2007_s6 + $0x50] sm:$0xff] }
  0x1b   : > { %v310_v23 = vadd.f32 %v2012_v7, %v276_v12  ;;  %v311_v24 = vadd.f32 %v2012_v7, %v277_v13  ;;  %v278_v27 = vmul.f32 %v1999_v5, %v244_v21  ;;  %v308_v28 = vadd.f32 %v2012_v7, %v274_v18  ;;  %v248_v49 = vld [vmem:[%s2007_s6 + $0x58] sm:$0xff]  ;;  %v245_v54 = vld [vmem:[%s2007_s6 + $0x40] sm:$0xff]  ;;  %v246_v60 = vld [vmem:[%s2007_s6 + $0x48] sm:$0x3] }
  0x1c   : > { %v307_v25 = vadd.f32 %v2012_v7, %v273_v15  ;;  %v305_v29 = vadd.f32 %v2012_v7, %v271_v19  ;;  %v306_v30 = vadd.f32 %v2012_v7, %v272_v20  ;;  %v275_v31 = vmul.f32 %v1999_v5, %v241_v22  ;;  %v250_v9 = vld [vmem:[%s2007_s6 + $0x68] sm:$0xff]  ;;  %v251_v10 = vld [vmem:[%s2007_s6 + $0x70] sm:$0x3]  ;;  %v249_v14 = vld [vmem:[%s2007_s6 + $0x60] sm:$0xff] }
  0x1d   : > { %v340_v32 = vmax.f32 %v310_v23, 0.0  ;;  %v341_v33 = vmax.f32 %v311_v24, 0.0  ;;  %v312_v35 = vadd.f32 %v2012_v7, %v278_v27  ;;  %v338_v36 = vmax.f32 %v308_v28, 0.0  ;;  %vm433_vm15 = vmand %vm2119_vm14, %vm396_vm5  ;;  %v252_v8 = vld [vmem:[%s2007_s6 + $0x78] sm:$0xff] }
  0x1e   : > { %v337_v34 = vmax.f32 %v307_v25, 0.0  ;;  %v335_v37 = vmax.f32 %v305_v29, 0.0  ;;  %v336_v38 = vmax.f32 %v306_v30, 0.0  ;;  %v309_v39 = vadd.f32 %v2012_v7, %v275_v31  ;;  %vm477_vm0 = vmand %vm2014_vm2, %vm457_vm9 }
  0x1f   : > { %v2064_v40 = vsel %vm428_vm11, %v340_v32, 0.0  ;;  %v2068_v41 = vsel %vm2014_vm2, %v341_v33, 0.0  ;;  %v342_v43 = vmax.f32 %v312_v35, 0.0  ;;  %v2078_v46 = vsel %vm2045_vm10, %v338_v36, 0.0  ;;  %vm482_vm1 = vmand %vm2119_vm14, %vm457_vm9 }
  0x20   : > { %v2072_v42 = vsel %vm2045_vm10, %v337_v34, 0.0  ;;  %v623_v44 = vrot.slane %v2064_v40, 1  ;;  %v624_v45 = vrot.slane %v2068_v41, 1  ;;  %v619_v50 = vrot.slane %v2078_v46, 1  ;;  %v254_v34 = vld [vmem:[%s2007_s6 + $0x88] sm:$0xff] }
  0x21   : > { %v617_v47 = vrot.slane %v2072_v42, 1  ;;  %v2084_v51 = vsel %vm423_vm12, %v335_v37, 0.0  ;;  %v2088_v52 = vsel %vm2045_vm10, %v336_v38, 0.0  ;;  %v2092_v53 = vsel %vm2014_vm2, %v342_v43, 0.0  ;;  %v255_v43 = vld [vmem:[%s2007_s6 + $0x90] sm:$0xff] }
  0x22   : > { %3528 = vst [vmem:[#allocation5_spill] sm:$0xff] %v2092_v53  ;;  %v2096_v55 = vsel %vm613_vm3, %v623_v44, %v624_v45  ;;  %v614_v56 = vrot.slane %v2084_v51, 1  ;;  %v615_v57 = vrot.slane %v2088_v52, 1  ;;  %v626_v58 = vrot.slane %v2092_v53, 1 }
  0x23   : > { %667 = vrot.lane.b32.xlu2 %v2096_v55, %s1917_s9  ;;  %v620_v61 = vsel %vm613_vm3, %v617_v47, %v619_v50  ;;  %v339_v62 = vmax.f32 %v309_v39, 0.0  ;;  %v281_v63 = vmul.f32 %v1999_v5, %v247_v48  ;;  %v282_v1 = vmul.f32 %v1999_v5, %v248_v49  ;;  %v253_v48 = vld [vmem:[%s2007_s6 + $0x80] sm:$0xff] }
  0x24   : > { %663 = vrot.lane.b32.xlu1 %v620_v61, %s1917_s9  ;;  %v616_v11 = vsel %vm613_vm3, %v614_v56, %v615_v57  ;;  %v2130_v12 = vsel %vm613_vm3, %v624_v45, %v626_v58  ;;  %v279_v13 = vmul.f32 %v1999_v5, %v245_v54  ;;  %v280_v17 = vmul.f32 %v1999_v5, %v246_v60 }
  0x25   : > { %3533 = vst [vmem:[#allocation6_spill] sm:$0xff] %v2130_v12  ;;  %659 = vrot.lane.b32.xlu0 %v616_v11, %s1917_s9  ;;  %v2137_v4 = vsel %vm2105_vm13, %v339_v62, 0.0  ;;  %v315_v15 = vadd.f32 %v2012_v7, %v281_v63  ;;  %v316_v16 = vadd.f32 %v2012_v7, %v282_v1  ;;  %v284_v20 = vmul.f32 %v1999_v5, %v250_v9 }
  0x26   : > { %v621_v18 = vrot.slane %v2137_v4, 1  ;;  %v313_v19 = vadd.f32 %v2012_v7, %v279_v13  ;;  %v285_v21 = vmul.f32 %v1999_v5, %v251_v10  ;;  %v314_v24 = vadd.f32 %v2012_v7, %v280_v17 }
  0x27   : > { %v345_v22 = vmax.f32 %v315_v15, 0.0  ;;  %v346_v23 = vmax.f32 %v316_v16, 0.0  ;;  %v283_v25 = vmul.f32 %v1999_v5, %v249_v14  ;;  %v318_v28 = vadd.f32 %v2012_v7, %v284_v20  ;;  %v258_v15 = vld [vmem:[%s2007_s6 + $0xa8] sm:$0xff]  ;;  %v259_v16 = vld [vmem:[%s2007_s6 + $0xb0] sm:$0xff] }
  0x28   : > { %v622_v26 = vsel %vm613_vm3, %v619_v50, %v621_v18  ;;  %v343_v27 = vmax.f32 %v313_v19, 0.0  ;;  %v319_v29 = vadd.f32 %v2012_v7, %v285_v21  ;;  %v344_v32 = vmax.f32 %v314_v24, 0.0  ;;  %v257_v19 = vld [vmem:[%s2007_s6 + $0xa0] sm:$0xff] }
  0x29   : > { %v2159_v30 = vsel %vm433_vm15, %v345_v22, 0.0  ;;  %v2163_v31 = vsel %vm2119_vm14, %v346_v23, 0.0  ;;  %v317_v33 = vadd.f32 %v2012_v7, %v283_v25  ;;  %v618_v35 = vsel %vm613_vm3, %v615_v57, %v617_v47 }
  0x2a   : > { %v2170_v36 = vsel %vm2014_vm2, %v343_v27, 0.0  ;;  %v632_v37 = vrot.slane %v2159_v30, 1  ;;  %v633_v38 = vrot.slane %v2163_v31, 1  ;;  %v2176_v39 = vsel %vm477_vm0, %v344_v32, 0.0 }
  0x2b   : > { %669 = vrot.lane.b32.xlu2 %v2130_v12, %s1917_s9  ;;  %v348_v44 = vmax.f32 %v318_v28, 0.0  ;;  %v349_v45 = vmax.f32 %v319_v29, 0.0  ;;  %v288_v47 = vmul.f32 %v1999_v5, %v254_v34  ;;  %v628_v49 = vrot.slane %v2170_v36, 1 }
  0x2c   : > { %665 = vrot.lane.b32.xlu1 %v622_v26, %s1917_s9  ;;  %v630_v50 = vrot.slane %v2176_v39, 1  ;;  %v347_v54 = vmax.f32 %v317_v33, 0.0  ;;  %v289_v56 = vmul.f32 %v1999_v5, %v255_v43  ;;  %v2192_v57 = vsel %vm613_vm3, %v632_v37, %v633_v38  ;;  %v256_v26 = vld [vmem:[%s2007_s6 + $0x98] sm:$0x3] }
  0x2d   : > { %661 = vrot.lane.b32.xlu0 %v618_v35, %s1917_s9  ;;  %v287_v60 = vmul.f32 %v1999_v5, %v253_v48  ;;  %v286_v61 = vmul.f32 %v1999_v5, %v252_v8  ;;  %v2199_v62 = vsel %vm2119_vm14, %v348_v44, 0.0  ;;  %v2201_v63 = vsel %vm482_vm1, %v349_v45, 0.0 }
  0x2e   : > { %v322_v1 = vadd.f32 %v2012_v7, %v288_v47  ;;  %v323_v9 = vadd.f32 %v2012_v7, %v289_v56  ;;  %v2206_v10 = vsel %vm613_vm3, %v628_v49, %v630_v50  ;;  %v2210_v11 = vsel %vm2119_vm14, %v347_v54, 0.0  ;;  %v260_v50 = vld [vmem:[%s2007_s6 + $0xb8] sm:$0xff]  ;;  %v261_v54 = vld [vmem:[%s2007_s6 + $0xc0] sm:$0x3] }
  0x2f   : > { %3534 = vst [vmem:[#allocation7_spill] sm:$0xff] %v2206_v10  ;;  %v2215_v13 = vsel %vm613_vm3, %v626_v58, %v628_v49  ;;  %vm381_vm2 = vcmp.ge.s32.totalorder %v369_v59, 1  ;;  %v321_v14 = vadd.f32 %v2012_v7, %v287_v60  ;;  %v637_v17 = vrot.slane %v2199_v62, 1 }
  0x30   : > { %3535 = vst [vmem:[#allocation8_spill] sm:$0xff] %v2215_v13  ;;  %v639_v2 = vrot.slane %v2201_v63, 1  ;;  %v320_v18 = vadd.f32 %v2012_v7, %v286_v61  ;;  %v635_v58 = vrot.slane %v2210_v11, 1  ;;  %v352_v20 = vmax.f32 %v322_v1, 0.0  ;;  %vm2232_vm6 = vmand %vm381_vm2, %vm387_vm4 }
  0x31   : > { %v353_v21 = vmax.f32 %v323_v9, 0.0  ;;  %v292_v23 = vmul.f32 %v1999_v5, %v258_v15  ;;  %v293_v24 = vmul.f32 %v1999_v5, %v259_v16  ;;  %v370_v25 = vadd.s32 4, %v1986_v0  ;;  %vm438_vm7 = vmand %vm2232_vm6, %vm396_vm5 }
  0x32   : > { %v351_v27 = vmax.f32 %v321_v14, 0.0  ;;  %v291_v28 = vmul.f32 %v1999_v5, %v257_v19  ;;  %v2242_v29 = vsel %vm613_vm3, %v637_v17, %v639_v2  ;;  %v350_v32 = vmax.f32 %v320_v18, 0.0  ;;  %vm487_vm13 = vmand %vm2232_vm6, %vm457_vm9 }
  0x33   : > { %675 = vrot.lane.b32.xlu2 %v2192_v57, %s1917_s9  ;;  %v2245_v33 = vsel %vm613_vm3, %v635_v58, %v637_v17  ;;  %v2249_v34 = vsel %vm2232_vm6, %v352_v20, 0.0  ;;  %v2253_v35 = vsel %vm2232_vm6, %v353_v21, 0.0  ;;  %v290_v37 = vmul.f32 %v1999_v5, %v256_v26 }
  0x34   : > { %673 = vrot.lane.b32.xlu1 %v2206_v10, %s1917_s9  ;;  %3538 = vst [vmem:[#allocation9_spill] sm:$0xff] %v2245_v33  ;;  %v326_v43 = vadd.f32 %v2012_v7, %v292_v23  ;;  %v327_v44 = vadd.f32 %v2012_v7, %v293_v24  ;;  %vm382_vm8 = vcmp.ge.s32.totalorder %v370_v25, 1  ;;  %vm388_vm10 = vcmp.le.s32.totalorder %v370_v25, 16 }
  0x35   : > { %671 = vrot.lane.b32.xlu0 %v2215_v13, %s1917_s9  ;;  %v2263_v45 = vsel %vm613_vm3, %v633_v38, %v635_v58  ;;  %v2267_v47 = vsel %vm2232_vm6, %v351_v27, 0.0  ;;  %v325_v48 = vadd.f32 %v2012_v7, %v291_v28  ;;  %v2272_v8 = vsel %vm438_vm7, %v350_v32, 0.0  ;;  %vm2281_vm11 = vmand %vm382_vm8, %vm388_vm10 }
  0x36   : > { %3539 = vst [vmem:[#allocation10_spill] sm:$0xff] %v2263_v45  ;;  %v324_v49 = vadd.f32 %v2012_v7, %v290_v37  ;;  %v644_v38 = vrot.slane %v2249_v34, 1  ;;  %v646_v56 = vrot.slane %v2253_v35, 1  ;;  %v642_v60 = vrot.slane %v2267_v47, 1  ;;  %vm443_vm12 = vmand %vm2281_vm11, %vm396_vm5 }
  0x37   : > { %v356_v61 = vmax.f32 %v326_v43, 0.0  ;;  %v357_v1 = vmax.f32 %v327_v44, 0.0  ;;  %v641_v9 = vrot.slane %v2272_v8, 1  ;;  %v355_v14 = vmax.f32 %v325_v48, 0.0  ;;  %vm492_vm14 = vmand %vm2281_vm11, %vm457_vm9 }
  0x38   : > { %v294_v15 = vmul.f32 %v1999_v5, %v260_v50  ;;  %v295_v16 = vmul.f32 %v1999_v5, %v261_v54  ;;  %v354_v17 = vmax.f32 %v324_v49, 0.0  ;;  %v2296_v2 = vsel %vm613_vm3, %v644_v38, %v646_v56 }
  0x39   : > { %v2303_v18 = vsel %vm613_vm3, %v642_v60, %v644_v38  ;;  %v2307_v5 = vsel %vm2281_vm11, %v356_v61, 0.0  ;;  %v2311_v19 = vsel %vm2281_vm11, %v357_v1, 0.0  ;;  %v2314_v58 = vsel %vm613_vm3, %v641_v9, %v642_v60 }
  0x3a   : > { %v2316_v20 = vsel %vm443_vm12, %v355_v14, 0.0  ;;  %v328_v21 = vadd.f32 %v2012_v7, %v294_v15  ;;  %v329_v22 = vadd.f32 %v2012_v7, %v295_v16  ;;  %v2322_v23 = vsel %vm487_vm13, %v354_v17, 0.0 }
  0x3b   : > { %681 = vrot.lane.b32.xlu2 %v2242_v29, %s1917_s9  ;;  %v651_v24 = vrot.slane %v2307_v5, 1  ;;  %v653_v25 = vrot.slane %v2311_v19, 1  ;;  %v650_v26 = vrot.slane %v2316_v20, 1  ;;  %v648_v27 = vrot.slane %v2322_v23, 1 }
  0x3c   : > { %679 = vrot.lane.b32.xlu1 %v2245_v33, %s1917_s9  ;;  %v358_v7 = vmax.f32 %v328_v21, 0.0  ;;  %v359_v28 = vmax.f32 %v329_v22, 0.0  ;;  %v720_v49 = vrot.slane %v2084_v51, 2  ;;  %v721_v50 = vrot.slane %v2088_v52, 2 }
  0x3d   : > { %677 = vrot.lane.b32.xlu0 %v2263_v45, %s1917_s9  ;;  %v2337_v32 = vsel %vm613_vm3, %v651_v24, %v653_v25  ;;  %v2340_v37 = vsel %vm613_vm3, %v650_v26, %v651_v24  ;;  %v2343_v43 = vsel %vm613_vm3, %v646_v56, %v648_v27  ;;  %vm719_vm15 = vcmask 1045504  }
  0x3e   : > { %v2347_v44 = vsel %vm2281_vm11, %v358_v7, 0.0  ;;  %v2349_v48 = vsel %vm492_vm14, %v359_v28, 0.0  ;;  %v722_v56 = vsel %vm719_vm15, %v720_v49, %v721_v50  ;;  %v725_v61 = vrot.slane %v2078_v46, 2 }
  0x3f   : > { %v655_v54 = vrot.slane %v2347_v44, 1  ;;  %v657_v38 = vrot.slane %v2349_v48, 1  ;;  %v727_v1 = vrot.slane %v2137_v4, 2  ;;  %v723_v9 = vrot.slane %v2072_v42, 2 }
  0x40   : > { %v732_v17 = vrot.slane %v2092_v53, 2  ;;  %v734_v21 = vrot.slane %v2170_v36, 2  ;;  %v730_v4 = vrot.slane %v2068_v41, 2  ;;  %v729_v22 = vrot.slane %v2064_v40, 2 }
  0x41   : > { %v2363_v59 = vsel %vm613_vm3, %v655_v54, %v657_v38  ;;  %v2366_v60 = vsel %vm613_vm3, %v653_v25, %v655_v54  ;;  %v728_v14 = vsel %vm719_vm15, %v725_v61, %v727_v1  ;;  %v726_v15 = vsel %vm719_vm15, %v723_v9, %v725_v61 }
  0x42   : > { %3542 = vst [vmem:[#allocation11_spill] sm:$0xff] %v2363_v59  ;;  %v724_v16 = vsel %vm719_vm15, %v721_v50, %v723_v9  ;;  %v2387_v24 = vsel %vm719_vm15, %v732_v17, %v734_v21  ;;  %v2390_v25 = vsel %vm719_vm15, %v730_v4, %v732_v17  ;;  %v2393_v26 = vsel %vm719_vm15, %v729_v22, %v730_v4 }
  0x43   : > { %687 = vrot.lane.b32.xlu2 %v2296_v2, %s1917_s9  ;;  %3543 = vst [vmem:[#allocation12_spill] sm:$0xff] %v2387_v24  ;;  %v739_v27 = vrot.slane %v2163_v31, 2  ;;  %v741_v7 = vrot.slane %v2210_v11, 2  ;;  %v738_v28 = vrot.slane %v2159_v30, 2  ;;  %v736_v49 = vrot.slane %v2176_v39, 2 }
  0x44   : > { %685 = vrot.lane.b32.xlu1 %v2303_v18, %s1917_s9  ;;  %v748_v61 = vrot.slane %v2267_v47, 2  ;;  %v743_v39 = vrot.slane %v2199_v62, 2  ;;  %v745_v1 = vrot.slane %v2201_v63, 2  ;;  %v754_v17 = vrot.slane %v2322_v23, 2 }
  0x45   : > { %683 = vrot.lane.b32.xlu0 %v2314_v58, %s1917_s9  ;;  %v2406_v50 = vsel %vm719_vm15, %v739_v27, %v741_v7  ;;  %v2409_v54 = vsel %vm719_vm15, %v738_v28, %v739_v27  ;;  %v2412_v38 = vsel %vm719_vm15, %v734_v21, %v736_v49  ;;  %v750_v63 = vrot.slane %v2249_v34, 2 }
  0x46   : > { %3544 = vst [vmem:[#allocation13_spill] sm:$0xff] %v2406_v50  ;;  %v759_v23 = vrot.slane %v2311_v19, 2  ;;  %v761_v27 = vrot.slane %v2347_v44, 2  ;;  %v757_v28 = vrot.slane %v2307_v5, 2  ;;  %v756_v49 = vrot.slane %v2316_v20, 2 }
  0x47   : > { %3545 = vst [vmem:[#allocation14_spill] sm:$0xff] %v2412_v38  ;;  %v2449_v22 = vsel %vm719_vm15, %v748_v61, %v750_v63  ;;  %vm1172_vm0 = vcmask 31744   ;;  %vm1193_vm1 = vcmask 64512   ;;  %vm1214_vm2 = vcmask 97280  }
  0x48   : > { %vm1247_vm4 = vcmask 130048   ;;  %vm1514_vm6 = vcmask 1043456   ;;  %vm1280_vm7 = vcmask 162816   ;;  %vm1313_vm8 = vcmask 195584  }
  0x49   : > { %vm1346_vm10 = vcmask 228352   ;;  %vm1379_vm11 = vcmask 261120   ;;  %vm1417_vm12 = vcmask 293888  }
  0x4b   : > { %693 = vrot.lane.b32.xlu2 %v2337_v32, %s1917_s9 }
  0x4c   : > { %691 = vrot.lane.b32.xlu1 %v2340_v37, %s1917_s9 }
  0x4d   : > { %689 = vrot.lane.b32.xlu0 %v2343_v43, %s1917_s9 }
  0x53   : > { %765 = vrot.lane.b32.xlu2 %v722_v56, %s1918_s10  ;;  %v747_v56 = vrot.slane %v2272_v8, 2 }
  0x54   : > { %697 = vrot.lane.b32.xlu1 %v2363_v59, %s1917_s9 }
  0x55   : > { %695 = vrot.lane.b32.xlu0 %v2366_v60, %s1917_s9  ;;  %v2425_v9 = vsel %vm719_vm15, %v747_v56, %v748_v61  ;;  %v2464_v56 = vsel %vm719_vm15, %v759_v23, %v761_v27  ;;  %v2467_v61 = vsel %vm719_vm15, %v757_v28, %v759_v23 }
  0x56   : > { %3550 = vst [vmem:[#allocation19_spill] sm:$0xff] %v2464_v56 }
  0x5b   : > { %771 = vrot.lane.b32.xlu2 %v728_v14, %s1918_s10  ;;  %v2428_v14 = vsel %vm719_vm15, %v743_v39, %v745_v1 }
  0x5c   : > { %769 = vrot.lane.b32.xlu1 %v726_v15, %s1918_s10  ;;  %3546 = vst [vmem:[#allocation15_spill] sm:$0xff] %v2428_v14  ;;  %v2431_v15 = vsel %vm719_vm15, %v741_v7, %v743_v39  ;;  %v2470_v39 = vsel %vm719_vm15, %v756_v49, %v757_v28 }
  0x5d   : > { %767 = vrot.lane.b32.xlu0 %v724_v16, %s1918_s10  ;;  %3547 = vst [vmem:[#allocation16_spill] sm:$0xff] %v2431_v15  ;;  %v752_v16 = vrot.slane %v2253_v35, 2 }
  0x5f   : > { %v2443_v21 = vsel %vm719_vm15, %v752_v16, %v754_v17  ;;  %v2446_v4 = vsel %vm719_vm15, %v750_v63, %v752_v16  ;;  %v763_v16 = vrot.slane %v2349_v48, 2 }
  0x60   : > { %3548 = vst [vmem:[#allocation17_spill] sm:$0xff] %v2443_v21 }
  0x61   : > { %3549 = vst [vmem:[#allocation18_spill] sm:$0xff] %v2446_v4  ;;  %v2482_v17 = vsel %vm719_vm15, %v761_v27, %v763_v16 }
  0x62   : > { %3551 = vst [vmem:[#allocation20_spill] sm:$0xff] %v2482_v17 }
  0x63   : > { %777 = vrot.lane.b32.xlu2 %v2387_v24, %s1918_s10 }
  0x64   : > { %775 = vrot.lane.b32.xlu1 %v2390_v25, %s1918_s10 }
  0x65   : > { %773 = vrot.lane.b32.xlu0 %v2393_v26, %s1918_s10 }
  0x6b   : > { %783 = vrot.lane.b32.xlu2 %v2406_v50, %s1918_s10 }
  0x6c   : > { %781 = vrot.lane.b32.xlu1 %v2409_v54, %s1918_s10 }
  0x6d   : > { %779 = vrot.lane.b32.xlu0 %v2412_v38, %s1918_s10 }
  0x73   : > { %789 = vrot.lane.b32.xlu2 %v2425_v9, %s1918_s10 }
  0x74   : > { %787 = vrot.lane.b32.xlu1 %v2428_v14, %s1918_s10 }
  0x75   : > { %785 = vrot.lane.b32.xlu0 %v2431_v15, %s1918_s10 }
  0x7b   : > { %795 = vrot.lane.b32.xlu2 %v2443_v21, %s1918_s10 }
  0x7c   : > { %793 = vrot.lane.b32.xlu1 %v2446_v4, %s1918_s10 }
  0x7d   : > { %791 = vrot.lane.b32.xlu0 %v2449_v22, %s1918_s10  ;;  %v2459_v7 = vpop.permute.xlu2 %667 }
  0x83   : > { %801 = vrot.lane.b32.xlu2 %v2464_v56, %s1918_s10 }
  0x84   : > { %799 = vrot.lane.b32.xlu1 %v2467_v61, %s1918_s10 }
  0x85   : > { %797 = vrot.lane.b32.xlu0 %v2470_v39, %s1918_s10  ;;  %v2478_v1 = vpop.permute.xlu2 %669 }
  0x8b   : > { %827 = vrot.lane.b32.xlu2 %v2068_v41, %s1919_s11 }
  0x8c   : > { %825 = vrot.lane.b32.xlu1 %v2064_v40, %s1919_s11 }
  0x8d   : > { %803 = vrot.lane.b32.xlu0 %v2482_v17, %s1918_s10  ;;  %v2490_v63 = vpop.permute.xlu2 %675 }
  0x93   : > { %833 = vrot.lane.b32.xlu2 %v2159_v30, %s1919_s11 }
  0x94   : > { %831 = vrot.lane.b32.xlu1 %v2170_v36, %s1919_s11 }
  0x95   : > { %829 = vrot.lane.b32.xlu0 %v2092_v53, %s1919_s11  ;;  %v2498_v48 = vpop.permute.xlu2 %681 }
  0x96   : > { %v664_v23 = vpop.permute.xlu1 %663 }
  0x97   : > { %v2500_v27 = vpop.permute.xlu0 %659 }
  0x9b   : > { %839 = vrot.lane.b32.xlu2 %v2199_v62, %s1919_s11 }
  0x9c   : > { %837 = vrot.lane.b32.xlu1 %v2210_v11, %s1919_s11 }
  0x9d   : > { %835 = vrot.lane.b32.xlu0 %v2163_v31, %s1919_s11  ;;  %v2508_v28 = vpop.permute.xlu2 %687 }
  0x9e   : > { %v666_v49 = vpop.permute.xlu1 %665 }
  0x9f   : > { %v662_v16 = vpop.permute.xlu0 %661  ;;  %v1176_v21 = vsel %vm1172_vm0, %v2078_v46, %v666_v49 }
  0xa3   : > { %845 = vrot.lane.b32.xlu2 %v2249_v34, %s1919_s11 }
  0xa4   : > { %843 = vrot.lane.b32.xlu1 %v2267_v47, %s1919_s11 }
  0xa5   : > { %841 = vrot.lane.b32.xlu0 %v2272_v8, %s1919_s11  ;;  %v2516_v6 = vpop.permute.xlu2 %693 }
  0xa6   : > { %v2518_v3 = vpop.permute.xlu1 %673 }
  0xa7   : > { %v672_v14 = vpop.permute.xlu0 %671 }
  0xa8   : > { %v1179_v46 = vsel %vm1172_vm0, %v2092_v53, %v672_v14 }
  0xab   : > { %851 = vrot.lane.b32.xlu2 %v2307_v5, %s1919_s11 }
  0xac   : > { %849 = vrot.lane.b32.xlu1 %v2316_v20, %s1919_s11 }
  0xad   : > { %847 = vrot.lane.b32.xlu0 %v2253_v35, %s1919_s11  ;;  %v2526_v0 = vpop.permute.xlu2 %765 }
  0xae   : > { %v2528_v38 = vpop.permute.xlu1 %679 }
  0xaf   : > { %v678_v17 = vpop.permute.xlu0 %677 }
  0xb3   : > { %873 = vrot.lane.b32.xlu2 %v2096_v55, %s1920_s12 }
  0xb4   : > { %855 = vrot.lane.b32.xlu1 %v2347_v44, %s1919_s11 }
  0xb5   : > { %853 = vrot.lane.b32.xlu0 %v2311_v19, %s1919_s11  ;;  %v772_v24 = vpop.permute.xlu2 %771 }
  0xb6   : > { %v2538_v15 = vpop.permute.xlu1 %685  ;;  %v2541_v59 = vsel %vm1193_vm1, %v1176_v21, %v772_v24  ;;  %v1182_v21 = vsel %vm1172_vm0, %v2163_v31, %v678_v17 }
  0xb7   : > { %v684_v4 = vpop.permute.xlu0 %683 }
  0xbb   : > { %879 = vrot.lane.b32.xlu2 %v2206_v10, %s1920_s12 }
  0xbc   : > { %877 = vrot.lane.b32.xlu1 %v2215_v13, %s1920_s12 }
  0xbd   : > { %875 = vrot.lane.b32.xlu0 %v2130_v12, %s1920_s12  ;;  %v778_v49 = vpop.permute.xlu2 %777 }
  0xbe   : > { %v2551_v56 = vpop.permute.xlu1 %691  ;;  %v2554_v50 = vsel %vm1193_vm1, %v1179_v46, %v778_v49  ;;  %v1185_v49 = vsel %vm1172_vm0, %v2272_v8, %v684_v4 }
  0xbf   : > { %v690_v24 = vpop.permute.xlu0 %689 }
  0xc3   : > { %885 = vrot.lane.b32.xlu2 %v2245_v33, %s1920_s12  ;;  %v1175_v33 = vsel %vm1172_vm0, %v2072_v42, %v664_v23  ;;  %v1188_v42 = vsel %vm1172_vm0, %v2253_v35, %v690_v24 }
  0xc4   : > { %883 = vrot.lane.b32.xlu1 %v2263_v45, %s1920_s12 }
  0xc5   : > { %881 = vrot.lane.b32.xlu0 %v2192_v57, %s1920_s12  ;;  %v784_v14 = vpop.permute.xlu2 %783 }
  0xc6   : > { %v2564_v10 = vpop.permute.xlu1 %697  ;;  %v2567_v13 = vsel %vm1193_vm1, %v1182_v21, %v784_v14  ;;  %v1174_v14 = vsel %vm1172_vm0, %v2088_v52, %v662_v16  ;;  %v1178_v52 = vsel %vm1172_vm0, %v2068_v41, %v2478_v1 }
  0xc7   : > { %v696_v46 = vpop.permute.xlu0 %695 }
  0xc8   : > { %v1191_v1 = vsel %vm1172_vm0, %v2311_v19, %v696_v46 }
  0xcb   : > { %891 = vrot.lane.b32.xlu2 %v2303_v18, %s1920_s12 }
  0xcc   : > { %889 = vrot.lane.b32.xlu1 %v2314_v58, %s1920_s12 }
  0xcd   : > { %887 = vrot.lane.b32.xlu0 %v2242_v29, %s1920_s12  ;;  %v790_v17 = vpop.permute.xlu2 %789 }
  0xce   : > { %v770_v53 = vpop.permute.xlu1 %769  ;;  %v2580_v21 = vsel %vm1193_vm1, %v1185_v49, %v790_v17  ;;  %v1181_v17 = vsel %vm1172_vm0, %v2159_v30, %v2490_v63 }
  0xcf   : > { %v2585_v45 = vsel %vm1193_vm1, %v1175_v33, %v770_v53  ;;  %v768_v12 = vpop.permute.xlu0 %767  ;;  %v1177_v33 = vsel %vm1172_vm0, %v2064_v40, %v2459_v7 }
  0xd0   : > { %v1195_v4 = vsel %vm1193_vm1, %v1174_v14, %v768_v12 }
  0xd3   : > { %897 = vrot.lane.b32.xlu2 %v2340_v37, %s1920_s12 }
  0xd4   : > { %895 = vrot.lane.b32.xlu1 %v2343_v43, %s1920_s12 }
  0xd5   : > { %893 = vrot.lane.b32.xlu0 %v2296_v2, %s1920_s12  ;;  %v796_v23 = vpop.permute.xlu2 %795 }
  0xd6   : > { %v776_v53 = vpop.permute.xlu1 %775  ;;  %v2600_v12 = vsel %vm1193_vm1, %v1188_v42, %v796_v23  ;;  %v1180_v23 = vsel %vm1172_vm0, %v2170_v36, %v2518_v3  ;;  %v1184_v3 = vsel %vm1172_vm0, %v2199_v62, %v2498_v48 }
  0xd7   : > { %v2606_v16 = vsel %vm1193_vm1, %v1178_v52, %v776_v53  ;;  %v774_v24 = vpop.permute.xlu0 %773 }
  0xd8   : > { %v2609_v49 = vsel %vm1193_vm1, %v1177_v33, %v774_v24 }
  0xdb   : > { %937 = vrot.lane.b32.xlu2 %v2425_v9, %s1921_s13 }
  0xdc   : > { %901 = vrot.lane.b32.xlu1 %v2366_v60, %s1920_s12 }
  0xdd   : > { %899 = vrot.lane.b32.xlu0 %v2337_v32, %s1920_s12  ;;  %v802_v7 = vpop.permute.xlu2 %801 }
  0xde   : > { %v782_v14 = vpop.permute.xlu1 %781  ;;  %v2623_v42 = vsel %vm1193_vm1, %v1191_v1, %v802_v7 }
  0xdf   : > { %v2629_v52 = vsel %vm1193_vm1, %v1181_v17, %v782_v14  ;;  %v780_v46 = vpop.permute.xlu0 %779 }
  0xe0   : > { %v2632_v53 = vsel %vm1193_vm1, %v1180_v23, %v780_v46 }
  0xe3   : > { %997 = vrot.lane.b32.xlu2 %v2316_v20, %s1922_s14 }
  0xe4   : > { %989 = vrot.lane.b32.xlu1 %v2272_v8, %s1922_s14  ;;  %v1183_v8 = vsel %vm1172_vm0, %v2210_v11, %v2528_v38  ;;  %v1187_v38 = vsel %vm1172_vm0, %v2249_v34, %v2508_v28 }
  0xe5   : > { %945 = vrot.lane.b32.xlu0 %v2470_v39, %s1921_s13  ;;  %v828_v63 = vpop.permute.xlu2 %827 }
  0xe6   : > { %v788_v33 = vpop.permute.xlu1 %787  ;;  %v2644_v24 = vsel %vm1214_vm2, %v1195_v4, %v828_v63  ;;  %v2648_v1 = vsel %vm1214_vm2, %v2606_v16, %v828_v63 }
  0xe7   : > { %v2654_v7 = vsel %vm1193_vm1, %v1184_v3, %v788_v33  ;;  %v786_v17 = vpop.permute.xlu0 %785 }
  0xe8   : > { %v2657_v14 = vsel %vm1193_vm1, %v1183_v8, %v786_v17  ;;  %v1189_v17 = vsel %vm1172_vm0, %v2316_v20, %v2551_v56 }
  0xeb   : > { %1128 = vrot.lane.b32.xlu2 %v2425_v9, %s1923_s22 }
  0xec   : > { %1067 = vrot.lane.b32.xlu1 %v2340_v37, %s1924_s23  ;;  %v1186_v37 = vsel %vm1172_vm0, %v2267_v47, %v2538_v15  ;;  %v1190_v15 = vsel %vm1172_vm0, %v2307_v5, %v2516_v6  ;;  %v1173_v6 = vsel %vm1172_vm0, %v2084_v51, %v2500_v27  ;;  %v1192_v51 = vsel %vm1172_vm0, %v2347_v44, %v2564_v10 }
  0xed   : > { %1059 = vrot.lane.b32.xlu0 %v2314_v58, %s1924_s23  ;;  %v834_v48 = vpop.permute.xlu2 %833  ;;  %v1194_v20 = vsel %vm1193_vm1, %v1173_v6, %v2526_v0 }
  0xee   : > { %v794_v4 = vpop.permute.xlu1 %793  ;;  %v2670_v23 = vsel %vm1214_vm2, %v2609_v49, %v834_v48  ;;  %v2674_v9 = vsel %vm1214_vm2, %v2629_v52, %v834_v48 }
  0xef   : > { %v2680_v58 = vsel %vm1193_vm1, %v1187_v38, %v794_v4  ;;  %v792_v46 = vpop.permute.xlu0 %791 }
  0xf0   : > { %v1207_v63 = vsel %vm1193_vm1, %v1186_v37, %v792_v46 }
  0xf3   : > { %929 = vrot.lane.b32.xlu2 %v2409_v54, %s1921_s13 }
  0xf4   : > { %921 = vrot.lane.b32.xlu1 %v2393_v26, %s1921_s13 }
  0xf5   : > { %1136 = vrot.lane.b32.xlu0 %v2470_v39, %s1923_s22  ;;  %v840_v28 = vpop.permute.xlu2 %839 }
  0xf6   : > { %v800_v3 = vpop.permute.xlu1 %799  ;;  %v2694_v33 = vsel %vm1214_vm2, %v2632_v53, %v840_v28  ;;  %v2698_v8 = vsel %vm1214_vm2, %v2654_v7, %v840_v28 }
  0xf7   : > { %v1211_v39 = vsel %vm1193_vm1, %v1190_v15, %v800_v3  ;;  %v798_v48 = vpop.permute.xlu0 %797 }
  0xf8   : > { %v1210_v38 = vsel %vm1193_vm1, %v1189_v17, %v798_v48 }
  0xfb   : > { %939 = vrot.lane.b32.xlu2 %v2449_v22, %s1921_s13 }
  0xfc   : > { %981 = vrot.lane.b32.xlu1 %v2159_v30, %s1922_s14 }
  0xfd   : > { %973 = vrot.lane.b32.xlu0 %v2064_v40, %s1922_s14  ;;  %v846_v4 = vpop.permute.xlu2 %845 }
  0xfe   : > { %v826_v56 = vpop.permute.xlu1 %825  ;;  %v2718_v37 = vsel %vm1214_vm2, %v2657_v14, %v846_v4  ;;  %v2722_v46 = vsel %vm1214_vm2, %v2680_v58, %v846_v4 }
  0xff   : > { %v1215_v30 = vsel %vm1214_vm2, %v1194_v20, %v826_v56  ;;  %v1219_v40 = vsel %vm1214_vm2, %v2609_v49, %v826_v56  ;;  %v804_v27 = vpop.permute.xlu0 %803 }
 0x100   : > { %v1213_v0 = vsel %vm1193_vm1, %v1192_v51, %v804_v27 }
 0x103   : > { %1051 = vrot.lane.b32.xlu2 %v2192_v57, %s1924_s23 }
 0x104   : > { %1043 = vrot.lane.b32.xlu1 %v2096_v55, %s1924_s23 }
 0x105   : > { %947 = vrot.lane.b32.xlu0 %v2467_v61, %s1921_s13  ;;  %v852_v28 = vpop.permute.xlu2 %851 }
 0x106   : > { %v832_v15 = vpop.permute.xlu1 %831  ;;  %v2738_v10 = vsel %vm1214_vm2, %v1207_v63, %v852_v28  ;;  %v2741_v3 = vsel %vm1214_vm2, %v1211_v39, %v852_v28 }
 0x107   : > { %v1218_v49 = vsel %vm1214_vm2, %v2541_v59, %v832_v15  ;;  %v1222_v57 = vsel %vm1214_vm2, %v2632_v53, %v832_v15  ;;  %v830_v17 = vpop.permute.xlu0 %829 }
 0x108   : > { %v1217_v55 = vsel %vm1214_vm2, %v2585_v45, %v830_v17  ;;  %v1221_v48 = vsel %vm1214_vm2, %v2554_v50, %v830_v17 }
 0x10b   : > { %1112 = vrot.lane.b32.xlu2 %v2393_v26, %s1923_s22 }
 0x10c   : > { %999 = vrot.lane.b32.xlu1 %v2307_v5, %s1922_s14 }
 0x10d   : > { %991 = vrot.lane.b32.xlu0 %v2267_v47, %s1922_s14  ;;  %v874_v59 = vpop.permute.xlu2 %873 }
 0x10e   : > { %v838_v39 = vpop.permute.xlu1 %837  ;;  %v2758_v53 = vsel %vm1247_vm4, %v1215_v30, %v874_v59  ;;  %v2761_v45 = vsel %vm1247_vm4, %v1219_v40, %v874_v59 }
 0x10f   : > { %v1225_v6 = vsel %vm1214_vm2, %v2554_v50, %v838_v39  ;;  %v1229_v26 = vsel %vm1214_vm2, %v2657_v14, %v838_v39  ;;  %v836_v4 = vpop.permute.xlu0 %835  ;;  %v3553_v39 = vld [vmem:[#allocation6_spill] sm:$0xff] }
 0x110   : > { %v1224_v5 = vsel %vm1214_vm2, %v2606_v16, %v836_v4  ;;  %v1228_v47 = vsel %vm1214_vm2, %v2567_v13, %v836_v4 }
 0x113   : > { %1069 = vrot.lane.b32.xlu2 %v2337_v32, %s1924_s23 }
 0x114   : > { %1061 = vrot.lane.b32.xlu1 %v2303_v18, %s1924_s23 }
 0x115   : > { %1120 = vrot.lane.b32.xlu0 %v2409_v54, %s1923_s22  ;;  %v880_v50 = vpop.permute.xlu2 %879 }
 0x116   : > { %v844_v20 = vpop.permute.xlu1 %843  ;;  %v2778_v14 = vsel %vm1247_vm4, %v1218_v49, %v880_v50  ;;  %v2781_v56 = vsel %vm1247_vm4, %v1222_v57, %v880_v50 }
 0x117   : > { %v1232_v16 = vsel %vm1214_vm2, %v2567_v13, %v844_v20  ;;  %v1236_v51 = vsel %vm1214_vm2, %v1207_v63, %v844_v20  ;;  %v842_v32 = vpop.permute.xlu0 %841 }
 0x118   : > { %v2788_v18 = vsel %vm1214_vm2, %v2629_v52, %v842_v32  ;;  %v2792_v54 = vsel %vm1214_vm2, %v2580_v21, %v842_v32 }
 0x11b   : > { %923 = vrot.lane.b32.xlu2 %v2390_v25, %s1921_s13 }
 0x11c   : > { %1138 = vrot.lane.b32.xlu1 %v2467_v61, %s1923_s22 }
 0x11d   : > { %1130 = vrot.lane.b32.xlu0 %v2449_v22, %s1923_s22  ;;  %v886_v13 = vpop.permute.xlu2 %885 }
 0x11e   : > { %v850_v63 = vpop.permute.xlu1 %849  ;;  %v2801_v30 = vsel %vm1247_vm4, %v1225_v6, %v886_v13  ;;  %v2804_v52 = vsel %vm1247_vm4, %v1229_v26, %v886_v13  ;;  %v3554_v6 = vld [vmem:[#allocation19_spill] sm:$0xff] }
 0x11f   : > { %v2808_v40 = vsel %vm1214_vm2, %v2580_v21, %v850_v63  ;;  %v1243_v27 = vsel %vm1214_vm2, %v1210_v38, %v850_v63  ;;  %v848_v28 = vpop.permute.xlu0 %847  ;;  %v3552_v21 = vld [vmem:[#allocation13_spill] sm:$0xff] }
 0x120   : > { %v2813_v61 = vsel %vm1214_vm2, %v2654_v7, %v848_v28  ;;  %v2817_v22 = vsel %vm1214_vm2, %v2600_v12, %v848_v28 }
 0x123   : > { %983 = vrot.lane.b32.xlu2 %v2163_v31, %s1922_s14 }
 0x124   : > { %975 = vrot.lane.b32.xlu1 %v2068_v41, %s1922_s14 }
 0x125   : > { %931 = vrot.lane.b32.xlu0 %v3552_v21, %s1921_s13  ;;  %v892_v15 = vpop.permute.xlu2 %891 }
 0x126   : > { %v856_v38 = vpop.permute.xlu1 %855  ;;  %v2826_v49 = vsel %vm1247_vm4, %v1232_v16, %v892_v15  ;;  %v2829_v7 = vsel %vm1247_vm4, %v1236_v51, %v892_v15  ;;  %v1412_v15 = vld [vmem:[%s3490_s3] sm:$0xff] }
 0x127   : > { %v2833_v57 = vsel %vm1214_vm2, %v2600_v12, %v856_v38  ;;  %v2836_v31 = vsel %vm1214_vm2, %v1213_v0, %v856_v38  ;;  %v854_v17 = vpop.permute.xlu0 %853  ;;  %v3555_v12 = vld [vmem:[#allocation18_spill] sm:$0xff] }
 0x128   : > { %v2840_v41 = vsel %vm1214_vm2, %v2680_v58, %v854_v17  ;;  %v2844_v59 = vsel %vm1214_vm2, %v2623_v42, %v854_v17 }
 0x12b   : > { %1045 = vrot.lane.b32.xlu2 %v3553_v39, %s1924_s23 }
 0x12c   : > { %949 = vrot.lane.b32.xlu1 %v3554_v6, %s1921_s13 }
 0x12d   : > { %941 = vrot.lane.b32.xlu0 %v3555_v12, %s1921_s13  ;;  %v2852_v0 = vpop.permute.xlu2 %897 }
 0x12e   : > { %v878_v26 = vpop.permute.xlu1 %877  ;;  %v2856_v58 = vsel %vm1247_vm4, %v1243_v27, %v2852_v0 }
 0x12f   : > { %v2859_v4 = vsel %vm1247_vm4, %v1217_v55, %v878_v26  ;;  %v2862_v42 = vsel %vm1247_vm4, %v1221_v48, %v878_v26  ;;  %v876_v50 = vpop.permute.xlu0 %875  ;;  %v3556_v55 = vld [vmem:[#allocation10_spill] sm:$0xff]  ;;  %v3558_v26 = vld [vmem:[#allocation16_spill] sm:$0xff] }
 0x130   : > { %v2866_v20 = vsel %vm1247_vm4, %v2644_v24, %v876_v50  ;;  %v2870_v16 = vsel %vm1247_vm4, %v2648_v1, %v876_v50 }
 0x133   : > { %1001 = vrot.lane.b32.xlu2 %v2311_v19, %s1922_s14  ;;  %v1416_v19 = vld [vmem:[%s3490_s3 + $0x20] sm:$0xf] }
 0x134   : > { %993 = vrot.lane.b32.xlu1 %v2249_v34, %s1922_s14  ;;  %1809 = vmatpush.msk.msra.mxu2 %vm1514_vm6, %v1416_v19 }
 0x135   : > { %1053 = vrot.lane.b32.xlu0 %v3556_v55, %s1924_s23  ;;  %v2878_v48 = vpop.permute.xlu2 %937  ;;  %1810 = vmatpush.msk.msra.mxu3 %vm1514_vm6, %v1416_v19 }
 0x136   : > { %v884_v51 = vpop.permute.xlu1 %883  ;;  %1773 = vmatpush.msk.msra.mxu0 %vm1514_vm6, %v1416_v19  ;;  %1808 = vmatpush.msk.msra.mxu1 %vm1514_vm6, %v1416_v19  ;;  %v3560_v19 = vld [vmem:[#allocation17_spill] sm:$0xff] }
 0x137   : > { %v2881_v32 = vsel %vm1247_vm4, %v1224_v5, %v884_v51  ;;  %v2884_v24 = vsel %vm1247_vm4, %v1228_v47, %v884_v51  ;;  %v882_v1 = vpop.permute.xlu0 %881  ;;  %v1415_v5 = vld [vmem:[%s3490_s3 + $0x18] sm:$0xff]  ;;  %v1414_v47 = vld [vmem:[%s3490_s3 + $0x10] sm:$0xff] }
 0x138   : > { %v2888_v13 = vsel %vm1247_vm4, %v2670_v23, %v882_v1  ;;  %v1260_v34 = vsel %vm1247_vm4, %v2674_v9, %v882_v1  ;;  %1812 = vmatpush.msra.mxu2 %v1415_v5  ;;  %1813 = vmatpush.msra.mxu3 %v1415_v5  ;;  %v1413_v9 = vld [vmem:[%s3490_s3 + $0x8] sm:$0xff] }
 0x139   : > { %1530 = vmatpush.msra.mxu0 %v1415_v5  ;;  %1811 = vmatpush.msra.mxu1 %v1415_v5 }
 0x13a   : > { %1815 = vmatpush.msra.mxu2 %v1414_v47  ;;  %1816 = vmatpush.msra.mxu3 %v1414_v47 }
 0x13b   : > { %1063 = vrot.lane.b32.xlu2 %v2296_v2, %s1924_s23  ;;  %1531 = vmatpush.msra.mxu0 %v1414_v47 }
 0x13c   : > { %1122 = vrot.lane.b32.xlu1 %v3552_v21, %s1923_s22  ;;  %1818 = vmatpush.msra.mxu2 %v1413_v9 }
 0x13d   : > { %1114 = vrot.lane.b32.xlu0 %v2390_v25, %s1923_s22  ;;  %v2907_v23 = vpop.permute.xlu2 %997  ;;  %1819 = vmatpush.msra.mxu3 %v1413_v9 }
 0x13e   : > { %v890_v63 = vpop.permute.xlu1 %889  ;;  %1821 = vmatpush.msra.mxu2 %v1412_v15  ;;  %1814 = vmatpush.msra.mxu1 %v1414_v47 }
 0x13f   : > { %v1268_v2 = vsel %vm1247_vm4, %v2792_v54, %v890_v63  ;;  %v888_v27 = vpop.permute.xlu0 %887  ;;  %1822 = vmatpush.msra.mxu3 %v1412_v15  ;;  %1532 = vmatpush.msra.mxu0 %v1413_v9 }
 0x140   : > { %v1301_v25 = vsel %vm1280_vm7, %v1268_v2, %v2878_v48  ;;  %v2918_v28 = vsel %vm1247_vm4, %v2694_v33, %v888_v27  ;;  %v2922_v21 = vsel %vm1247_vm4, %v2698_v8, %v888_v27  ;;  %1817 = vmatpush.msra.mxu1 %v1413_v9  ;;  %v3562_v2 = vld [vmem:[#allocation9_spill] sm:$0xff]  ;;  %v3563_v27 = vld [vmem:[#allocation8_spill] sm:$0xff] }
 0x141   : > { %v1334_v54 = vsel %vm1313_vm8, %v1301_v25, %v2907_v23  ;;  %1533 = vmatpush.msra.mxu0 %v1412_v15 }
 0x142   : > { %1820 = vmatpush.msra.mxu1 %v1412_v15 }
 0x143   : > { %1140 = vrot.lane.b32.xlu2 %v3554_v6, %s1923_s22 }
 0x144   : > { %1132 = vrot.lane.b32.xlu1 %v3555_v12, %s1923_s22  ;;  %v3557_v12 = vld [vmem:[#allocation11_spill] sm:$0xff] }
 0x145   : > { %1071 = vrot.lane.b32.xlu0 %v2366_v60, %s1924_s23  ;;  %v1129_v33 = vpop.permute.xlu2 %1128 }
 0x146   : > { %v896_v8 = vpop.permute.xlu1 %895 }
 0x147   : > { %v2937_v38 = vsel %vm1247_vm4, %v2813_v61, %v896_v8  ;;  %v2941_v17 = vsel %vm1247_vm4, %v2817_v22, %v896_v8  ;;  %v894_v39 = vpop.permute.xlu0 %893  ;;  %v3559_v61 = vld [vmem:[#allocation12_spill] sm:$0xff] }
 0x148   : > { %v2945_v6 = vsel %vm1247_vm4, %v2718_v37, %v894_v39  ;;  %v2949_v60 = vsel %vm1247_vm4, %v2722_v46, %v894_v39 }
 0x14b   : > { %903 = vrot.lane.b32.xlu2 %v3557_v12, %s1920_s12 }
 0x14c   : > { %933 = vrot.lane.b32.xlu1 %v3558_v26, %s1921_s13 }
 0x14d   : > { %925 = vrot.lane.b32.xlu0 %v3559_v61, %s1921_s13  ;;  %v2957_v22 = vpop.permute.xlu2 %929 }
 0x14e   : > { %v902_v50 = vpop.permute.xlu1 %901  ;;  %v1293_v37 = vsel %vm1280_vm7, %v1260_v34, %v2957_v22 }
 0x14f   : > { %v2963_v55 = vsel %vm1247_vm4, %v2840_v41, %v902_v50  ;;  %v2967_v46 = vsel %vm1247_vm4, %v2844_v59, %v902_v50  ;;  %v2969_v51 = vpop.permute.xlu0 %899  ;;  %v3561_v41 = vld [vmem:[#allocation5_spill] sm:$0xff] }
 0x150   : > { %v2974_v1 = vsel %vm1247_vm4, %v2741_v3, %v2969_v51 }
 0x153   : > { %943 = vrot.lane.b32.xlu2 %v3560_v19, %s1921_s13 }
 0x154   : > { %985 = vrot.lane.b32.xlu1 %v2210_v11, %s1922_s14  ;;  %v1264_v11 = vsel %vm1247_vm4, %v2788_v18, %v890_v63 }
 0x155   : > { %977 = vrot.lane.b32.xlu0 %v3561_v41, %s1922_s14  ;;  %v2982_v34 = vpop.permute.xlu2 %939  ;;  %v1297_v15 = vsel %vm1280_vm7, %v1264_v11, %v2878_v48  ;;  %v1272_v48 = vsel %vm1247_vm4, %v2808_v40, %v2852_v0 }
 0x156   : > { %v990_v59 = vpop.permute.xlu1 %989  ;;  %v2987_v5 = vsel %vm1280_vm7, %v2829_v7, %v2982_v34  ;;  %v3564_v7 = vld [vmem:[#allocation20_spill] sm:$0xff] }
 0x157   : > { %v1326_v3 = vsel %vm1313_vm8, %v1293_v37, %v990_v59  ;;  %v946_v47 = vpop.permute.xlu0 %945  ;;  %v1330_v8 = vsel %vm1313_vm8, %v1297_v15, %v990_v59  ;;  %v263_v15 = vld [vmem:[%s2007_s6 + $0xd0] sm:$0xff] }
 0x158   : > { %v2992_v9 = vsel %vm1280_vm7, %v2856_v58, %v946_v47  ;;  %v1305_v59 = vsel %vm1280_vm7, %v1272_v48, %v946_v47 }
 0x15b   : > { %1055 = vrot.lane.b32.xlu2 %v3562_v2, %s1924_s23 }
 0x15c   : > { %1047 = vrot.lane.b32.xlu1 %v3563_v27, %s1924_s23  ;;  %v262_v27 = vld [vmem:[%s2007_s6 + $0xc8] sm:$0xff] }
 0x15d   : > { %951 = vrot.lane.b32.xlu0 %v3564_v7, %s1921_s13  ;;  %v3002_v25 = vpop.permute.xlu2 %1051 }
 0x15e   : > { %v1068_v58 = vpop.permute.xlu1 %1067 }
 0x15f   : > { %v1367_v18 = vsel %vm1346_vm10, %v1334_v54, %v1068_v58  ;;  %v1060_v63 = vpop.permute.xlu0 %1059 }
 0x160   : > { %v1359_v39 = vsel %vm1346_vm10, %v1326_v3, %v1060_v63  ;;  %v1363_v50 = vsel %vm1346_vm10, %v1330_v8, %v1060_v63 }
 0x161   : > { %v1396_v37 = vsel %vm1379_vm11, %v1363_v50, %v1129_v33  ;;  %v3012_v41 = vsel %vm1379_vm11, %v1359_v39, %v1129_v33  ;;  %v1338_v33 = vsel %vm1313_vm8, %v1305_v59, %v2907_v23 }
 0x162   : > { %1790 = vmatmul.msk.f32.vlgmr.msra.gmra.mxu2 %vm1417_vm12, %v1396_v37  ;;  %v1371_v40 = vsel %vm1346_vm10, %v1338_v33, %v1068_v58  ;;  %v3565_v58 = vld [vmem:[#allocation14_spill] sm:$0xff] }
 0x163   : > { %1116 = vrot.lane.b32.xlu2 %v3559_v61, %s1923_s22  ;;  %v3079_v33 = vld [vmem:[%s3489_s2] ss:$0 sm:$0xff] }
 0x164   : > { %1003 = vrot.lane.b32.xlu1 %v2347_v44, %s1922_s14 }
 0x165   : > { %995 = vrot.lane.b32.xlu0 %v2253_v35, %s1922_s14  ;;  %v1113_v54 = vpop.permute.xlu2 %1112 }
 0x166   : > { %v922_v3 = vpop.permute.xlu1 %921 }
 0x167   : > { %v1285_v0 = vsel %vm1280_vm7, %v2761_v45, %v922_v3  ;;  %v1137_v47 = vpop.permute.xlu0 %1136 }
 0x168   : > { %v1404_v61 = vsel %vm1379_vm11, %v1371_v40, %v1137_v47  ;;  %v3032_v44 = vsel %vm1379_vm11, %v1367_v18, %v1137_v47  ;;  %v1281_v18 = vsel %vm1280_vm7, %v2758_v53, %v922_v3 }
 0x169   : > { %1798 = vmatmul.msk.f32.vlgmr.msra.gmra.mxu3 %vm1417_vm12, %v1404_v61  ;;  %v1273_v61 = vsel %vm1247_vm4, %v2738_v10, %v2969_v51  ;;  %v1298_v10 = vsel %vm1280_vm7, %v2826_v49, %v2982_v34 }
 0x16b   : > { %1073 = vrot.lane.b32.xlu2 %v3557_v12, %s1924_s23  ;;  %v3566_v12 = vld [vmem:[#allocation2_spill] sm:$0xff] }
 0x16c   : > { %1065 = vrot.lane.b32.xlu1 %v2343_v43, %s1924_s23  ;;  %v371_v8 = vadd.s32 5, %v3566_v12  ;;  %v3056_v43 = vld [vmem:[%s3488_s1] ss:$0 sm:$0xff] }
 0x16d   : > { %1124 = vrot.lane.b32.xlu0 %v3558_v26, %s1923_s22  ;;  %v3041_v35 = vpop.permute.xlu2 %1069  ;;  %v296_v26 = vmul.f32 %v3056_v43, %v262_v27  ;;  %v297_v39 = vmul.f32 %v3056_v43, %v263_v15 }
 0x16e   : > { %v982_v45 = vpop.permute.xlu1 %981  ;;  %vm383_vm13 = vcmp.ge.s32.totalorder %v371_v8, 1  ;;  %vm389_vm14 = vcmp.le.s32.totalorder %v371_v8, 16 }
 0x16f   : > { %v1318_v23 = vsel %vm1313_vm8, %v1285_v0, %v982_v45  ;;  %v974_v11 = vpop.permute.xlu0 %973  ;;  %v330_v3 = vadd.f32 %v3079_v33, %v296_v26  ;;  %vm3084_vm0 = vmand %vm383_vm13, %vm389_vm14  ;;  %v3569_v0 = vld [vmem:[#allocation15_spill] sm:$0xff] }
 0x170   : > { %v1351_v2 = vsel %vm1346_vm10, %v1318_v23, %v3002_v25  ;;  %v1314_v50 = vsel %vm1313_vm8, %v1281_v18, %v974_v11  ;;  %vm448_vm2 = vmand %vm3084_vm0, %vm396_vm5  ;;  %v1289_v18 = vsel %vm1280_vm7, %v2888_v13, %v2957_v22 }
 0x171   : > { %vm497_vm5 = vmand %vm3084_vm0, %vm457_vm9 }
 0x173   : > { %927 = vrot.lane.b32.xlu2 %v3565_v58, %s1921_s13 }
 0x174   : > { %1142 = vrot.lane.b32.xlu1 %v3564_v7, %s1923_s22 }
 0x175   : > { %1134 = vrot.lane.b32.xlu0 %v3560_v19, %s1923_s22  ;;  %v3063_v63 = vpop.permute.xlu2 %923 }
 0x176   : > { %v1044_v7 = vpop.permute.xlu1 %1043  ;;  %v1286_v37 = vsel %vm1280_vm7, %v2870_v16, %v3063_v63  ;;  %v331_v16 = vadd.f32 %v3079_v33, %v297_v39  ;;  %v265_v39 = vld [vmem:[%s2007_s6 + $0xe0] sm:$0xff] }
 0x177   : > { %v1347_v48 = vsel %vm1346_vm10, %v1314_v50, %v1044_v7  ;;  %v948_v59 = vpop.permute.xlu0 %947  ;;  %v1322_v50 = vsel %vm1313_vm8, %v1289_v18, %v982_v45  ;;  %v299_v13 = vmul.f32 %v3056_v43, %v265_v39  ;;  %v266_v18 = vld [vmem:[%s2007_s6 + $0xe8] sm:$0x3] }
 0x178   : > { %v3073_v53 = vsel %vm1280_vm7, %v2974_v1, %v948_v59  ;;  %v1380_v19 = vsel %vm1379_vm11, %v1347_v48, %v1113_v54  ;;  %v360_v1 = vmax.f32 %v330_v3, 0.0  ;;  %v264_v54 = vld [vmem:[%s2007_s6 + $0xd8] sm:$0xff]  ;;  %v361_v23 = vmax.f32 %v331_v16, 0.0  ;;  %v3571_v48 = vld [vmem:[#allocation7_spill] sm:$0xff]  ;;  %s1768_s6 = sshll.u32 %s1899_s15, 3 }
 0x179   : > { %1774 = vmatmul.msk.f32.vlgmr.msra.gmra.mxu0 %vm1417_vm12, %v1380_v19  ;;  %v298_v15 = vmul.f32 %v3056_v43, %v264_v54  ;;  %v1355_v16 = vsel %vm1346_vm10, %v1322_v50, %v3002_v25  ;;  %v300_v34 = vmul.f32 %v3056_v43, %v266_v18  ;;  %p229_p7 = scmp.lt.s32.totalorder %s1768_s6, 31 }
 0x17a   : > { %v583_v12 = vsel %vm448_vm2, %v360_v1, 0.0  ;;  %v3114_v26 = vsel %vm3084_vm0, %v361_v23, 0.0  ;;  %v1306_v23 = vsel %vm1280_vm7, %v1273_v61, %v948_v59 }
 0x17b   : > { %987 = vrot.lane.b32.xlu2 %v2199_v62, %s1922_s14  ;;  %v1034_v7 = vrot.slane %v583_v12, 1  ;;  %v1103_v51 = vrot.slane %v583_v12, 2  ;;  %s3586_s6 = smov (!%p229_p7, %s1768_s6), 31 }
 0x17c   : > { %979 = vrot.lane.b32.xlu1 %v2170_v36, %s1922_s14 }
 0x17d   : > { %935 = vrot.lane.b32.xlu0 %v3569_v0, %s1921_s13  ;;  %v3095_v47 = vpop.permute.xlu2 %983  ;;  %s1769_s13 = sshll.u32 %s3586_s6, 2 }
 0x17e   : > { %v1000_v11 = vpop.permute.xlu1 %999  ;;  %v3103_v62 = vsel %vm1313_vm8, %v1286_v37, %v3095_v47  ;;  %v1035_v37 = vrot.slane %v3114_v26, 1 }
 0x17f   : > { %v1335_v36 = vsel %vm1313_vm8, %v2987_v5, %v1000_v11  ;;  %v3107_v27 = vpop.permute.xlu0 %991  ;;  %v332_v5 = vadd.f32 %v3079_v33, %v298_v15  ;;  %v1339_v25 = vsel %vm1313_vm8, %v1306_v23, %v1000_v11 }
 0x180   : > { %v1368_v8 = vsel %vm1346_vm10, %v1335_v36, %v3041_v35  ;;  %v333_v36 = vadd.f32 %v3079_v33, %v299_v13  ;;  %v1331_v11 = vsel %vm1313_vm8, %v1298_v10, %v3107_v27  ;;  %v1372_v39 = vsel %vm1346_vm10, %v1339_v25, %v3041_v35 }
 0x181   : > { %v362_v45 = vmax.f32 %v332_v5, 0.0 }
 0x182   : > { %v363_v50 = vmax.f32 %v333_v36, 0.0 }
 0x183   : > { %1005 = vrot.lane.b32.xlu2 %v583_v12, %s1922_s14  ;;  %v585_v15 = vsel %vm3084_vm0, %v362_v45, 0.0 }
 0x184   : > { %1057 = vrot.lane.b32.xlu1 %v2242_v29, %s1924_s23  ;;  %v1036_v29 = vsel %vm613_vm3, %v1034_v7, %v1035_v37  ;;  %v1106_v45 = vrot.slane %v585_v15, 2 }
 0x185   : > { %1049 = vrot.lane.b32.xlu0 %v3571_v48, %s1924_s23  ;;  %v3128_v19 = vpop.permute.xlu2 %1045 }
 0x186   : > { %v1062_v3 = vpop.permute.xlu1 %1061 }
 0x187   : > { %v1121_v22 = vpop.permute.xlu0 %1120  ;;  %v1364_v7 = vsel %vm1346_vm10, %v1331_v11, %v1062_v3 }
 0x188   : > { %v1388_v1 = vsel %vm1379_vm11, %v1355_v16, %v1121_v22  ;;  %v3136_v54 = vsel %vm1379_vm11, %v1351_v2, %v1121_v22  ;;  %v1037_v2 = vrot.slane %v585_v15, 1  ;;  %v586_v22 = vsel %vm3084_vm0, %v363_v50, 0.0 }
 0x189   : > { %1782 = vmatmul.msk.f32.vlgmr.msra.gmra.mxu1 %vm1417_vm12, %v1388_v1  ;;  %v334_v16 = vadd.f32 %v3079_v33, %v300_v34  ;;  %v1039_v43 = vrot.slane %v586_v22, 1 }
 0x18a   : > { %v1038_v13 = vsel %vm613_vm3, %v1035_v37, %v1037_v2 }
 0x18b   : > { %1075 = vrot.lane.b32.xlu2 %v1036_v29, %s1924_s23  ;;  %v364_v29 = vmax.f32 %v334_v16, 0.0  ;;  %v1040_v33 = vsel %vm613_vm3, %v1037_v2, %v1039_v43 }
 0x18c   : > { %1126 = vrot.lane.b32.xlu1 %v3569_v0, %s1923_s22  ;;  %v1104_v0 = vrot.slane %v3114_v26, 2 }
 0x18d   : > { %1118 = vrot.lane.b32.xlu0 %v3565_v58, %s1923_s22  ;;  %v3156_v59 = vpop.permute.xlu2 %1001  ;;  %v587_v18 = vsel %vm497_vm5, %v364_v29, 0.0 }
 0x18e   : > { %v1139_v5 = vpop.permute.xlu1 %1138  ;;  %v1105_v35 = vsel %vm719_vm15, %v1103_v51, %v1104_v0  ;;  %v1107_v36 = vsel %vm719_vm15, %v1104_v0, %v1106_v45  ;;  %v1108_v51 = vrot.slane %v586_v22, 2  ;;  %v1110_v50 = vrot.slane %v587_v18, 2 }
 0x18f   : > { %v1131_v48 = vpop.permute.xlu0 %1130  ;;  %v1405_v49 = vsel %vm1379_vm11, %v1372_v39, %v1139_v5  ;;  %v3167_v58 = vsel %vm1379_vm11, %v1368_v8, %v1139_v5 }
 0x190   : > { %v1397_v12 = vsel %vm1379_vm11, %v1364_v7, %v1131_v48  ;;  %1799 = vmatmul.msk.f32.gmra.mxu3 %vm1417_vm12, %v1405_v49  ;;  %v1111_v34 = vsel %vm719_vm15, %v1108_v51, %v1110_v50 }
 0x191   : > { %1791 = vmatmul.msk.f32.gmra.mxu2 %vm1417_vm12, %v1397_v12  ;;  %v1282_v12 = vsel %vm1280_vm7, %v2866_v20, %v3063_v63 }
 0x193   : > { %1077 = vrot.lane.b32.xlu2 %v1038_v13, %s1924_s23 }
 0x194   : > { %1007 = vrot.lane.b32.xlu1 %v3114_v26, %s1922_s14 }
 0x195   : > { %1144 = vrot.lane.b32.xlu0 %v1105_v35, %s1923_s22  ;;  %v3181_v8 = vpop.permute.xlu2 %1063 }
 0x196   : > { %v976_v37 = vpop.permute.xlu1 %975 }
 0x197   : > { %v932_v1 = vpop.permute.xlu0 %931  ;;  %v1315_v13 = vsel %vm1313_vm8, %v1282_v12, %v976_v37 }
 0x198   : > { %v1294_v61 = vsel %vm1280_vm7, %v2884_v24, %v932_v1  ;;  %v1041_v24 = vrot.slane %v587_v18, 1  ;;  %v1290_v49 = vsel %vm1280_vm7, %v2881_v32, %v932_v1  ;;  %v1348_v20 = vsel %vm1346_vm10, %v1315_v13, %v3128_v19 }
 0x199   : > { %v1327_v26 = vsel %vm1313_vm8, %v1294_v61, %v3107_v27  ;;  %v1323_v35 = vsel %vm1313_vm8, %v1290_v49, %v3095_v47 }
 0x19a   : > { %v1360_v25 = vsel %vm1346_vm10, %v1327_v26, %v1062_v3  ;;  %v1042_v5 = vsel %vm613_vm3, %v1039_v43, %v1041_v24 }
 0x19b   : > { %1079 = vrot.lane.b32.xlu2 %v1040_v33, %s1924_s23  ;;  %v3196_v10 = vsel %vm1379_vm11, %v1360_v25, %v1131_v48 }
 0x19c   : > { %1009 = vrot.lane.b32.xlu1 %v585_v15, %s1922_s14  ;;  %v1109_v15 = vsel %vm719_vm15, %v1106_v45, %v1108_v51 }
 0x19d   : > { %1146 = vrot.lane.b32.xlu0 %v1107_v36, %s1923_s22  ;;  %v1141_v40 = vpop.permute.xlu2 %1140 }
 0x19e   : > { %v950_v2 = vpop.permute.xlu1 %949 }
 0x19f   : > { %v3202_v27 = vsel %vm1280_vm7, %v2967_v46, %v950_v2  ;;  %v942_v11 = vpop.permute.xlu0 %941  ;;  %v1307_v45 = vsel %vm1280_vm7, %v2963_v55, %v950_v2 }
 0x1a0   : > { %v1303_v3 = vsel %vm1280_vm7, %v2949_v60, %v942_v11  ;;  %v1299_v37 = vsel %vm1280_vm7, %v2945_v6, %v942_v11  ;;  %v1340_v29 = vsel %vm1313_vm8, %v1307_v45, %v3156_v59 }
 0x1a1   : > { %v1336_v39 = vsel %vm1313_vm8, %v1303_v3, %v3156_v59 }
 0x1a3   : > { %1081 = vrot.lane.b32.xlu2 %v1042_v5, %s1924_s23 }
 0x1a4   : > { %1011 = vrot.lane.b32.xlu1 %v586_v22, %s1922_s14  ;;  %s1770_s14 = sshll.u32 %s3584_s16, 7 }
 0x1a5   : > { %1148 = vrot.lane.b32.xlu0 %v1109_v15, %s1923_s22  ;;  %v3213_v0 = vpop.permute.xlu2 %903  ;;  %s233_s15 = sadd.s32 %s1770_s14, %s1769_s13 }
 0x1a6   : > { %v994_v46 = vpop.permute.xlu1 %993  ;;  %v1279_v60 = vsel %vm1247_vm4, %v2836_v31, %v3213_v0 }
 0x1a7   : > { %v1054_v7 = vpop.permute.xlu0 %1053 }
 0x1a8   : > { %v1352_v48 = vsel %vm1346_vm10, %v3103_v62, %v1054_v7  ;;  %v1356_v62 = vsel %vm1346_vm10, %v1323_v35, %v1054_v7 }
 0x1ad   : > { %1150 = vrot.lane.b32.xlu0 %v1111_v34, %s1923_s22  ;;  %v3230_v31 = vpop.permute.xlu2 %943  ;;  %s1771_s22 = sshll.u32 %s233_s15, 3 }
 0x1ae   : > { %v1123_v22 = vpop.permute.xlu1 %1122  ;;  %v3236_v32 = vsel %vm1280_vm7, %v2941_v17, %v3230_v31  ;;  %v1332_v17 = vsel %vm1313_vm8, %v1299_v37, %v994_v46  ;;  %s3312_s24 = scalar_lea.vmem %s3491_s4, %s1771_s22 }
 0x1af   : > { %v1115_v16 = vpop.permute.xlu0 %1114  ;;  %v1389_v63 = vsel %vm1379_vm11, %v1356_v62, %v1123_v22  ;;  %v3242_v47 = vsel %vm1379_vm11, %v1352_v48, %v1123_v22  ;;  %v1365_v1 = vsel %vm1346_vm10, %v1332_v17, %v3181_v8 }
 0x1b0   : > { %v1381_v43 = vsel %vm1379_vm11, %v1348_v20, %v1115_v16  ;;  %1783 = vmatmul.msk.f32.gmra.mxu1 %vm1417_vm12, %v1389_v63  ;;  %v1275_v16 = vsel %vm1247_vm4, %v2833_v57, %v3213_v0 }
 0x1b1   : > { %1775 = vmatmul.msk.f32.gmra.mxu0 %vm1417_vm12, %v1381_v43  ;;  %v1300_v43 = vsel %vm1280_vm7, %v2937_v38, %v3230_v31 }
 0x1b6   : > { %v1133_v19 = vpop.permute.xlu1 %1132 }
 0x1b7   : > { %v1072_v61 = vpop.permute.xlu0 %1071  ;;  %v1398_v23 = vsel %vm1379_vm11, %v1365_v1, %v1133_v19 }
 0x1b8   : > { %v1369_v33 = vsel %vm1346_vm10, %v1336_v39, %v1072_v61  ;;  %v1373_v26 = vsel %vm1346_vm10, %v1340_v29, %v1072_v61  ;;  %1792 = vmatmul.msk.f32.gmra.mxu2 %vm1417_vm12, %v1398_v23 }
 0x1b9   : > { %v1406_v6 = vsel %vm1379_vm11, %v1373_v26, %v1141_v40  ;;  %v3262_v55 = vsel %vm1379_vm11, %v1369_v33, %v1141_v40  ;;  %v1056_v40 = vpop.permute.xlu2 %1055 }
 0x1ba   : > { %1800 = vmatmul.msk.f32.gmra.mxu3 %vm1417_vm12, %v1406_v6 }
 0x1be   : > { %v934_v36 = vpop.permute.xlu1 %933 }
 0x1bf   : > { %v1295_v59 = vsel %vm1280_vm7, %v2804_v52, %v934_v36  ;;  %v926_v25 = vpop.permute.xlu0 %925  ;;  %v1291_v12 = vsel %vm1280_vm7, %v2801_v30, %v934_v36 }
 0x1c0   : > { %v1328_v18 = vsel %vm1313_vm8, %v1295_v59, %v994_v46  ;;  %v1287_v24 = vsel %vm1280_vm7, %v2862_v42, %v926_v25  ;;  %v1283_v15 = vsel %vm1280_vm7, %v2859_v4, %v926_v25 }
 0x1c1   : > { %v1361_v2 = vsel %vm1346_vm10, %v1328_v18, %v3181_v8  ;;  %v1117_v52 = vpop.permute.xlu2 %1116 }
 0x1c2   : > { %v3273_v51 = vsel %vm1379_vm11, %v1361_v2, %v1133_v19 }
 0x1c6   : > { %v986_v11 = vpop.permute.xlu1 %985 }
 0x1c7   : > { %v1320_v3 = vsel %vm1313_vm8, %v1287_v24, %v986_v11  ;;  %v978_v5 = vpop.permute.xlu0 %977  ;;  %v1324_v13 = vsel %vm1313_vm8, %v1291_v12, %v986_v11 }
 0x1c8   : > { %v3277_v39 = vsel %vm1346_vm10, %v1320_v3, %v1056_v40  ;;  %v1316_v42 = vsel %vm1313_vm8, %v1283_v15, %v978_v5  ;;  %v1357_v62 = vsel %vm1346_vm10, %v1324_v13, %v1056_v40 }
 0x1c9   : > { %v3289_v34 = vpop.permute.xlu2 %1073 }
 0x1ce   : > { %v1048_v46 = vpop.permute.xlu1 %1047 }
 0x1cf   : > { %v1349_v8 = vsel %vm1346_vm10, %v1316_v42, %v1048_v46  ;;  %v952_v50 = vpop.permute.xlu0 %951 }
 0x1d0   : > { %v3285_v7 = vsel %vm1280_vm7, %v1279_v60, %v952_v50  ;;  %v1382_v48 = vsel %vm1379_vm11, %v1349_v8, %v1117_v52  ;;  %v1308_v30 = vsel %vm1280_vm7, %v1275_v16, %v952_v50 }
 0x1d1   : > { %1776 = vmatmul.msk.f32.gmra.mxu0 %vm1417_vm12, %v1382_v48  ;;  %v3305_v20 = vpop.permute.xlu2 %927 }
 0x1d6   : > { %v1004_v49 = vpop.permute.xlu1 %1003 }
 0x1d7   : > { %v996_v4 = vpop.permute.xlu0 %995  ;;  %v1341_v63 = vsel %vm1313_vm8, %v1308_v30, %v1004_v49 }
 0x1d8   : > { %v1333_v0 = vsel %vm1313_vm8, %v1300_v43, %v996_v4  ;;  %v1374_v17 = vsel %vm1346_vm10, %v1341_v63, %v3289_v34 }
 0x1d9   : > { %v3332_v31 = vpop.permute.xlu2 %987 }
 0x1de   : > { %v3295_v60 = vpop.permute.xlu1 %1065 }
 0x1df   : > { %v3297_v35 = vpop.permute.xlu0 %1124  ;;  %v1366_v45 = vsel %vm1346_vm10, %v1333_v0, %v3295_v60 }
 0x1e0   : > { %v1390_v22 = vsel %vm1379_vm11, %v1357_v62, %v3297_v35 }
 0x1e1   : > { %1784 = vmatmul.msk.f32.gmra.mxu1 %vm1417_vm12, %v1390_v22  ;;  %v1006_v6 = vpop.permute.xlu2 %1005  ;;  %v1386_v22 = vsel %vm1379_vm11, %v3277_v39, %v3297_v35 }
 0x1e2   : > { %v1342_v52 = vsel %vm1313_vm8, %v2992_v9, %v1006_v6 }
 0x1e5   : > { %v1583_v57 = vpop.f32.mrf.mxu2 }
 0x1e6   : > { %1647 = vst.msk [vmem:[%s3312_s24 + $0x80] sm:$0xff] %vm1193_vm1, %v1583_v57  ;;  %v1143_v37 = vpop.permute.xlu1 %1142 }
 0x1e7   : > { %v3325_v19 = vpop.permute.xlu0 %1134  ;;  %v1407_v1 = vsel %vm1379_vm11, %v1374_v17, %v1143_v37 }
 0x1e8   : > { %v1399_v38 = vsel %vm1379_vm11, %v1366_v45, %v3325_v19  ;;  %1801 = vmatmul.msk.f32.gmra.mxu3 %vm1417_vm12, %v1407_v1 }
 0x1e9   : > { %1793 = vmatmul.msk.f32.gmra.mxu2 %vm1417_vm12, %v1399_v38  ;;  %v1076_v5 = vpop.permute.xlu2 %1075 }
 0x1ea   : > { %v1375_v46 = vsel %vm1346_vm10, %v1342_v52, %v1076_v5 }
 0x1ec   : > { %v1607_v29 = vpop.f32.mrf.mxu3 }
 0x1ed   : > { %1655 = vst.msk [vmem:[%s3312_s24 + $0xc0] sm:$0xff] %vm1193_vm1, %v1607_v29 }
 0x1ee   : > { %v980_v61 = vpop.permute.xlu1 %979 }
 0x1ef   : > { %v936_v23 = vpop.permute.xlu0 %935 }
 0x1f0   : > { %v1296_v33 = vsel %vm1280_vm7, %v2922_v21, %v936_v23  ;;  %v1292_v18 = vsel %vm1280_vm7, %v2918_v28, %v936_v23  ;;  %v1284_v21 = vsel %vm1280_vm7, %v2778_v14, %v3305_v20  ;;  %v1337_v14 = vsel %vm1313_vm8, %v3236_v32, %v1004_v49 }
 0x1f1   : > { %v1329_v26 = vsel %vm1313_vm8, %v1296_v33, %v996_v4  ;;  %1794 = vmatmul.msk.f32.gmra.mxu2 %vm1417_vm12, %v3032_v44  ;;  %v1325_v24 = vsel %vm1313_vm8, %v1292_v18, %v3332_v31  ;;  %v1317_v44 = vsel %vm1313_vm8, %v1284_v21, %v980_v61  ;;  %v1370_v50 = vsel %vm1346_vm10, %v1337_v14, %v3289_v34  ;;  %v1078_v48 = vpop.permute.xlu2 %1077 }
 0x1f2   : > { %v1362_v63 = vsel %vm1346_vm10, %v1329_v26, %v3295_v60 }
 0x1f3   : > { %v1395_v57 = vsel %vm1379_vm11, %v1362_v63, %v3325_v19 }
 0x1f6   : > { %v1058_v36 = vpop.permute.xlu1 %1057  ;;  %v1535_v59 = vpop.f32.mrf.mxu0 }
 0x1f7   : > { %1631 = vst.msk [vmem:[%s3312_s24] sm:$0xff] %vm1193_vm1, %v1535_v59  ;;  %v1050_v25 = vpop.permute.xlu0 %1049  ;;  %v1358_v2 = vsel %vm1346_vm10, %v1325_v24, %v1058_v36 }
 0x1f8   : > { %v1350_v11 = vsel %vm1346_vm10, %v1317_v44, %v1050_v25 }
 0x1f9   : > { %1795 = vmatmul.msk.f32.gmra.mxu2 %vm1417_vm12, %v3167_v58 }
 0x1fe   : > { %v1127_v40 = vpop.permute.xlu1 %1126 }
 0x1ff   : > { %v1119_v3 = vpop.permute.xlu0 %1118  ;;  %v1391_v58 = vsel %vm1379_vm11, %v1358_v2, %v1127_v40 }
 0x200   : > { %v1383_v28 = vsel %vm1379_vm11, %v1350_v11, %v1119_v3  ;;  %1785 = vmatmul.msk.f32.gmra.mxu1 %vm1417_vm12, %v1391_v58 }
 0x201   : > { %1777 = vmatmul.msk.f32.gmra.mxu0 %vm1417_vm12, %v1383_v28  ;;  %1796 = vmatmul.msk.f32.gmra.mxu2 %vm1417_vm12, %v3262_v55  ;;  %v1403_v55 = vsel %vm1379_vm11, %v1370_v50, %v1143_v37 }
 0x206   : > { %v1559_v15 = vpop.f32.mrf.mxu1  ;;  %v1008_v42 = vpop.permute.xlu1 %1007 }
 0x207   : > { %1639 = vst.msk [vmem:[%s3312_s24 + $0x40] sm:$0xff] %vm1193_vm1, %v1559_v15  ;;  %v1145_v8 = vpop.permute.xlu0 %1144  ;;  %v1343_v9 = vsel %vm1313_vm8, %v3073_v53, %v1008_v42 }
 0x208   : > { %1786 = vmatmul.msk.f32.gmra.mxu1 %vm1417_vm12, %v3012_v41  ;;  %v1408_v32 = vsel %vm1379_vm11, %v1375_v46, %v1145_v8  ;;  %v1376_v49 = vsel %vm1346_vm10, %v1343_v9, %v1078_v48 }
 0x209   : > { %1778 = vmatmul.msk.f32.gmra.mxu0 %vm1417_vm12, %v3136_v54  ;;  %1797 = vmatmul.msk.f32.gmra.mxu2 %vm1417_vm12, %v1403_v55  ;;  %v1080_v54 = vpop.permute.xlu2 %1079 }
 0x20a   : > { %1802 = vmatmul.msk.f32.gmra.mxu3 %vm1417_vm12, %v1408_v32 }
 0x20e   : > { %v1010_v34 = vpop.permute.xlu1 %1009 }
 0x20f   : > { %v1147_v41 = vpop.permute.xlu0 %1146  ;;  %v1344_v13 = vsel %vm1313_vm8, %v3202_v27, %v1010_v34 }
 0x210   : > { %1787 = vmatmul.msk.f32.gmra.mxu1 %vm1417_vm12, %v3196_v10  ;;  %v1409_v4 = vsel %vm1379_vm11, %v1376_v49, %v1147_v41  ;;  %v1377_v62 = vsel %vm1346_vm10, %v1344_v13, %v1080_v54 }
 0x211   : > { %1779 = vmatmul.msk.f32.gmra.mxu0 %vm1417_vm12, %v3242_v47  ;;  %v1082_v30 = vpop.permute.xlu2 %1081 }
 0x212   : > { %1803 = vmatmul.msk.f32.gmra.mxu3 %vm1417_vm12, %v1409_v4 }
 0x213   : > { %v1610_v12 = vpop.f32.mrf.mxu3 }
 0x214   : > { %v1586_v53 = vpop.f32.mrf.mxu2  ;;  %1656 = vst.msk [vmem:[%s3312_s24 + $0xc8] sm:$0xff] %vm1193_vm1, %v1610_v12 }
 0x215   : > { %1648 = vst.msk [vmem:[%s3312_s24 + $0x88] sm:$0xff] %vm1193_vm1, %v1586_v53 }
 0x216   : > { %v1012_v16 = vpop.permute.xlu1 %1011 }
 0x217   : > { %v1149_v10 = vpop.permute.xlu0 %1148  ;;  %v1345_v27 = vsel %vm1313_vm8, %v3285_v7, %v1012_v16 }
 0x218   : > { %1788 = vmatmul.msk.f32.gmra.mxu1 %vm1417_vm12, %v3273_v51  ;;  %v1410_v47 = vsel %vm1379_vm11, %v1377_v62, %v1149_v10  ;;  %v1288_v51 = vsel %vm1280_vm7, %v2781_v56, %v3305_v20  ;;  %v1378_v43 = vsel %vm1346_vm10, %v1345_v27, %v1082_v30 }
 0x219   : > { %1780 = vmatmul.msk.f32.gmra.mxu0 %vm1417_vm12, %v1386_v22  ;;  %v1321_v39 = vsel %vm1313_vm8, %v1288_v51, %v3332_v31 }
 0x21a   : > { %1804 = vmatmul.msk.f32.gmra.mxu3 %vm1417_vm12, %v1410_v47  ;;  %v1354_v35 = vsel %vm1346_vm10, %v1321_v39, %v1058_v36 }
 0x21b   : > { %v1387_v60 = vsel %vm1379_vm11, %v1354_v35, %v1127_v40 }
 0x21f   : > { %v1151_v7 = vpop.permute.xlu0 %1150 }
 0x220   : > { %1789 = vmatmul.msk.f32.gmra.mxu1 %vm1417_vm12, %v1395_v57  ;;  %v1411_v56 = vsel %vm1379_vm11, %v1378_v43, %v1151_v7 }
 0x221   : > { %1781 = vmatmul.msk.f32.gmra.mxu0 %vm1417_vm12, %v1387_v60 }
 0x222   : > { %1805 = vmatmul.msk.f32.gmra.mxu3 %vm1417_vm12, %v1411_v56 }
 0x22d   : > { %v1562_v20 = vpop.f32.mrf.mxu1 }
 0x22e   : > { %v1538_v0 = vpop.f32.mrf.mxu0  ;;  %1640 = vst.msk [vmem:[%s3312_s24 + $0x48] sm:$0xff] %vm1193_vm1, %v1562_v20 }
 0x22f   : > { %1632 = vst.msk [vmem:[%s3312_s24 + $0x8] sm:$0xff] %vm1193_vm1, %v1538_v0 }
 0x23b   : > { %v1589_v37 = vpop.f32.mrf.mxu2 }
 0x23c   : > { %1649 = vst.msk [vmem:[%s3312_s24 + $0x90] sm:$0xff] %vm1193_vm1, %v1589_v37 }
 0x23d   : > { %v1613_v17 = vpop.f32.mrf.mxu3 }
 0x23e   : > { %1657 = vst.msk [vmem:[%s3312_s24 + $0xd0] sm:$0xff] %vm1193_vm1, %v1613_v17 }
 0x24e   : > { %v1541_v45 = vpop.f32.mrf.mxu0 }
 0x24f   : > { %1633 = vst.msk [vmem:[%s3312_s24 + $0x10] sm:$0xff] %vm1193_vm1, %v1541_v45 }
 0x25e   : > { %v1565_v19 = vpop.f32.mrf.mxu1 }
 0x25f   : > { %1641 = vst.msk [vmem:[%s3312_s24 + $0x50] sm:$0xff] %vm1193_vm1, %v1565_v19 }
 0x26b   : > { %v1616_v1 = vpop.f32.mrf.mxu3 }
 0x26c   : > { %v1592_v38 = vpop.f32.mrf.mxu2  ;;  %1658 = vst.msk [vmem:[%s3312_s24 + $0xd8] sm:$0xff] %vm1193_vm1, %v1616_v1 }
 0x26d   : > { %1650 = vst.msk [vmem:[%s3312_s24 + $0x98] sm:$0xff] %vm1193_vm1, %v1592_v38 }
 0x274   : > { %v1595_v31 = vpop.f32.mrf.mxu2 }
 0x275   : > { %1651 = vst.msk [vmem:[%s3312_s24 + $0xa0] sm:$0xff] %vm1193_vm1, %v1595_v31 }
 0x27c   : > { %v1598_v29 = vpop.f32.mrf.mxu2 }
 0x27d   : > { %1652 = vst.msk [vmem:[%s3312_s24 + $0xa8] sm:$0xff] %vm1193_vm1, %v1598_v29  ;;  %v1568_v61 = vpop.f32.mrf.mxu1 }
 0x27e   : > { %v1544_v23 = vpop.f32.mrf.mxu0  ;;  %1642 = vst.msk [vmem:[%s3312_s24 + $0x58] sm:$0xff] %vm1193_vm1, %v1568_v61 }
 0x27f   : > { %1634 = vst.msk [vmem:[%s3312_s24 + $0x18] sm:$0xff] %vm1193_vm1, %v1544_v23 }
 0x284   : > { %v1601_v33 = vpop.f32.mrf.mxu2 }
 0x285   : > { %1653 = vst.msk [vmem:[%s3312_s24 + $0xb0] sm:$0xff] %vm1193_vm1, %v1601_v33  ;;  %v1571_v26 = vpop.f32.mrf.mxu1 }
 0x286   : > { %v1547_v6 = vpop.f32.mrf.mxu0  ;;  %1643 = vst.msk [vmem:[%s3312_s24 + $0x60] sm:$0xff] %vm1193_vm1, %v1571_v26 }
 0x287   : > { %1635 = vst.msk [vmem:[%s3312_s24 + $0x20] sm:$0xff] %vm1193_vm1, %v1547_v6 }
 0x28c   : > { %v1604_v36 = vpop.f32.mrf.mxu2 }
 0x28d   : > { %1654 = vst.msk [vmem:[%s3312_s24 + $0xb8] sm:$0xff] %vm1193_vm1, %v1604_v36  ;;  %v1619_v59 = vpop.f32.mrf.mxu3  ;;  %v1574_v25 = vpop.f32.mrf.mxu1 }
 0x28e   : > { %1659 = vst.msk [vmem:[%s3312_s24 + $0xe0] sm:$0xff] %vm1193_vm1, %v1619_v59  ;;  %v1550_v18 = vpop.f32.mrf.mxu0 }
 0x28f   : > { %1636 = vst.msk [vmem:[%s3312_s24 + $0x28] sm:$0xff] %vm1193_vm1, %v1550_v18 }
 0x290   : > { %1644 = vst.msk [vmem:[%s3312_s24 + $0x68] sm:$0xff] %vm1193_vm1, %v1574_v25 }
 0x295   : > { %v1622_v21 = vpop.f32.mrf.mxu3  ;;  %v1577_v24 = vpop.f32.mrf.mxu1 }
 0x296   : > { %1660 = vst.msk [vmem:[%s3312_s24 + $0xe8] sm:$0xff] %vm1193_vm1, %v1622_v21  ;;  %v1553_v44 = vpop.f32.mrf.mxu0 }
 0x297   : > { %1637 = vst.msk [vmem:[%s3312_s24 + $0x30] sm:$0xff] %vm1193_vm1, %v1553_v44 }
 0x298   : > { %1645 = vst.msk [vmem:[%s3312_s24 + $0x70] sm:$0xff] %vm1193_vm1, %v1577_v24 }
 0x29d   : > { %v1625_v2 = vpop.f32.mrf.mxu3  ;;  %v1580_v40 = vpop.f32.mrf.mxu1 }
 0x29e   : > { %1661 = vst.msk [vmem:[%s3312_s24 + $0xf0] sm:$0xff] %vm1193_vm1, %v1625_v2  ;;  %v1556_v11 = vpop.f32.mrf.mxu0 }
 0x29f   : > { %1638 = vst.msk [vmem:[%s3312_s24 + $0x38] sm:$0xff] %vm1193_vm1, %v1556_v11 }
 0x2a0   : > { %1646 = vst.msk [vmem:[%s3312_s24 + $0x78] sm:$0xff] %vm1193_vm1, %v1580_v40 }
 0x2a5   : > { %v1628_v3 = vpop.f32.mrf.mxu3 }
 0x2a6   : > { %1662 = vst.msk [vmem:[%s3312_s24 + $0xf8] sm:$0xff] %vm1193_vm1, %v1628_v3 }
 0x2a7 PF: > { %s14_s19 = sadd.s32 1, %s1915_s19   ;;  %s3573_s15 = smov %s1907_s17 }
 0x2a8   : > { %p11_p8 = scmp.ge.s32.totalorder %s14_s19, 10   ;;  %s3574_s16 = smov %s1911_s18 }
 0x2a9   : > { %s3575_s17 = smov %s3578_s20  ;;  %s3576_s18 = smov %s3582_s21 }
 0x2aa   :  { %13 = sbr.rel (!%p11_p8) target bundleno = 3 (0x3), region = 66 }

// kernel: _lambda_.3
= control target key start
LH: loop header
LB: loop body
LE: loop exit
PB: predicated region body
PF: predicated region fallthrough
CT: control target
= control target key end

     0   :  { %s2864_s21 = smov 0   ;;  %s2866_s22 = smov 0   ;;  %s5428_s0 = inlined_call_operand.vmem [shape: f32[2,4,10,34,8], index: 0, kind: input, shape index: {}]   ;;  %s5429_s1 = inlined_call_operand.vmem [shape: f32[2,16,32,4], index: 1, kind: input, shape index: {}]   ;;  %s5430_s2 = inlined_call_operand.vmem [shape: f32[1,8], index: 2, kind: input, shape index: {}]   ;;  %s5431_s3 = inlined_call_operand.vmem [shape: f32[1,8], index: 3, kind: input, shape index: {}]   ;;  %s5432_s4 = inlined_call_operand.vmem [shape: f32[76,8], index: 4, kind: input, shape index: {}]   ;;  %s5433_s5 = inlined_call_operand.vmem [shape: f32[1,8], index: 5, kind: input, shape index: {}]   ;;  %s5434_s6 = inlined_call_operand.vmem [shape: f32[2,32,32,8], index: 6, kind: output, shape index: {}]  }
   0x1   :  { %s2868_s23 = smov 0   ;;  %s2870_s24 = smov 0  }
   0x2   :  { %s2872_s25 = smov 0  }
   0x3 LB: > { %s25_s26 = sadd.s32 1, %s2810_s23  ;;  %s28_s27 = sadd.s32 1, %s2814_s24  ;;  %s2818_s25 = sphi %s2872_s25, %s16_s25   ;;  %s2814_s24 = sphi %s2870_s24, %s5983_s24   ;;  %s2810_s23 = sphi %s2868_s23, %s5982_s23   ;;  %s2806_s22 = sphi %s2866_s22, %s5981_s22   ;;  %s2802_s21 = sphi %s2864_s21, %s5980_s21  }
   0x4   : > { %p26_p0 = scmp.ge.s32.totalorder %s25_s26, 4  ;;  %p2646_p1 = scmp.ge.s32.totalorder %s2818_s25, 1 }
   0x5   : > { %p250_p2 = scmp.lt.s32.totalorder %s2818_s25, 9 }
   0x6   : > { %s5985_s26 = smov (%p26_p0, %s25_s26), 0  ;;  %s5987_s27 = smov (!%p26_p0, %s28_s27), %s2814_s24 }
   0x7   : > { %p251_p3 = pnand %p2646_p1, %p250_p2  ;;  %p30_p4 = scmp.ge.s32.totalorder %s5987_s27, 2 }
   0x9   : > { %s5989_s27 = smov (%p30_p4, %s5987_s27), 0  ;;  %254 = sbr.rel (%p251_p3) target bundleno = 1003 (0x3eb), region = 44 }
   0xe   : > { %p299_p5 = scmp.lt.s32.totalorder %s2806_s22, 1  ;;  %p301_p6 = scmp.lt.s32.totalorder %s2802_s21, 3  ;;  %v549_v1 = vlaneseq  ;;  %v2916_v5 = vld [vmem:[%s5430_s2] ss:$0 sm:$0xff]  ;;  %vm925_vm3 = vcmask 1046528  }
   0xf   : > { %s2898_s28 = sshll.u32 %s2802_s21, 3  ;;  %v2930_v7 = vld [vmem:[%s5431_s3] ss:$0 sm:$0xff]  ;;  %s2820_s20 = smov 8  }
  0x10   : > { %s5991_s22 = smov (!%p299_p5, %s2806_s22), 1  ;;  %v2903_v0 = vstv %s2898_s28  ;;  %v2908_v3 = vshrl.u32 %v549_v1, 7  ;;  %p322_p7 = scmp.lt.s32.totalorder %s2898_s28, 31 }
  0x11   : > { %5542 = vst [vmem:[#allocation2_spill] sm:$0xff] %v2903_v0  ;;  %s302_s29 = scalar_select %p301_p6, %s2802_s21, 3  ;;  %v540_v2 = vadd.s32 1, %v2903_v0  ;;  %v2911_v4 = vadd.s32 2, %v2903_v0  ;;  %vm555_vm4 = vcmp.ge.s32.totalorder %v2903_v0, 1  ;;  %vm565_vm6 = vcmp.le.s32.totalorder %v2903_v0, 32 }
  0x12   : > { %s2723_s30 = smul.u32 200, %s5991_s22  ;;  %v2920_v6 = vadd.s32 32, %v2908_v3  ;;  %vm585_vm5 = vcmp.ge.s32.totalorder %v2908_v3, 1  ;;  %s2654_s17 = sshll.u32 %s5991_s22, 7  ;;  %vm2967_vm10 = vmand %vm555_vm4, %vm565_vm6  ;;  %v542_v59 = vadd.s32 3, %v2903_v0 }
  0x13   : > { %s2722_s7 = smul.u32 50, %s302_s29  ;;  %vm556_vm0 = vcmp.ge.s32.totalorder %v540_v2, 1  ;;  %vm566_vm1 = vcmp.le.s32.totalorder %v540_v2, 32  ;;  %vm557_vm7 = vcmp.ge.s32.totalorder %v2911_v4, 1  ;;  %vm567_vm8 = vcmp.le.s32.totalorder %v2911_v4, 32  ;;  %s5993_s28 = smov (!%p322_p7, %s2898_s28), 31  ;;  %vm620_vm12 = vmand %vm2967_vm10, %vm585_vm5 }
  0x14   : > { %5543 = vst [vmem:[#allocation3_spill] sm:$0xff] %v2920_v6  ;;  %vm2932_vm2 = vmand %vm556_vm0, %vm566_vm1  ;;  %vm674_vm9 = vcmp.le.s32.totalorder %v2920_v6, 32  ;;  %s2653_s18 = sshll.u32 %s5993_s28, 2  ;;  %vm568_vm4 = vcmp.le.s32.totalorder %v542_v59, 32  ;;  %s2821_s28 = smov 16  }
  0x15   : > { %s305_s8 = sadd.s32 %s2723_s30, %s2722_s7  ;;  %vm625_vm11 = vmand %vm2932_vm2, %vm585_vm5  ;;  %s2980_s19 = sadd.s32 %s2654_s17, %s2653_s18 }
  0x16   : > { %s2647_s11 = sshll.u32 %s305_s8, 3  ;;  %vm3029_vm13 = vmand %vm2967_vm10, %vm674_vm9  ;;  %s2822_s29 = smov 24  }
  0x17   : > { %s2925_s14 = scalar_lea.vmem %s5428_s0, %s2647_s11  ;;  %vm3043_vm14 = vmand %vm557_vm7, %vm567_vm8  ;;  %s2823_s10 = smov 32  }
  0x18   : > { %v335_v9 = vld [vmem:[%s2925_s14 + $0x28] sm:$0xff]  ;;  %v336_v10 = vld [vmem:[%s2925_s14 + $0x30] sm:$0xff]  ;;  %v333_v14 = vld [vmem:[%s2925_s14 + $0x18] sm:$0xff]  ;;  %s2824_s11 = smov 40   ;;  %s2825_s12 = smov 48  }
  0x19   : > { %v332_v11 = vld [vmem:[%s2925_s14 + $0x10] sm:$0xff]  ;;  %v389_v12 = vmul.f32 %v2916_v5, %v335_v9  ;;  %v390_v13 = vmul.f32 %v2916_v5, %v336_v10  ;;  %v330_v16 = vld [vmem:[%s2925_s14] sm:$0xff]  ;;  %v331_v17 = vld [vmem:[%s2925_s14 + $0x8] sm:$0xff]  ;;  %v387_v18 = vmul.f32 %v2916_v5, %v333_v14  ;;  %s2648_s13 = sshll.u32 %s2802_s21, 2  ;;  %s2826_s21 = smov 56  }
  0x1a   : > { %v386_v15 = vmul.f32 %v2916_v5, %v332_v11  ;;  %v384_v19 = vmul.f32 %v2916_v5, %v330_v16  ;;  %v385_v20 = vmul.f32 %v2916_v5, %v331_v17  ;;  %v337_v21 = vld [vmem:[%s2925_s14 + $0x38] sm:$0xff]  ;;  %v334_v22 = vld [vmem:[%s2925_s14 + $0x20] sm:$0x3]  ;;  %v340_v48 = vld [vmem:[%s2925_s14 + $0x50] sm:$0xff]  ;;  %p311_p8 = scmp.lt.s32.totalorder %s2648_s13, 15  ;;  %s2650_s16 = sshll.u32 %s5991_s22, 6 }
  0x1b   : > { %v443_v23 = vadd.f32 %v2930_v7, %v389_v12  ;;  %v444_v24 = vadd.f32 %v2930_v7, %v390_v13  ;;  %v391_v27 = vmul.f32 %v2916_v5, %v337_v21  ;;  %v441_v28 = vadd.f32 %v2930_v7, %v387_v18  ;;  %v341_v49 = vld [vmem:[%s2925_s14 + $0x58] sm:$0xff]  ;;  %v338_v54 = vld [vmem:[%s2925_s14 + $0x40] sm:$0xff]  ;;  %v339_v60 = vld [vmem:[%s2925_s14 + $0x48] sm:$0x3]  ;;  %s2827_s18 = smov 64   ;;  %s2828_s30 = smov 72  }
  0x1c   : > { %v440_v25 = vadd.f32 %v2930_v7, %v386_v15  ;;  %v438_v29 = vadd.f32 %v2930_v7, %v384_v19  ;;  %v439_v30 = vadd.f32 %v2930_v7, %v385_v20  ;;  %v388_v31 = vmul.f32 %v2916_v5, %v334_v22  ;;  %v343_v9 = vld [vmem:[%s2925_s14 + $0x68] sm:$0xff]  ;;  %v344_v10 = vld [vmem:[%s2925_s14 + $0x70] sm:$0x3]  ;;  %v342_v14 = vld [vmem:[%s2925_s14 + $0x60] sm:$0xff]  ;;  %s5995_s13 = smov (!%p311_p8, %s2648_s13), 15 }
  0x1d   : > { %v493_v32 = vmax.f32 %v443_v23, 0.0  ;;  %v494_v33 = vmax.f32 %v444_v24, 0.0  ;;  %v445_v35 = vadd.f32 %v2930_v7, %v391_v27  ;;  %v491_v36 = vmax.f32 %v441_v28, 0.0  ;;  %vm630_vm15 = vmand %vm3043_vm14, %vm585_vm5  ;;  %v345_v8 = vld [vmem:[%s2925_s14 + $0x78] sm:$0xff]  ;;  %s2649_s15 = sshll.u32 %s5995_s13, 2 }
  0x1e   : > { %v490_v34 = vmax.f32 %v440_v25, 0.0  ;;  %v488_v37 = vmax.f32 %v438_v29, 0.0  ;;  %v489_v38 = vmax.f32 %v439_v30, 0.0  ;;  %v442_v39 = vadd.f32 %v2930_v7, %v388_v31  ;;  %vm694_vm0 = vmand %vm2932_vm2, %vm674_vm9  ;;  %s315_s17 = sadd.s32 %s2650_s16, %s2649_s15 }
  0x1f   : > { %v2988_v40 = vsel %vm625_vm11, %v493_v32, 0.0  ;;  %v2992_v41 = vsel %vm2932_vm2, %v494_v33, 0.0  ;;  %v495_v43 = vmax.f32 %v445_v35, 0.0  ;;  %v3002_v46 = vsel %vm2967_vm10, %v491_v36, 0.0  ;;  %vm699_vm1 = vmand %vm3043_vm14, %vm674_vm9  ;;  %s2651_s22 = sshll.u32 %s315_s17, 3 }
  0x20   : > { %5548 = vst [vmem:[#allocation4_spill] sm:$0xff] %v2988_v40  ;;  %v2996_v42 = vsel %vm2967_vm10, %v490_v34, 0.0  ;;  %v935_v44 = vrot.slane %v2988_v40, 1  ;;  %v936_v45 = vrot.slane %v2992_v41, 1  ;;  %v931_v50 = vrot.slane %v3002_v46, 1  ;;  %v347_v34 = vld [vmem:[%s2925_s14 + $0x88] sm:$0xff] }
  0x21   : > { %5549 = vst [vmem:[#allocation5_spill] sm:$0xff] %v2992_v41  ;;  %v929_v47 = vrot.slane %v2996_v42, 1  ;;  %v3008_v51 = vsel %vm620_vm12, %v488_v37, 0.0  ;;  %v3012_v52 = vsel %vm2967_vm10, %v489_v38, 0.0  ;;  %v3016_v53 = vsel %vm2932_vm2, %v495_v43, 0.0  ;;  %v348_v43 = vld [vmem:[%s2925_s14 + $0x90] sm:$0xff] }
  0x22   : > { %5550 = vst [vmem:[#allocation6_spill] sm:$0xff] %v2996_v42  ;;  %v3020_v55 = vsel %vm925_vm3, %v935_v44, %v936_v45  ;;  %v926_v56 = vrot.slane %v3008_v51, 1  ;;  %v927_v57 = vrot.slane %v3012_v52, 1  ;;  %v938_v58 = vrot.slane %v3016_v53, 1 }
  0x23   : > { %5551 = vst [vmem:[#allocation7_spill] sm:$0xff] %v3002_v46  ;;  %1006 = vrot.lane.b32.xlu2 %v3020_v55, %s2820_s20  ;;  %v932_v61 = vsel %vm925_vm3, %v929_v47, %v931_v50  ;;  %v492_v62 = vmax.f32 %v442_v39, 0.0  ;;  %v394_v63 = vmul.f32 %v2916_v5, %v340_v48  ;;  %v395_v1 = vmul.f32 %v2916_v5, %v341_v49  ;;  %v346_v48 = vld [vmem:[%s2925_s14 + $0x80] sm:$0xff] }
  0x24   : > { %5552 = vst [vmem:[#allocation8_spill] sm:$0xff] %v3008_v51  ;;  %1002 = vrot.lane.b32.xlu1 %v932_v61, %s2820_s20  ;;  %v928_v11 = vsel %vm925_vm3, %v926_v56, %v927_v57  ;;  %v3054_v12 = vsel %vm925_vm3, %v936_v45, %v938_v58  ;;  %v392_v13 = vmul.f32 %v2916_v5, %v338_v54 }
  0x25   : > { %5553 = vst [vmem:[#allocation9_spill] sm:$0xff] %v3012_v52  ;;  %998 = vrot.lane.b32.xlu0 %v928_v11, %s2820_s20  ;;  %v3061_v4 = vsel %vm3029_vm13, %v492_v62, 0.0  ;;  %v448_v15 = vadd.f32 %v2930_v7, %v394_v63  ;;  %v449_v16 = vadd.f32 %v2930_v7, %v395_v1  ;;  %v393_v17 = vmul.f32 %v2916_v5, %v339_v60 }
  0x26   : > { %5554 = vst [vmem:[#allocation10_spill] sm:$0xff] %v3016_v53  ;;  %v933_v18 = vrot.slane %v3061_v4, 1  ;;  %v446_v19 = vadd.f32 %v2930_v7, %v392_v13  ;;  %v397_v20 = vmul.f32 %v2916_v5, %v343_v9  ;;  %v398_v21 = vmul.f32 %v2916_v5, %v344_v10 }
  0x27   : > { %v498_v22 = vmax.f32 %v448_v15, 0.0  ;;  %v499_v23 = vmax.f32 %v449_v16, 0.0  ;;  %v447_v24 = vadd.f32 %v2930_v7, %v393_v17  ;;  %v396_v25 = vmul.f32 %v2916_v5, %v342_v14  ;;  %v351_v15 = vld [vmem:[%s2925_s14 + $0xa8] sm:$0xff]  ;;  %v352_v16 = vld [vmem:[%s2925_s14 + $0xb0] sm:$0xff] }
  0x28   : > { %v934_v26 = vsel %vm925_vm3, %v931_v50, %v933_v18  ;;  %v496_v27 = vmax.f32 %v446_v19, 0.0  ;;  %v451_v28 = vadd.f32 %v2930_v7, %v397_v20  ;;  %v452_v29 = vadd.f32 %v2930_v7, %v398_v21  ;;  %v350_v19 = vld [vmem:[%s2925_s14 + $0xa0] sm:$0xff] }
  0x29   : > { %v3083_v30 = vsel %vm630_vm15, %v498_v22, 0.0  ;;  %v3087_v31 = vsel %vm3043_vm14, %v499_v23, 0.0  ;;  %v497_v32 = vmax.f32 %v447_v24, 0.0  ;;  %v450_v33 = vadd.f32 %v2930_v7, %v396_v25 }
  0x2a   : > { %5559 = vst [vmem:[#allocation11_spill] sm:$0xff] %v3083_v30  ;;  %v930_v35 = vsel %vm925_vm3, %v927_v57, %v929_v47  ;;  %v3094_v36 = vsel %vm2932_vm2, %v496_v27, 0.0  ;;  %v944_v37 = vrot.slane %v3083_v30, 1  ;;  %v945_v38 = vrot.slane %v3087_v31, 1 }
  0x2b   : > { %5560 = vst [vmem:[#allocation12_spill] sm:$0xff] %v3094_v36  ;;  %1008 = vrot.lane.b32.xlu2 %v3054_v12, %s2820_s20  ;;  %v3100_v39 = vsel %vm694_vm0, %v497_v32, 0.0  ;;  %v501_v44 = vmax.f32 %v451_v28, 0.0  ;;  %v502_v45 = vmax.f32 %v452_v29, 0.0  ;;  %v401_v47 = vmul.f32 %v2916_v5, %v347_v34 }
  0x2c   : > { %1004 = vrot.lane.b32.xlu1 %v934_v26, %s2820_s20  ;;  %v940_v49 = vrot.slane %v3094_v36, 1  ;;  %v942_v50 = vrot.slane %v3100_v39, 1  ;;  %v500_v54 = vmax.f32 %v450_v33, 0.0  ;;  %v402_v56 = vmul.f32 %v2916_v5, %v348_v43  ;;  %v349_v26 = vld [vmem:[%s2925_s14 + $0x98] sm:$0x3] }
  0x2d   : > { %1000 = vrot.lane.b32.xlu0 %v930_v35, %s2820_s20  ;;  %v3116_v57 = vsel %vm925_vm3, %v944_v37, %v945_v38  ;;  %v400_v60 = vmul.f32 %v2916_v5, %v346_v48  ;;  %v399_v61 = vmul.f32 %v2916_v5, %v345_v8  ;;  %v3123_v62 = vsel %vm3043_vm14, %v501_v44, 0.0 }
  0x2e   : > { %5561 = vst [vmem:[#allocation13_spill] sm:$0xff] %v3116_v57  ;;  %v3125_v63 = vsel %vm699_vm1, %v502_v45, 0.0  ;;  %v455_v1 = vadd.f32 %v2930_v7, %v401_v47  ;;  %v456_v9 = vadd.f32 %v2930_v7, %v402_v56  ;;  %v3130_v10 = vsel %vm925_vm3, %v940_v49, %v942_v50  ;;  %v355_v45 = vld [vmem:[%s2925_s14 + $0xc8] sm:$0xff] }
  0x2f   : > { %5562 = vst [vmem:[#allocation14_spill] sm:$0xff] %v3123_v62  ;;  %v3134_v11 = vsel %vm3043_vm14, %v500_v54, 0.0  ;;  %v3139_v13 = vsel %vm925_vm3, %v938_v58, %v940_v49  ;;  %vm558_vm2 = vcmp.ge.s32.totalorder %v542_v59, 1  ;;  %v454_v14 = vadd.f32 %v2930_v7, %v400_v60  ;;  %v356_v49 = vld [vmem:[%s2925_s14 + $0xd0] sm:$0xff]  ;;  %v353_v59 = vld [vmem:[%s2925_s14 + $0xb8] sm:$0xff] }
  0x30   : > { %5563 = vst [vmem:[#allocation15_spill] sm:$0xff] %v3130_v10  ;;  %v949_v17 = vrot.slane %v3123_v62, 1  ;;  %v951_v2 = vrot.slane %v3125_v63, 1  ;;  %v453_v18 = vadd.f32 %v2930_v7, %v399_v61  ;;  %v947_v58 = vrot.slane %v3134_v11, 1  ;;  %vm3156_vm6 = vmand %vm558_vm2, %vm568_vm4  ;;  %v354_v60 = vld [vmem:[%s2925_s14 + $0xc0] sm:$0x3] }
  0x31   : > { %v505_v20 = vmax.f32 %v455_v1, 0.0  ;;  %v506_v21 = vmax.f32 %v456_v9, 0.0  ;;  %v405_v23 = vmul.f32 %v2916_v5, %v351_v15  ;;  %v406_v24 = vmul.f32 %v2916_v5, %v352_v16  ;;  %vm635_vm7 = vmand %vm3156_vm6, %vm585_vm5 }
  0x32   : > { %v543_v25 = vadd.s32 4, %v2903_v0  ;;  %v504_v27 = vmax.f32 %v454_v14, 0.0  ;;  %v404_v28 = vmul.f32 %v2916_v5, %v350_v19  ;;  %v3166_v29 = vsel %vm925_vm3, %v949_v17, %v951_v2  ;;  %vm704_vm15 = vmand %vm3156_vm6, %vm674_vm9 }
  0x33   : > { %1014 = vrot.lane.b32.xlu2 %v3116_v57, %s2820_s20  ;;  %5566 = vst [vmem:[#allocation16_spill] sm:$0xff] %v3166_v29  ;;  %v503_v32 = vmax.f32 %v453_v18, 0.0  ;;  %v3169_v33 = vsel %vm925_vm3, %v947_v58, %v949_v17  ;;  %v3173_v34 = vsel %vm3156_vm6, %v505_v20, 0.0  ;;  %v3177_v35 = vsel %vm3156_vm6, %v506_v21, 0.0 }
  0x34   : > { %1012 = vrot.lane.b32.xlu1 %v3130_v10, %s2820_s20  ;;  %5567 = vst [vmem:[#allocation17_spill] sm:$0xff] %v3169_v33  ;;  %v403_v37 = vmul.f32 %v2916_v5, %v349_v26  ;;  %v459_v43 = vadd.f32 %v2930_v7, %v405_v23  ;;  %v460_v44 = vadd.f32 %v2930_v7, %v406_v24  ;;  %vm559_vm8 = vcmp.ge.s32.totalorder %v543_v25, 1 }
  0x35   : > { %1010 = vrot.lane.b32.xlu0 %v3139_v13, %s2820_s20  ;;  %5568 = vst [vmem:[#allocation18_spill] sm:$0xff] %v3173_v34  ;;  %vm569_vm10 = vcmp.le.s32.totalorder %v543_v25, 32  ;;  %v3188_v47 = vsel %vm925_vm3, %v945_v38, %v947_v58  ;;  %v3192_v48 = vsel %vm3156_vm6, %v504_v27, 0.0  ;;  %v458_v8 = vadd.f32 %v2930_v7, %v404_v28  ;;  %v358_v28 = vld [vmem:[%s2925_s14 + $0xe0] sm:$0xff] }
  0x36   : > { %5569 = vst [vmem:[#allocation19_spill] sm:$0xff] %v3177_v35  ;;  %v3198_v50 = vsel %vm635_vm7, %v503_v32, 0.0  ;;  %v457_v54 = vadd.f32 %v2930_v7, %v403_v37  ;;  %v544_v56 = vadd.s32 5, %v2903_v0  ;;  %v956_v38 = vrot.slane %v3173_v34, 1  ;;  %vm3210_vm11 = vmand %vm559_vm8, %vm569_vm10  ;;  %v365_v37 = vld [vmem:[%s2925_s14 + $0x118] sm:$0xff] }
  0x37   : > { %5570 = vst [vmem:[#allocation20_spill] sm:$0xff] %v3198_v50  ;;  %v958_v61 = vrot.slane %v3177_v35, 1  ;;  %v409_v9 = vmul.f32 %v2916_v5, %v355_v45  ;;  %v954_v14 = vrot.slane %v3192_v48, 1  ;;  %v509_v15 = vmax.f32 %v459_v43, 0.0  ;;  %vm640_vm12 = vmand %vm3210_vm11, %vm585_vm5  ;;  %v359_v45 = vld [vmem:[%s2925_s14 + $0xe8] sm:$0x3] }
  0x38   : > { %v510_v16 = vmax.f32 %v460_v44, 0.0  ;;  %v410_v17 = vmul.f32 %v2916_v5, %v356_v49  ;;  %v953_v2 = vrot.slane %v3198_v50, 1  ;;  %v508_v18 = vmax.f32 %v458_v8, 0.0  ;;  %v357_v8 = vld [vmem:[%s2925_s14 + $0xd8] sm:$0xff]  ;;  %vm709_vm2 = vmand %vm3210_vm11, %vm674_vm9 }
  0x39   : > { %v407_v19 = vmul.f32 %v2916_v5, %v353_v59  ;;  %v408_v58 = vmul.f32 %v2916_v5, %v354_v60  ;;  %v507_v20 = vmax.f32 %v457_v54, 0.0  ;;  %vm560_vm13 = vcmp.ge.s32.totalorder %v544_v56, 1 }
  0x3a   : > { %vm570_vm14 = vcmp.le.s32.totalorder %v544_v56, 32  ;;  %v3227_v21 = vsel %vm925_vm3, %v956_v38, %v958_v61  ;;  %v463_v23 = vadd.f32 %v2930_v7, %v409_v9  ;;  %v3235_v24 = vsel %vm925_vm3, %v954_v14, %v956_v38 }
  0x3b   : > { %1020 = vrot.lane.b32.xlu2 %v3166_v29, %s2820_s20  ;;  %5573 = vst [vmem:[#allocation21_spill] sm:$0xff] %v3227_v21  ;;  %v3239_v25 = vsel %vm3210_vm11, %v509_v15, 0.0  ;;  %v3243_v26 = vsel %vm3210_vm11, %v510_v16, 0.0  ;;  %v464_v27 = vadd.f32 %v2930_v7, %v410_v17  ;;  %v3248_v32 = vsel %vm925_vm3, %v953_v2, %v954_v14  ;;  %vm3252_vm0 = vmand %vm560_vm13, %vm570_vm14 }
  0x3c   : > { %1018 = vrot.lane.b32.xlu1 %v3169_v33, %s2820_s20  ;;  %5574 = vst [vmem:[#allocation22_spill] sm:$0xff] %v3235_v24  ;;  %v3250_v22 = vsel %vm640_vm12, %v508_v18, 0.0  ;;  %v461_v43 = vadd.f32 %v2930_v7, %v407_v19  ;;  %v462_v44 = vadd.f32 %v2930_v7, %v408_v58  ;;  %v3262_v49 = vsel %vm704_vm15, %v507_v20, 0.0  ;;  %vm645_vm1 = vmand %vm3252_vm0, %vm585_vm5 }
  0x3d   : > { %1016 = vrot.lane.b32.xlu0 %v3188_v47, %s2820_s20  ;;  %5575 = vst [vmem:[#allocation23_spill] sm:$0xff] %v3239_v25  ;;  %v963_v54 = vrot.slane %v3239_v25, 1  ;;  %v965_v56 = vrot.slane %v3243_v26, 1  ;;  %v513_v59 = vmax.f32 %v463_v23, 0.0  ;;  %v412_v60 = vmul.f32 %v2916_v5, %v358_v28  ;;  %vm714_vm4 = vmand %vm3252_vm0, %vm674_vm9 }
  0x3e   : > { %5576 = vst [vmem:[#allocation24_spill] sm:$0xff] %v3243_v26  ;;  %v962_v38 = vrot.slane %v3250_v22, 1  ;;  %v514_v9 = vmax.f32 %v464_v27, 0.0  ;;  %v413_v14 = vmul.f32 %v2916_v5, %v359_v45  ;;  %v411_v15 = vmul.f32 %v2916_v5, %v357_v8 }
  0x3f   : > { %5577 = vst [vmem:[#allocation25_spill] sm:$0xff] %v3248_v32  ;;  %v960_v16 = vrot.slane %v3262_v49, 1  ;;  %v511_v17 = vmax.f32 %v461_v43, 0.0  ;;  %v512_v2 = vmax.f32 %v462_v44, 0.0  ;;  %v3284_v18 = vsel %vm925_vm3, %v963_v54, %v965_v56  ;;  %v362_v43 = vld [vmem:[%s2925_s14 + $0x100] sm:$0xff]  ;;  %v363_v44 = vld [vmem:[%s2925_s14 + $0x108] sm:$0xff] }
  0x40   : > { %5580 = vst [vmem:[#allocation26_spill] sm:$0xff] %v3284_v18  ;;  %v3286_v19 = vsel %vm645_vm1, %v513_v59, 0.0  ;;  %v466_v58 = vadd.f32 %v2930_v7, %v412_v60  ;;  %v3290_v20 = vsel %vm925_vm3, %v962_v38, %v963_v54  ;;  %v3294_v23 = vsel %vm3252_vm0, %v514_v9, 0.0  ;;  %v361_v60 = vld [vmem:[%s2925_s14 + $0xf8] sm:$0xff] }
  0x41   : > { %5581 = vst [vmem:[#allocation27_spill] sm:$0xff] %v3286_v19  ;;  %v467_v27 = vadd.f32 %v2930_v7, %v413_v14  ;;  %v465_v28 = vadd.f32 %v2930_v7, %v411_v15  ;;  %v3301_v45 = vsel %vm925_vm3, %v958_v61, %v960_v16  ;;  %v3305_v8 = vsel %vm3210_vm11, %v511_v17, 0.0  ;;  %v360_v14 = vld [vmem:[%s2925_s14 + $0xf0] sm:$0xff] }
  0x42   : > { %5582 = vst [vmem:[#allocation28_spill] sm:$0xff] %v3290_v20  ;;  %v3307_v54 = vsel %vm709_vm2, %v512_v2, 0.0  ;;  %v971_v59 = vrot.slane %v3286_v19, 1  ;;  %v972_v38 = vrot.slane %v3294_v23, 1  ;;  %v516_v9 = vmax.f32 %v466_v58, 0.0 }
  0x43   : > { %1026 = vrot.lane.b32.xlu2 %v3227_v21, %s2820_s20  ;;  %5583 = vst [vmem:[#allocation29_spill] sm:$0xff] %v3294_v23  ;;  %v416_v61 = vmul.f32 %v2916_v5, %v362_v43  ;;  %v417_v1 = vmul.f32 %v2916_v5, %v363_v44  ;;  %v967_v15 = vrot.slane %v3305_v8, 1  ;;  %v969_v16 = vrot.slane %v3307_v54, 1 }
  0x44   : > { %1024 = vrot.lane.b32.xlu1 %v3235_v24, %s2820_s20  ;;  %5584 = vst [vmem:[#allocation30_spill] sm:$0xff] %v3301_v45  ;;  %v517_v17 = vmax.f32 %v467_v27, 0.0  ;;  %v515_v2 = vmax.f32 %v465_v28, 0.0  ;;  %v545_v58 = vadd.s32 6, %v2903_v0  ;;  %v415_v43 = vmul.f32 %v2916_v5, %v361_v60 }
  0x45   : > { %1022 = vrot.lane.b32.xlu0 %v3248_v32, %s2820_s20  ;;  %v414_v44 = vmul.f32 %v2916_v5, %v360_v14  ;;  %v3335_v27 = vsel %vm3252_vm0, %v516_v9, 0.0  ;;  %v470_v28 = vadd.f32 %v2930_v7, %v416_v61  ;;  %v3340_v24 = vsel %vm925_vm3, %v967_v15, %v969_v16  ;;  %v366_v61 = vld [vmem:[%s2925_s14 + $0x120] sm:$0xff]  ;;  %v367_v14 = vld [vmem:[%s2925_s14 + $0x128] sm:$0xff] }
  0x46   : > { %5586 = vst [vmem:[#allocation32_spill] sm:$0xff] %v3335_v27  ;;  %v3342_v21 = vsel %vm714_vm4, %v517_v17, 0.0  ;;  %v3346_v60 = vsel %vm3252_vm0, %v515_v2, 0.0  ;;  %vm561_vm6 = vcmp.ge.s32.totalorder %v545_v58, 1  ;;  %vm571_vm7 = vcmp.le.s32.totalorder %v545_v58, 32 }
  0x47   : > { %5587 = vst [vmem:[#allocation33_spill] sm:$0xff] %v3340_v24  ;;  %v469_v9 = vadd.f32 %v2930_v7, %v415_v43  ;;  %v468_v16 = vadd.f32 %v2930_v7, %v414_v44  ;;  %v520_v17 = vmax.f32 %v470_v28, 0.0  ;;  %v364_v43 = vld [vmem:[%s2925_s14 + $0x110] sm:$0x3]  ;;  %vm3368_vm8 = vmand %vm561_vm6, %vm571_vm7  ;;  %v420_v44 = vmul.f32 %v2916_v5, %v366_v61 }
  0x48   : > { %5588 = vst [vmem:[#allocation34_spill] sm:$0xff] %v3346_v60  ;;  %v419_v28 = vmul.f32 %v2916_v5, %v365_v37  ;;  %v418_v29 = vmul.f32 %v2916_v5, %v364_v43  ;;  %vm650_vm10 = vmand %vm3368_vm8, %vm585_vm5  ;;  %v368_v43 = vld [vmem:[%s2925_s14 + $0x130] sm:$0xff]  ;;  %vm1094_vm1 = vcmask 1045504  }
  0x49   : > { %v519_v33 = vmax.f32 %v469_v9, 0.0  ;;  %v3385_v61 = vsel %vm3368_vm8, %v520_v17, 0.0  ;;  %vm719_vm15 = vmand %vm3368_vm8, %vm674_vm9 }
  0x4a   : > { %5594 = vst [vmem:[#allocation38_spill] sm:$0xff] %v3385_v61 }
  0x4b   : > { %1032 = vrot.lane.b32.xlu2 %v3284_v18, %s2820_s20  ;;  %v471_v18 = vadd.f32 %v2930_v7, %v417_v1  ;;  %v976_v1 = vrot.slane %v3335_v27, 1  ;;  %v3402_v37 = vsel %vm3368_vm8, %v519_v33, 0.0 }
  0x4c   : > { %1030 = vrot.lane.b32.xlu1 %v3290_v20, %s2820_s20  ;;  %v3331_v20 = vsel %vm925_vm3, %v971_v59, %v972_v38  ;;  %v3349_v59 = vsel %vm925_vm3, %v965_v56, %v967_v15  ;;  %v978_v56 = vrot.slane %v3342_v21, 1  ;;  %v974_v15 = vrot.slane %v3346_v60, 1  ;;  %5597 = vst [vmem:[#allocation41_spill] sm:$0xff] %v3402_v37 }
  0x4d   : > { %1028 = vrot.lane.b32.xlu0 %v3301_v45, %s2820_s20  ;;  %5585 = vst [vmem:[#allocation31_spill] sm:$0xff] %v3331_v20  ;;  %v521_v2 = vmax.f32 %v471_v18, 0.0  ;;  %v546_v45 = vadd.s32 7, %v2903_v0  ;;  %v518_v18 = vmax.f32 %v468_v16, 0.0 }
  0x4e   : > { %5589 = vst [vmem:[#allocation35_spill] sm:$0xff] %v3349_v59  ;;  %v3381_v58 = vsel %vm925_vm3, %v974_v15, %v976_v1 }
  0x4f   : > { %5593 = vst [vmem:[#allocation37_spill] sm:$0xff] %v3381_v58  ;;  %v3389_v9 = vsel %vm3368_vm8, %v521_v2, 0.0  ;;  %vm562_vm11 = vcmp.ge.s32.totalorder %v546_v45, 1  ;;  %vm572_vm12 = vcmp.le.s32.totalorder %v546_v45, 32  ;;  %v3407_v17 = vsel %vm650_vm10, %v518_v18, 0.0 }
  0x50   : > { %5595 = vst [vmem:[#allocation39_spill] sm:$0xff] %v3389_v9  ;;  %v472_v2 = vadd.f32 %v2930_v7, %v418_v29  ;;  %v983_v45 = vrot.slane %v3385_v61, 1  ;;  %vm3416_vm13 = vmand %vm562_vm11, %vm572_vm12 }
  0x51   : > { %5598 = vst [vmem:[#allocation42_spill] sm:$0xff] %v3407_v17  ;;  %vm655_vm14 = vmand %vm3416_vm13, %vm585_vm5 }
  0x52   : > { %v522_v32 = vmax.f32 %v472_v2, 0.0  ;;  %vm724_vm0 = vmand %vm3416_vm13, %vm674_vm9 }
  0x53   : > { %1038 = vrot.lane.b32.xlu2 %v3331_v20, %s2820_s20 }
  0x54   : > { %1036 = vrot.lane.b32.xlu1 %v3340_v24, %s2820_s20  ;;  %v421_v24 = vmul.f32 %v2916_v5, %v367_v14  ;;  %v474_v14 = vadd.f32 %v2930_v7, %v420_v44 }
  0x55   : > { %1034 = vrot.lane.b32.xlu0 %v3349_v59, %s2820_s20  ;;  %v3378_v59 = vsel %vm925_vm3, %v976_v1, %v978_v56  ;;  %v3398_v1 = vsel %vm925_vm3, %v972_v38, %v974_v15  ;;  %v473_v56 = vadd.f32 %v2930_v7, %v419_v28  ;;  %v985_v38 = vrot.slane %v3389_v9, 1 }
  0x56   : > { %5592 = vst [vmem:[#allocation36_spill] sm:$0xff] %v3378_v59  ;;  %v475_v16 = vadd.f32 %v2930_v7, %v421_v24  ;;  %v369_v24 = vld [vmem:[%s2925_s14 + $0x138] sm:$0x3]  ;;  %v981_v15 = vrot.slane %v3402_v37, 1  ;;  %v524_v44 = vmax.f32 %v474_v14, 0.0  ;;  %v980_v28 = vrot.slane %v3407_v17, 1 }
  0x57   : > { %5596 = vst [vmem:[#allocation40_spill] sm:$0xff] %v3398_v1  ;;  %v523_v18 = vmax.f32 %v473_v56, 0.0  ;;  %v3431_v10 = vsel %vm925_vm3, %v983_v45, %v985_v38 }
  0x58   : > { %v525_v29 = vmax.f32 %v475_v16, 0.0  ;;  %5601 = vst [vmem:[#allocation43_spill] sm:$0xff] %v3431_v10  ;;  %v3438_v14 = vsel %vm925_vm3, %v981_v15, %v983_v45  ;;  %v3449_v56 = vsel %vm925_vm3, %v980_v28, %v981_v15 }
  0x59   : > { %v3451_v2 = vsel %vm655_vm14, %v523_v18, 0.0  ;;  %vm1918_vm14 = vcmask 130048  }
  0x5a   : > { %v3446_v16 = vsel %vm3416_vm13, %v525_v29, 0.0  ;;  %5603 = vst [vmem:[#allocation45_spill] sm:$0xff] %v3451_v2  ;;  %v989_v15 = vrot.slane %v3451_v2, 1 }
  0x5b   : > { %1044 = vrot.lane.b32.xlu2 %v3378_v59, %s2820_s20  ;;  %v423_v59 = vmul.f32 %v2916_v5, %v369_v24  ;;  %v3457_v24 = vsel %vm719_vm15, %v522_v32, 0.0  ;;  %vm1951_vm15 = vcmask 195584  }
  0x5c   : > { %1042 = vrot.lane.b32.xlu1 %v3381_v58, %s2820_s20  ;;  %v422_v58 = vmul.f32 %v2916_v5, %v368_v43  ;;  %v3442_v5 = vsel %vm3416_vm13, %v524_v44, 0.0  ;;  %v992_v44 = vrot.slane %v3446_v16, 1 }
  0x5d   : > { %1040 = vrot.lane.b32.xlu0 %v3398_v1, %s2820_s20  ;;  %5602 = vst [vmem:[#allocation44_spill] sm:$0xff] %v3442_v5  ;;  %v477_v20 = vadd.f32 %v2930_v7, %v423_v59  ;;  %v990_v45 = vrot.slane %v3442_v5, 1 }
  0x5e   : > { %v476_v43 = vadd.f32 %v2930_v7, %v422_v58  ;;  %v987_v58 = vrot.slane %v3457_v24, 1 }
  0x5f   : > { %v527_v59 = vmax.f32 %v477_v20, 0.0  ;;  %v3472_v32 = vsel %vm925_vm3, %v990_v45, %v992_v44  ;;  %v3475_v29 = vsel %vm925_vm3, %v989_v15, %v990_v45  ;;  %v1095_v20 = vrot.slane %v3008_v51, 2 }
  0x60   : > { %v526_v7 = vmax.f32 %v476_v43, 0.0  ;;  %5604 = vst [vmem:[#allocation46_spill] sm:$0xff] %v3472_v32  ;;  %v3478_v28 = vsel %vm925_vm3, %v985_v38, %v987_v58  ;;  %v1096_v45 = vrot.slane %v3012_v52, 2  ;;  %v1102_v51 = vrot.slane %v3061_v4, 2 }
  0x61   : > { %5605 = vst [vmem:[#allocation47_spill] sm:$0xff] %v3475_v29  ;;  %v3484_v43 = vsel %vm724_vm0, %v527_v59, 0.0  ;;  %v1100_v59 = vrot.slane %v3002_v46, 2  ;;  %v1109_v46 = vrot.slane %v3094_v36, 2  ;;  %vm1984_vm0 = vcmask 261120  }
  0x62   : > { %5606 = vst [vmem:[#allocation48_spill] sm:$0xff] %v3478_v28  ;;  %v3482_v18 = vsel %vm3416_vm13, %v526_v7, 0.0  ;;  %v996_v33 = vrot.slane %v3484_v43, 1  ;;  %v1097_v15 = vsel %vm1094_vm1, %v1095_v20, %v1096_v45  ;;  %v1098_v20 = vrot.slane %v2996_v42, 2 }
  0x63   : > { %1050 = vrot.lane.b32.xlu2 %v3431_v10, %s2820_s20  ;;  %v994_v38 = vrot.slane %v3482_v18, 1  ;;  %v1105_v42 = vrot.slane %v2992_v41, 2 }
  0x64   : > { %1048 = vrot.lane.b32.xlu1 %v3438_v14, %s2820_s20 }
  0x65   : > { %1046 = vrot.lane.b32.xlu0 %v3449_v56, %s2820_s20  ;;  %v3498_v58 = vsel %vm925_vm3, %v994_v38, %v996_v33  ;;  %v3501_v7 = vsel %vm925_vm3, %v992_v44, %v994_v38  ;;  %v1103_v33 = vsel %vm1094_vm1, %v1100_v59, %v1102_v51  ;;  %v1101_v44 = vsel %vm1094_vm1, %v1098_v20, %v1100_v59 }
  0x66   : > { %5607 = vst [vmem:[#allocation49_spill] sm:$0xff] %v3498_v58  ;;  %v1099_v38 = vsel %vm1094_vm1, %v1096_v45, %v1098_v20  ;;  %v1104_v51 = vrot.slane %v2988_v40, 2 }
  0x67   : > { %5608 = vst [vmem:[#allocation50_spill] sm:$0xff] %v3501_v7 }
  0x68   : > { %v3530_v20 = vsel %vm1094_vm1, %v1104_v51, %v1105_v42 }
  0x6b   : > { %1056 = vrot.lane.b32.xlu2 %v3472_v32, %s2820_s20 }
  0x6c   : > { %1054 = vrot.lane.b32.xlu1 %v3475_v29, %s2820_s20 }
  0x6d   : > { %1052 = vrot.lane.b32.xlu0 %v3478_v28, %s2820_s20 }
  0x73   : > { %1167 = vrot.lane.b32.xlu2 %v1097_v15, %s2821_s28  ;;  %v1107_v15 = vrot.slane %v3016_v53, 2 }
  0x74   : > { %1060 = vrot.lane.b32.xlu1 %v3498_v58, %s2820_s20 }
  0x75   : > { %1058 = vrot.lane.b32.xlu0 %v3501_v7, %s2820_s20  ;;  %v3524_v59 = vsel %vm1094_vm1, %v1107_v15, %v1109_v46  ;;  %v3527_v45 = vsel %vm1094_vm1, %v1105_v42, %v1107_v15  ;;  %v1113_v15 = vrot.slane %v3083_v30, 2  ;;  %v1111_v42 = vrot.slane %v3100_v39, 2 }
  0x76   : > { %5610 = vst [vmem:[#allocation52_spill] sm:$0xff] %v3527_v45 }
  0x77   : > { %v3551_v52 = vsel %vm1094_vm1, %v1109_v46, %v1111_v42  ;;  %v1120_v46 = vrot.slane %v3125_v63, 2 }
  0x7b   : > { %1173 = vrot.lane.b32.xlu2 %v1103_v33, %s2821_s28  ;;  %v1114_v33 = vrot.slane %v3087_v31, 2 }
  0x7c   : > { %1171 = vrot.lane.b32.xlu1 %v1101_v44, %s2821_s28  ;;  %v1116_v44 = vrot.slane %v3134_v11, 2 }
  0x7d   : > { %1169 = vrot.lane.b32.xlu0 %v1099_v38, %s2821_s28  ;;  %v3519_v4 = vpop.permute.xlu2 %1006 }
  0x7e   : > { %5609 = vst [vmem:[#allocation51_spill] sm:$0xff] %v3519_v4  ;;  %v3545_v51 = vsel %vm1094_vm1, %v1114_v33, %v1116_v44  ;;  %v3548_v4 = vsel %vm1094_vm1, %v1113_v15, %v1114_v33  ;;  %v1118_v33 = vrot.slane %v3123_v62, 2 }
  0x7f   : > { %5612 = vst [vmem:[#allocation54_spill] sm:$0xff] %v3545_v51 }
  0x80   : > { %5613 = vst [vmem:[#allocation55_spill] sm:$0xff] %v3548_v4  ;;  %v3569_v42 = vsel %vm1094_vm1, %v1118_v33, %v1120_v46 }
  0x81   : > { %5616 = vst [vmem:[#allocation58_spill] sm:$0xff] %v3569_v42 }
  0x83   : > { %1179 = vrot.lane.b32.xlu2 %v3524_v59, %s2821_s28 }
  0x84   : > { %1177 = vrot.lane.b32.xlu1 %v3527_v45, %s2821_s28  ;;  %v1123_v45 = vrot.slane %v3192_v48, 2 }
  0x85   : > { %1175 = vrot.lane.b32.xlu0 %v3530_v20, %s2821_s28  ;;  %v3540_v38 = vpop.permute.xlu2 %1008 }
  0x86   : > { %5611 = vst [vmem:[#allocation53_spill] sm:$0xff] %v3540_v38  ;;  %v1122_v38 = vrot.slane %v3198_v50, 2 }
  0x88   : > { %v3566_v15 = vsel %vm1094_vm1, %v1122_v38, %v1123_v45  ;;  %v1125_v38 = vrot.slane %v3173_v34, 2 }
  0x89   : > { %5615 = vst [vmem:[#allocation57_spill] sm:$0xff] %v3566_v15 }
  0x8b   : > { %1185 = vrot.lane.b32.xlu2 %v3545_v51, %s2821_s28  ;;  %v1129_v51 = vrot.slane %v3262_v49, 2  ;;  %v1134_v49 = vrot.slane %v3243_v26, 2 }
  0x8c   : > { %1183 = vrot.lane.b32.xlu1 %v3548_v4, %s2821_s28  ;;  %v3572_v4 = vsel %vm1094_vm1, %v1116_v44, %v1118_v33 }
  0x8d   : > { %1181 = vrot.lane.b32.xlu0 %v3551_v52, %s2821_s28  ;;  %v3561_v39 = vpop.permute.xlu2 %1014  ;;  %5617 = vst [vmem:[#allocation59_spill] sm:$0xff] %v3572_v4 }
  0x8e   : > { %5614 = vst [vmem:[#allocation56_spill] sm:$0xff] %v3561_v39  ;;  %v1127_v39 = vrot.slane %v3177_v35, 2 }
  0x90   : > { %v3590_v33 = vsel %vm1094_vm1, %v1127_v39, %v1129_v51 }
  0x91   : > { %5621 = vst [vmem:[#allocation63_spill] sm:$0xff] %v3590_v33 }
  0x93   : > { %1191 = vrot.lane.b32.xlu2 %v3566_v15, %s2821_s28  ;;  %v3596_v15 = vsel %vm1094_vm1, %v1123_v45, %v1125_v38  ;;  %v1131_v45 = vrot.slane %v3250_v22, 2 }
  0x94   : > { %1189 = vrot.lane.b32.xlu1 %v3569_v42, %s2821_s28  ;;  %v3593_v42 = vsel %vm1094_vm1, %v1125_v38, %v1127_v39  ;;  %5623 = vst [vmem:[#allocation65_spill] sm:$0xff] %v3596_v15  ;;  %v1132_v39 = vrot.slane %v3239_v25, 2 }
  0x95   : > { %1187 = vrot.lane.b32.xlu0 %v3572_v4, %s2821_s28  ;;  %v3582_v63 = vpop.permute.xlu2 %1020  ;;  %5622 = vst [vmem:[#allocation64_spill] sm:$0xff] %v3593_v42 }
  0x96   : > { %5618 = vst [vmem:[#allocation60_spill] sm:$0xff] %v3582_v63  ;;  %v3585_v46 = vpop.permute.xlu1 %1002  ;;  %v1136_v63 = vrot.slane %v3305_v8, 2 }
  0x97   : > { %5619 = vst [vmem:[#allocation61_spill] sm:$0xff] %v3585_v46  ;;  %v3587_v44 = vpop.permute.xlu0 %998 }
  0x98   : > { %5620 = vst [vmem:[#allocation62_spill] sm:$0xff] %v3587_v44  ;;  %v3615_v44 = vsel %vm1094_vm1, %v1134_v49, %v1136_v63 }
  0x99   : > { %5627 = vst [vmem:[#allocation69_spill] sm:$0xff] %v3615_v44 }
  0x9b   : > { %1197 = vrot.lane.b32.xlu2 %v3590_v33, %s2821_s28  ;;  %v3621_v33 = vsel %vm1094_vm1, %v1131_v45, %v1132_v39 }
  0x9c   : > { %1195 = vrot.lane.b32.xlu1 %v3593_v42, %s2821_s28  ;;  %v3618_v42 = vsel %vm1094_vm1, %v1132_v39, %v1134_v49  ;;  %v1140_v49 = vrot.slane %v3286_v19, 2  ;;  %v1138_v39 = vrot.slane %v3307_v54, 2  ;;  %v1150_v54 = vrot.slane %v3402_v37, 2 }
  0x9d   : > { %1193 = vrot.lane.b32.xlu0 %v3596_v15, %s2821_s28  ;;  %v3606_v51 = vpop.permute.xlu2 %1026  ;;  %5628 = vst [vmem:[#allocation70_spill] sm:$0xff] %v3618_v42 }
  0x9e   : > { %5624 = vst [vmem:[#allocation66_spill] sm:$0xff] %v3606_v51  ;;  %v3609_v46 = vpop.permute.xlu1 %1004  ;;  %v1141_v51 = vrot.slane %v3294_v23, 2  ;;  %v3646_v4 = vsel %vm1094_vm1, %v1136_v63, %v1138_v39  ;;  %v1147_v63 = vrot.slane %v3342_v21, 2  ;;  %v1154_v21 = vrot.slane %v3389_v9, 2 }
  0x9f   : > { %5625 = vst [vmem:[#allocation67_spill] sm:$0xff] %v3609_v46  ;;  %v3612_v38 = vpop.permute.xlu0 %1000  ;;  %v1143_v46 = vrot.slane %v3346_v60, 2 }
  0xa0   : > { %5626 = vst [vmem:[#allocation68_spill] sm:$0xff] %v3612_v38 }
  0xa1   : > { %5634 = vst [vmem:[#allocation76_spill] sm:$0xff] %v3646_v4 }
  0xa3   : > { %1203 = vrot.lane.b32.xlu2 %v3615_v44, %s2821_s28  ;;  %v3640_v44 = vsel %vm1094_vm1, %v1141_v51, %v1143_v46 }
  0xa4   : > { %1201 = vrot.lane.b32.xlu1 %v3618_v42, %s2821_s28  ;;  %5632 = vst [vmem:[#allocation74_spill] sm:$0xff] %v3640_v44  ;;  %v3643_v42 = vsel %vm1094_vm1, %v1140_v49, %v1141_v51  ;;  %v1145_v51 = vrot.slane %v3335_v27, 2 }
  0xa5   : > { %1199 = vrot.lane.b32.xlu0 %v3621_v33, %s2821_s28  ;;  %v3631_v38 = vpop.permute.xlu2 %1032  ;;  %5633 = vst [vmem:[#allocation75_spill] sm:$0xff] %v3643_v42 }
  0xa6   : > { %5629 = vst [vmem:[#allocation71_spill] sm:$0xff] %v3631_v38  ;;  %v3634_v15 = vpop.permute.xlu1 %1012  ;;  %v1149_v38 = vrot.slane %v3407_v17, 2 }
  0xa7   : > { %5630 = vst [vmem:[#allocation72_spill] sm:$0xff] %v3634_v15  ;;  %v3637_v45 = vpop.permute.xlu0 %1010 }
  0xa8   : > { %5631 = vst [vmem:[#allocation73_spill] sm:$0xff] %v3637_v45  ;;  %v3665_v15 = vsel %vm1094_vm1, %v1149_v38, %v1150_v54 }
  0xab   : > { %1209 = vrot.lane.b32.xlu2 %v3640_v44, %s2821_s28  ;;  %v3671_v44 = vsel %vm1094_vm1, %v1143_v46, %v1145_v51 }
  0xac   : > { %1207 = vrot.lane.b32.xlu1 %v3643_v42, %s2821_s28  ;;  %v3668_v42 = vsel %vm1094_vm1, %v1145_v51, %v1147_v63  ;;  %5639 = vst [vmem:[#allocation81_spill] sm:$0xff] %v3671_v44  ;;  %v1152_v63 = vrot.slane %v3385_v61, 2 }
  0xad   : > { %1205 = vrot.lane.b32.xlu0 %v3646_v4, %s2821_s28  ;;  %v3656_v45 = vpop.permute.xlu2 %1038  ;;  %5638 = vst [vmem:[#allocation80_spill] sm:$0xff] %v3668_v42 }
  0xae   : > { %5635 = vst [vmem:[#allocation77_spill] sm:$0xff] %v3656_v45  ;;  %v3660_v49 = vpop.permute.xlu1 %1018  ;;  %v1156_v45 = vrot.slane %v3457_v24, 2  ;;  %v1161_v24 = vrot.slane %v3446_v16, 2 }
  0xaf   : > { %5636 = vst [vmem:[#allocation78_spill] sm:$0xff] %v3660_v49  ;;  %v3662_v39 = vpop.permute.xlu0 %1016  ;;  %v3692_v49 = vsel %vm1094_vm1, %v1152_v63, %v1154_v21 }
  0xb0   : > { %5637 = vst [vmem:[#allocation79_spill] sm:$0xff] %v3662_v39  ;;  %v3689_v51 = vsel %vm1094_vm1, %v1154_v21, %v1156_v45  ;;  %v1159_v21 = vrot.slane %v3442_v5, 2 }
  0xb1   : > { %5643 = vst [vmem:[#allocation85_spill] sm:$0xff] %v3689_v51 }
  0xb2   : > { %5644 = vst [vmem:[#allocation86_spill] sm:$0xff] %v3692_v49 }
  0xb3   : > { %1215 = vrot.lane.b32.xlu2 %v3665_v15, %s2821_s28 }
  0xb4   : > { %1213 = vrot.lane.b32.xlu1 %v3668_v42, %s2821_s28  ;;  %v3695_v42 = vsel %vm1094_vm1, %v1150_v54, %v1152_v63  ;;  %v1158_v54 = vrot.slane %v3451_v2, 2 }
  0xb5   : > { %1211 = vrot.lane.b32.xlu0 %v3671_v44, %s2821_s28  ;;  %v3681_v38 = vpop.permute.xlu2 %1044  ;;  %5645 = vst [vmem:[#allocation87_spill] sm:$0xff] %v3695_v42 }
  0xb6   : > { %5640 = vst [vmem:[#allocation82_spill] sm:$0xff] %v3681_v38  ;;  %v3684_v39 = vpop.permute.xlu1 %1024  ;;  %v1163_v38 = vrot.slane %v3482_v18, 2 }
  0xb7   : > { %5641 = vst [vmem:[#allocation83_spill] sm:$0xff] %v3684_v39  ;;  %v3686_v46 = vpop.permute.xlu0 %1022 }
  0xb8   : > { %5642 = vst [vmem:[#allocation84_spill] sm:$0xff] %v3686_v46  ;;  %v3714_v39 = vsel %vm1094_vm1, %v1161_v24, %v1163_v38 }
  0xb9   : > { %5649 = vst [vmem:[#allocation91_spill] sm:$0xff] %v3714_v39 }
  0xbb   : > { %1221 = vrot.lane.b32.xlu2 %v3689_v51, %s2821_s28  ;;  %v3720_v51 = vsel %vm1094_vm1, %v1158_v54, %v1159_v21 }
  0xbc   : > { %1219 = vrot.lane.b32.xlu1 %v3692_v49, %s2821_s28  ;;  %v3717_v49 = vsel %vm1094_vm1, %v1159_v21, %v1161_v24  ;;  %5651 = vst [vmem:[#allocation93_spill] sm:$0xff] %v3720_v51 }
  0xbd   : > { %1217 = vrot.lane.b32.xlu0 %v3695_v42, %s2821_s28  ;;  %v3705_v45 = vpop.permute.xlu2 %1050  ;;  %5650 = vst [vmem:[#allocation92_spill] sm:$0xff] %v3717_v49 }
  0xbe   : > { %5646 = vst [vmem:[#allocation88_spill] sm:$0xff] %v3705_v45  ;;  %v3708_v46 = vpop.permute.xlu1 %1030 }
  0xbf   : > { %5647 = vst [vmem:[#allocation89_spill] sm:$0xff] %v3708_v46  ;;  %v3711_v63 = vpop.permute.xlu0 %1028  ;;  %v1165_v46 = vrot.slane %v3484_v43, 2 }
  0xc0   : > { %5648 = vst [vmem:[#allocation90_spill] sm:$0xff] %v3711_v63 }
  0xc1   : > { %v3736_v21 = vsel %vm1094_vm1, %v1163_v38, %v1165_v46 }
  0xc2   : > { %5655 = vst [vmem:[#allocation97_spill] sm:$0xff] %v3736_v21 }
  0xc3   : > { %1227 = vrot.lane.b32.xlu2 %v3714_v39, %s2821_s28 }
  0xc4   : > { %1225 = vrot.lane.b32.xlu1 %v3717_v49, %s2821_s28 }
  0xc5   : > { %1223 = vrot.lane.b32.xlu0 %v3720_v51, %s2821_s28  ;;  %v3728_v45 = vpop.permute.xlu2 %1056 }
  0xc6   : > { %5652 = vst [vmem:[#allocation94_spill] sm:$0xff] %v3728_v45  ;;  %v3730_v63 = vpop.permute.xlu1 %1036 }
  0xc7   : > { %5653 = vst [vmem:[#allocation95_spill] sm:$0xff] %v3730_v63  ;;  %v3733_v24 = vpop.permute.xlu0 %1034 }
  0xc8   : > { %5654 = vst [vmem:[#allocation96_spill] sm:$0xff] %v3733_v24 }
  0xcb   : > { %1269 = vrot.lane.b32.xlu2 %v2992_v41, %s2822_s29 }
  0xcc   : > { %1267 = vrot.lane.b32.xlu1 %v2988_v40, %s2822_s29 }
  0xcd   : > { %1229 = vrot.lane.b32.xlu0 %v3736_v21, %s2821_s28  ;;  %v3744_v54 = vpop.permute.xlu2 %1167 }
  0xce   : > { %5656 = vst [vmem:[#allocation98_spill] sm:$0xff] %v3744_v54  ;;  %v3746_v63 = vpop.permute.xlu1 %1042 }
  0xcf   : > { %5657 = vst [vmem:[#allocation99_spill] sm:$0xff] %v3746_v63  ;;  %v3748_v43 = vpop.permute.xlu0 %1040 }
  0xd0   : > { %5658 = vst [vmem:[#allocation100_spill] sm:$0xff] %v3748_v43 }
  0xd3   : > { %1275 = vrot.lane.b32.xlu2 %v3083_v30, %s2822_s29 }
  0xd4   : > { %1273 = vrot.lane.b32.xlu1 %v3094_v36, %s2822_s29 }
  0xd5   : > { %1271 = vrot.lane.b32.xlu0 %v3016_v53, %s2822_s29  ;;  %v3756_v38 = vpop.permute.xlu2 %1173 }
  0xd6   : > { %5659 = vst [vmem:[#allocation101_spill] sm:$0xff] %v3756_v38  ;;  %v3758_v46 = vpop.permute.xlu1 %1048 }
  0xd7   : > { %5660 = vst [vmem:[#allocation102_spill] sm:$0xff] %v3758_v46  ;;  %v3760_v24 = vpop.permute.xlu0 %1046 }
  0xd8   : > { %5661 = vst [vmem:[#allocation103_spill] sm:$0xff] %v3760_v24 }
  0xdb   : > { %1281 = vrot.lane.b32.xlu2 %v3123_v62, %s2822_s29 }
  0xdc   : > { %1279 = vrot.lane.b32.xlu1 %v3134_v11, %s2822_s29 }
  0xdd   : > { %1277 = vrot.lane.b32.xlu0 %v3087_v31, %s2822_s29  ;;  %v3768_v43 = vpop.permute.xlu2 %1179 }
  0xde   : > { %5662 = vst [vmem:[#allocation104_spill] sm:$0xff] %v3768_v43  ;;  %v3770_v63 = vpop.permute.xlu1 %1054 }
  0xdf   : > { %5663 = vst [vmem:[#allocation105_spill] sm:$0xff] %v3770_v63  ;;  %v3772_v41 = vpop.permute.xlu0 %1052 }
  0xe0   : > { %5664 = vst [vmem:[#allocation106_spill] sm:$0xff] %v3772_v41 }
  0xe3   : > { %1287 = vrot.lane.b32.xlu2 %v3173_v34, %s2822_s29 }
  0xe4   : > { %1285 = vrot.lane.b32.xlu1 %v3192_v48, %s2822_s29 }
  0xe5   : > { %1283 = vrot.lane.b32.xlu0 %v3198_v50, %s2822_s29  ;;  %v3780_v24 = vpop.permute.xlu2 %1185 }
  0xe6   : > { %5665 = vst [vmem:[#allocation107_spill] sm:$0xff] %v3780_v24  ;;  %v3782_v46 = vpop.permute.xlu1 %1060 }
  0xe7   : > { %5666 = vst [vmem:[#allocation108_spill] sm:$0xff] %v3782_v46  ;;  %v3784_v53 = vpop.permute.xlu0 %1058 }
  0xe8   : > { %5667 = vst [vmem:[#allocation109_spill] sm:$0xff] %v3784_v53  ;;  %v372_v53 = vld [vmem:[%s2925_s14 + $0x150] sm:$0xff] }
  0xeb   : > { %1293 = vrot.lane.b32.xlu2 %v3239_v25, %s2822_s29 }
  0xec   : > { %1291 = vrot.lane.b32.xlu1 %v3250_v22, %s2822_s29 }
  0xed   : > { %1289 = vrot.lane.b32.xlu0 %v3177_v35, %s2822_s29  ;;  %v3792_v41 = vpop.permute.xlu2 %1191 }
  0xee   : > { %5668 = vst [vmem:[#allocation110_spill] sm:$0xff] %v3792_v41  ;;  %v3794_v63 = vpop.permute.xlu1 %1171 }
  0xef   : > { %5669 = vst [vmem:[#allocation111_spill] sm:$0xff] %v3794_v63  ;;  %v3796_v43 = vpop.permute.xlu0 %1169 }
  0xf0   : > { %5670 = vst [vmem:[#allocation112_spill] sm:$0xff] %v3796_v43  ;;  %v373_v43 = vld [vmem:[%s2925_s14 + $0x158] sm:$0xff] }
  0xf3   : > { %1299 = vrot.lane.b32.xlu2 %v3286_v19, %s2822_s29 }
  0xf4   : > { %1297 = vrot.lane.b32.xlu1 %v3305_v8, %s2822_s29 }
  0xf5   : > { %1295 = vrot.lane.b32.xlu0 %v3243_v26, %s2822_s29  ;;  %v3804_v24 = vpop.permute.xlu2 %1197 }
  0xf6   : > { %5671 = vst [vmem:[#allocation113_spill] sm:$0xff] %v3804_v24  ;;  %v3806_v38 = vpop.permute.xlu1 %1177  ;;  %v370_v24 = vld [vmem:[%s2925_s14 + $0x140] sm:$0xff] }
  0xf7   : > { %5672 = vst [vmem:[#allocation114_spill] sm:$0xff] %v3806_v38  ;;  %v3808_v46 = vpop.permute.xlu0 %1175  ;;  %v547_v38 = vadd.s32 8, %v2903_v0 }
  0xf8   : > { %5673 = vst [vmem:[#allocation115_spill] sm:$0xff] %v3808_v46  ;;  %v3845_v46 = vld [vmem:[%s5431_s3] ss:$0 sm:$0xff] }
  0xf9   : > { %vm563_vm2 = vcmp.ge.s32.totalorder %v547_v38, 1  ;;  %vm573_vm4 = vcmp.le.s32.totalorder %v547_v38, 32 }
  0xfa   : > { %vm3849_vm6 = vmand %vm563_vm2, %vm573_vm4  ;;  %vm2017_vm2 = vcmask 326656   ;;  %vm2050_vm4 = vcmask 392192  }
  0xfb   : > { %1305 = vrot.lane.b32.xlu2 %v3335_v27, %s2822_s29  ;;  %vm660_vm7 = vmand %vm3849_vm6, %vm585_vm5 }
  0xfc   : > { %1303 = vrot.lane.b32.xlu1 %v3346_v60, %s2822_s29  ;;  %vm729_vm8 = vmand %vm3849_vm6, %vm674_vm9 }
  0xfd   : > { %1301 = vrot.lane.b32.xlu0 %v3294_v23, %s2822_s29  ;;  %v3816_v41 = vpop.permute.xlu2 %1203 }
  0xfe   : > { %5674 = vst [vmem:[#allocation116_spill] sm:$0xff] %v3816_v41  ;;  %v3818_v63 = vpop.permute.xlu1 %1183  ;;  %v3831_v41 = vld [vmem:[%s5430_s2] ss:$0 sm:$0xff] }
  0xff   : > { %5675 = vst [vmem:[#allocation117_spill] sm:$0xff] %v3818_v63  ;;  %v3820_v54 = vpop.permute.xlu0 %1181  ;;  %v424_v63 = vmul.f32 %v3831_v41, %v370_v24 }
 0x100   : > { %5676 = vst [vmem:[#allocation118_spill] sm:$0xff] %v3820_v54 }
 0x101   : > { %v478_v40 = vadd.f32 %v3845_v46, %v424_v63 }
 0x103   : > { %1311 = vrot.lane.b32.xlu2 %v3385_v61, %s2822_s29  ;;  %v528_v38 = vmax.f32 %v478_v40, 0.0 }
 0x104   : > { %1309 = vrot.lane.b32.xlu1 %v3402_v37, %s2822_s29 }
 0x105   : > { %1307 = vrot.lane.b32.xlu0 %v3407_v17, %s2822_s29  ;;  %v3836_v45 = vpop.permute.xlu2 %1209  ;;  %v3874_v40 = vsel %vm660_vm7, %v528_v38, 0.0  ;;  %vm2083_vm7 = vcmask 457728  }
 0x106   : > { %5677 = vst [vmem:[#allocation119_spill] sm:$0xff] %v3836_v45  ;;  %v3838_v54 = vpop.permute.xlu1 %1189  ;;  %v371_v45 = vld [vmem:[%s2925_s14 + $0x148] sm:$0xff] }
 0x107   : > { %5678 = vst [vmem:[#allocation120_spill] sm:$0xff] %v3838_v54  ;;  %v3840_v36 = vpop.permute.xlu0 %1187  ;;  %v427_v54 = vmul.f32 %v3831_v41, %v373_v43  ;;  %v425_v0 = vmul.f32 %v3831_v41, %v371_v45 }
 0x108   : > { %5679 = vst [vmem:[#allocation121_spill] sm:$0xff] %v3840_v36  ;;  %v426_v36 = vmul.f32 %v3831_v41, %v372_v53 }
 0x109   : > { %v481_v43 = vadd.f32 %v3845_v46, %v427_v54 }
 0x10a   : > { %v480_v37 = vadd.f32 %v3845_v46, %v426_v36 }
 0x10b   : > { %1317 = vrot.lane.b32.xlu2 %v3442_v5, %s2822_s29  ;;  %v531_v53 = vmax.f32 %v481_v43, 0.0 }
 0x10c   : > { %1315 = vrot.lane.b32.xlu1 %v3451_v2, %s2822_s29  ;;  %v530_v38 = vmax.f32 %v480_v37, 0.0 }
 0x10d   : > { %1313 = vrot.lane.b32.xlu0 %v3389_v9, %s2822_s29  ;;  %v3862_v63 = vpop.permute.xlu2 %1215 }
 0x10e   : > { %5682 = vst [vmem:[#allocation122_spill] sm:$0xff] %v3862_v63  ;;  %v3869_v5 = vpop.permute.xlu1 %1195  ;;  %v479_v63 = vadd.f32 %v3845_v46, %v425_v0  ;;  %v3893_v0 = vsel %vm3849_vm6, %v531_v53, 0.0  ;;  %v3897_v36 = vsel %vm3849_vm6, %v530_v38, 0.0 }
 0x10f   : > { %5683 = vst [vmem:[#allocation123_spill] sm:$0xff] %v3869_v5  ;;  %v3872_v2 = vpop.permute.xlu0 %1193  ;;  %v1369_v24 = vrot.slane %v3893_v0, 1 }
 0x110   : > { %5684 = vst [vmem:[#allocation124_spill] sm:$0xff] %v3872_v2  ;;  %v529_v54 = vmax.f32 %v479_v63, 0.0 }
 0x112   : > { %v3901_v43 = vsel %vm3849_vm6, %v529_v54, 0.0  ;;  %vm2373_vm6 = vcmask 1043456  }
 0x113   : > { %1323 = vrot.lane.b32.xlu2 %v3874_v40, %s2822_s29 }
 0x114   : > { %1321 = vrot.lane.b32.xlu1 %v3482_v18, %s2822_s29 }
 0x115   : > { %1319 = vrot.lane.b32.xlu0 %v3446_v16, %s2822_s29  ;;  %v3885_v45 = vpop.permute.xlu2 %1221 }
 0x116   : > { %5685 = vst [vmem:[#allocation125_spill] sm:$0xff] %v3885_v45  ;;  %v3887_v5 = vpop.permute.xlu1 %1201 }
 0x117   : > { %5686 = vst [vmem:[#allocation126_spill] sm:$0xff] %v3887_v5  ;;  %v3889_v2 = vpop.permute.xlu0 %1199  ;;  %v5696_v5 = vld [vmem:[#allocation25_spill] sm:$0xff] }
 0x118   : > { %5687 = vst [vmem:[#allocation127_spill] sm:$0xff] %v3889_v2 }
 0x11b   : > { %1329 = vrot.lane.b32.xlu2 %v3893_v0, %s2822_s29 }
 0x11c   : > { %1327 = vrot.lane.b32.xlu1 %v3897_v36, %s2822_s29 }
 0x11d   : > { %1325 = vrot.lane.b32.xlu0 %v3901_v43, %s2822_s29  ;;  %v3909_v37 = vpop.permute.xlu2 %1227  ;;  %s4429_s29 = scalar_lea.vmem %s5429_s1, %s2651_s22 }
 0x11e   : > { %v3911_v63 = vpop.permute.xlu1 %1207 }
 0x11f   : > { %5688 = vst [vmem:[#allocation128_spill] sm:$0xff] %v3911_v63  ;;  %v3913_v53 = vpop.permute.xlu0 %1205 }
 0x120   : > { %5689 = vst [vmem:[#allocation129_spill] sm:$0xff] %v3913_v53 }
 0x123   : > { %1377 = vrot.lane.b32.xlu2 %v3139_v13, %s2823_s10  ;;  %v5692_v13 = vld [vmem:[#allocation15_spill] sm:$0xff] }
 0x124   : > { %1375 = vrot.lane.b32.xlu1 %v3054_v12, %s2823_s10 }
 0x125   : > { %1373 = vrot.lane.b32.xlu0 %v3020_v55, %s2823_s10  ;;  %v3921_v38 = vpop.permute.xlu2 %1269 }
 0x126   : > { %v3923_v54 = vpop.permute.xlu1 %1213 }
 0x127   : > { %5690 = vst [vmem:[#allocation130_spill] sm:$0xff] %v3923_v54  ;;  %v3925_v45 = vpop.permute.xlu0 %1211  ;;  %v5697_v54 = vld [vmem:[#allocation16_spill] sm:$0xff] }
 0x128   : > { %5691 = vst [vmem:[#allocation131_spill] sm:$0xff] %v3925_v45  ;;  %v5698_v45 = vld [vmem:[#allocation17_spill] sm:$0xff] }
 0x12b   : > { %1383 = vrot.lane.b32.xlu2 %v3188_v47, %s2823_s10 }
 0x12c   : > { %1381 = vrot.lane.b32.xlu1 %v3116_v57, %s2823_s10 }
 0x12d   : > { %1379 = vrot.lane.b32.xlu0 %v5692_v13, %s2823_s10  ;;  %v3933_v63 = vpop.permute.xlu2 %1275 }
 0x12e   : > { %5693 = vst [vmem:[#allocation15_spill] sm:$0xff] %v3933_v63  ;;  %v3935_v12 = vpop.permute.xlu1 %1219  ;;  %v5702_v63 = vld [vmem:[#allocation30_spill] sm:$0xff] }
 0x12f   : > { %5694 = vst [vmem:[#allocation132_spill] sm:$0xff] %v3935_v12  ;;  %v3937_v55 = vpop.permute.xlu0 %1217  ;;  %v5703_v12 = vld [vmem:[#allocation21_spill] sm:$0xff] }
 0x130   : > { %5695 = vst [vmem:[#allocation133_spill] sm:$0xff] %v3937_v55 }
 0x133   : > { %1389 = vrot.lane.b32.xlu2 %v5696_v5, %s2823_s10  ;;  %v5704_v5 = vld [vmem:[#allocation22_spill] sm:$0xff] }
 0x134   : > { %1387 = vrot.lane.b32.xlu1 %v5697_v54, %s2823_s10 }
 0x135   : > { %1385 = vrot.lane.b32.xlu0 %v5698_v45, %s2823_s10  ;;  %v3945_v53 = vpop.permute.xlu2 %1281 }
 0x136   : > { %5699 = vst [vmem:[#allocation17_spill] sm:$0xff] %v3945_v53  ;;  %v3947_v2 = vpop.permute.xlu1 %1225  ;;  %v5707_v53 = vld [vmem:[#allocation35_spill] sm:$0xff] }
 0x137   : > { %5700 = vst [vmem:[#allocation134_spill] sm:$0xff] %v3947_v2  ;;  %v3949_v13 = vpop.permute.xlu0 %1223 }
 0x138   : > { %5701 = vst [vmem:[#allocation135_spill] sm:$0xff] %v3949_v13  ;;  %v5708_v13 = vld [vmem:[#allocation26_spill] sm:$0xff] }
 0x13b   : > { %1395 = vrot.lane.b32.xlu2 %v5702_v63, %s2823_s10  ;;  %v5709_v63 = vld [vmem:[#allocation28_spill] sm:$0xff] }
 0x13c   : > { %1393 = vrot.lane.b32.xlu1 %v5703_v12, %s2823_s10 }
 0x13d   : > { %1391 = vrot.lane.b32.xlu0 %v5704_v5, %s2823_s10  ;;  %v3957_v55 = vpop.permute.xlu2 %1287 }
 0x13e   : > { %v3959_v54 = vpop.permute.xlu1 %1267 }
 0x13f   : > { %5705 = vst [vmem:[#allocation136_spill] sm:$0xff] %v3959_v54  ;;  %v3961_v57 = vpop.permute.xlu0 %1229 }
 0x140   : > { %5706 = vst [vmem:[#allocation137_spill] sm:$0xff] %v3961_v57  ;;  %v5712_v57 = vld [vmem:[#allocation31_spill] sm:$0xff] }
 0x143   : > { %1401 = vrot.lane.b32.xlu2 %v5707_v53, %s2823_s10  ;;  %v5713_v53 = vld [vmem:[#allocation33_spill] sm:$0xff] }
 0x144   : > { %1399 = vrot.lane.b32.xlu1 %v5708_v13, %s2823_s10 }
 0x145   : > { %1397 = vrot.lane.b32.xlu0 %v5709_v63, %s2823_s10  ;;  %v3969_v2 = vpop.permute.xlu2 %1293 }
 0x146   : > { %v3971_v12 = vpop.permute.xlu1 %1273 }
 0x147   : > { %5710 = vst [vmem:[#allocation138_spill] sm:$0xff] %v3971_v12  ;;  %v3973_v5 = vpop.permute.xlu0 %1271 }
 0x148   : > { %5711 = vst [vmem:[#allocation139_spill] sm:$0xff] %v3973_v5  ;;  %v5717_v5 = vld [vmem:[#allocation36_spill] sm:$0xff] }
 0x14b   : > { %1407 = vrot.lane.b32.xlu2 %v3398_v1, %s2823_s10  ;;  %v5718_v1 = vld [vmem:[#allocation37_spill] sm:$0xff] }
 0x14c   : > { %1405 = vrot.lane.b32.xlu1 %v5712_v57, %s2823_s10 }
 0x14d   : > { %1403 = vrot.lane.b32.xlu0 %v5713_v53, %s2823_s10  ;;  %v3981_v13 = vpop.permute.xlu2 %1299 }
 0x14e   : > { %5714 = vst [vmem:[#allocation140_spill] sm:$0xff] %v3981_v13  ;;  %v3983_v54 = vpop.permute.xlu1 %1279 }
 0x14f   : > { %5715 = vst [vmem:[#allocation141_spill] sm:$0xff] %v3983_v54  ;;  %v3985_v63 = vpop.permute.xlu0 %1277  ;;  %v374_v54 = vld [vmem:[%s2925_s14 + $0x160] sm:$0x3] }
 0x150   : > { %5716 = vst [vmem:[#allocation142_spill] sm:$0xff] %v3985_v63 }
 0x153   : > { %1413 = vrot.lane.b32.xlu2 %v3449_v56, %s2823_s10 }
 0x154   : > { %1411 = vrot.lane.b32.xlu1 %v5717_v5, %s2823_s10 }
 0x155   : > { %1409 = vrot.lane.b32.xlu0 %v5718_v1, %s2823_s10  ;;  %v3993_v12 = vpop.permute.xlu2 %1305  ;;  %v428_v1 = vmul.f32 %v3831_v41, %v374_v54  ;;  %v1364_v54 = vrot.slane %v3874_v40, 1 }
 0x156   : > { %5719 = vst [vmem:[#allocation143_spill] sm:$0xff] %v3993_v12  ;;  %v3995_v57 = vpop.permute.xlu1 %1285 }
 0x157   : > { %5720 = vst [vmem:[#allocation144_spill] sm:$0xff] %v3995_v57  ;;  %v3997_v53 = vpop.permute.xlu0 %1283 }
 0x158   : > { %5721 = vst [vmem:[#allocation145_spill] sm:$0xff] %v3997_v53  ;;  %v482_v53 = vadd.f32 %v3845_v46, %v428_v1 }
 0x15a   : > { %v532_v1 = vmax.f32 %v482_v53, 0.0 }
 0x15b   : > { %1419 = vrot.lane.b32.xlu2 %v3478_v28, %s2823_s10  ;;  %v1365_v28 = vrot.slane %v3901_v43, 1 }
 0x15c   : > { %1417 = vrot.lane.b32.xlu1 %v3431_v10, %s2823_s10  ;;  %v1367_v10 = vrot.slane %v3897_v36, 1 }
 0x15d   : > { %1415 = vrot.lane.b32.xlu0 %v3438_v14, %s2823_s10  ;;  %v4006_v5 = vpop.permute.xlu2 %1311 }
 0x15e   : > { %5722 = vst [vmem:[#allocation146_spill] sm:$0xff] %v4006_v5  ;;  %v4008_v63 = vpop.permute.xlu1 %1291 }
 0x15f   : > { %5723 = vst [vmem:[#allocation147_spill] sm:$0xff] %v4008_v63  ;;  %v4011_v12 = vpop.permute.xlu0 %1289 }
 0x160   : > { %5724 = vst [vmem:[#allocation148_spill] sm:$0xff] %v4011_v12 }
 0x163   : > { %1425 = vrot.lane.b32.xlu2 %v3501_v7, %s2823_s10  ;;  %v4034_v7 = vsel %vm925_vm3, %v1365_v28, %v1367_v10 }
 0x164   : > { %1423 = vrot.lane.b32.xlu1 %v3472_v32, %s2823_s10  ;;  %v4037_v32 = vsel %vm925_vm3, %v1364_v54, %v1365_v28 }
 0x165   : > { %1421 = vrot.lane.b32.xlu0 %v3475_v29, %s2823_s10  ;;  %v4022_v63 = vpop.permute.xlu2 %1317  ;;  %v4039_v29 = vsel %vm729_vm8, %v532_v1, 0.0  ;;  %v4059_v1 = vsel %vm925_vm3, %v1367_v10, %v1369_v24  ;;  %vm2116_vm8 = vcmask 523264  }
 0x166   : > { %5725 = vst [vmem:[#allocation149_spill] sm:$0xff] %v4022_v63  ;;  %v4025_v12 = vpop.permute.xlu1 %1297  ;;  %v1371_v6 = vrot.slane %v4039_v29, 1  ;;  %v5751_v63 = vld [vmem:[#allocation69_spill] sm:$0xff] }
 0x167   : > { %5726 = vst [vmem:[#allocation150_spill] sm:$0xff] %v4025_v12  ;;  %v4027_v5 = vpop.permute.xlu0 %1295 }
 0x168   : > { %5727 = vst [vmem:[#allocation151_spill] sm:$0xff] %v4027_v5  ;;  %v4056_v54 = vsel %vm925_vm3, %v1369_v24, %v1371_v6  ;;  %v5735_v6 = vld [vmem:[#allocation52_spill] sm:$0xff] }
 0x169   : > { %5731 = vst [vmem:[#allocation155_spill] sm:$0xff] %v4056_v54 }
 0x16a   : > { %5732 = vst [vmem:[#allocation156_spill] sm:$0xff] %v4059_v1 }
 0x16b   : > { %1431 = vrot.lane.b32.xlu2 %v4034_v7, %s2823_s10 }
 0x16c   : > { %1429 = vrot.lane.b32.xlu1 %v4037_v32, %s2823_s10 }
 0x16d   : > { %1427 = vrot.lane.b32.xlu0 %v3498_v58, %s2823_s10  ;;  %v4047_v53 = vpop.permute.xlu2 %1323 }
 0x16e   : > { %5728 = vst [vmem:[#allocation152_spill] sm:$0xff] %v4047_v53  ;;  %v4051_v5 = vpop.permute.xlu1 %1303  ;;  %v5744_v53 = vld [vmem:[#allocation65_spill] sm:$0xff] }
 0x16f   : > { %5729 = vst [vmem:[#allocation153_spill] sm:$0xff] %v4051_v5  ;;  %v4053_v28 = vpop.permute.xlu0 %1301 }
 0x170   : > { %5730 = vst [vmem:[#allocation154_spill] sm:$0xff] %v4053_v28 }
 0x173   : > { %1478 = vrot.lane.b32.xlu2 %v3530_v20, %s2824_s11 }
 0x174   : > { %1435 = vrot.lane.b32.xlu1 %v4056_v54, %s2823_s10  ;;  %v5738_v54 = vld [vmem:[#allocation59_spill] sm:$0xff] }
 0x175   : > { %1433 = vrot.lane.b32.xlu0 %v4059_v1, %s2823_s10  ;;  %v4067_v58 = vpop.permute.xlu2 %1329 }
 0x176   : > { %v4069_v5 = vpop.permute.xlu1 %1309 }
 0x177   : > { %5733 = vst [vmem:[#allocation157_spill] sm:$0xff] %v4069_v5  ;;  %v4071_v28 = vpop.permute.xlu0 %1307 }
 0x178   : > { %5734 = vst [vmem:[#allocation158_spill] sm:$0xff] %v4071_v28  ;;  %v5739_v28 = vld [vmem:[#allocation54_spill] sm:$0xff] }
 0x17b   : > { %1484 = vrot.lane.b32.xlu2 %v3551_v52, %s2824_s11  ;;  %v5740_v52 = vld [vmem:[#allocation55_spill] sm:$0xff] }
 0x17c   : > { %1482 = vrot.lane.b32.xlu1 %v3524_v59, %s2824_s11 }
 0x17d   : > { %1480 = vrot.lane.b32.xlu0 %v5735_v6, %s2824_s11  ;;  %v4079_v10 = vpop.permute.xlu2 %1377 }
 0x17e   : > { %v4081_v20 = vpop.permute.xlu1 %1315 }
 0x17f   : > { %5736 = vst [vmem:[#allocation52_spill] sm:$0xff] %v4081_v20  ;;  %v4083_v24 = vpop.permute.xlu0 %1313  ;;  %v5745_v20 = vld [vmem:[#allocation57_spill] sm:$0xff] }
 0x180   : > { %5737 = vst [vmem:[#allocation159_spill] sm:$0xff] %v4083_v24  ;;  %v5746_v24 = vld [vmem:[#allocation58_spill] sm:$0xff] }
 0x183   : > { %1490 = vrot.lane.b32.xlu2 %v5738_v54, %s2824_s11 }
 0x184   : > { %1488 = vrot.lane.b32.xlu1 %v5739_v28, %s2824_s11  ;;  %v5752_v28 = vld [vmem:[#allocation70_spill] sm:$0xff] }
 0x185   : > { %1486 = vrot.lane.b32.xlu0 %v5740_v52, %s2824_s11  ;;  %v4091_v5 = vpop.permute.xlu2 %1383 }
 0x186   : > { %5741 = vst [vmem:[#allocation55_spill] sm:$0xff] %v4091_v5  ;;  %v4093_v59 = vpop.permute.xlu1 %1321  ;;  %v5762_v5 = vld [vmem:[#allocation86_spill] sm:$0xff] }
 0x187   : > { %5742 = vst [vmem:[#allocation160_spill] sm:$0xff] %v4093_v59  ;;  %v4095_v6 = vpop.permute.xlu0 %1319 }
 0x188   : > { %5743 = vst [vmem:[#allocation161_spill] sm:$0xff] %v4095_v6  ;;  %v5748_v6 = vld [vmem:[#allocation63_spill] sm:$0xff] }
 0x18b   : > { %1496 = vrot.lane.b32.xlu2 %v5744_v53, %s2824_s11  ;;  %v5749_v53 = vld [vmem:[#allocation64_spill] sm:$0xff] }
 0x18c   : > { %1494 = vrot.lane.b32.xlu1 %v5745_v20, %s2824_s11 }
 0x18d   : > { %1492 = vrot.lane.b32.xlu0 %v5746_v24, %s2824_s11  ;;  %v4103_v54 = vpop.permute.xlu2 %1389 }
 0x18e   : > { %5747 = vst [vmem:[#allocation162_spill] sm:$0xff] %v4103_v54  ;;  %v4105_v1 = vpop.permute.xlu1 %1327 }
 0x18f   : > { %v4107_v12 = vpop.permute.xlu0 %1325 }
 0x193   : > { %1502 = vrot.lane.b32.xlu2 %v3621_v33, %s2824_s11 }
 0x194   : > { %1500 = vrot.lane.b32.xlu1 %v5748_v6, %s2824_s11 }
 0x195   : > { %1498 = vrot.lane.b32.xlu0 %v5749_v53, %s2824_s11  ;;  %v4115_v59 = vpop.permute.xlu2 %1395 }
 0x196   : > { %5750 = vst [vmem:[#allocation163_spill] sm:$0xff] %v4115_v59  ;;  %v4117_v20 = vpop.permute.xlu1 %1375  ;;  %v5754_v59 = vld [vmem:[#allocation74_spill] sm:$0xff] }
 0x197   : > { %v4119_v24 = vpop.permute.xlu0 %1373 }
 0x19b   : > { %1508 = vrot.lane.b32.xlu2 %v3646_v4, %s2824_s11  ;;  %v5755_v4 = vld [vmem:[#allocation75_spill] sm:$0xff] }
 0x19c   : > { %1506 = vrot.lane.b32.xlu1 %v5751_v63, %s2824_s11 }
 0x19d   : > { %1504 = vrot.lane.b32.xlu0 %v5752_v28, %s2824_s11  ;;  %v4127_v54 = vpop.permute.xlu2 %1401 }
 0x19e   : > { %5753 = vst [vmem:[#allocation164_spill] sm:$0xff] %v4127_v54  ;;  %v4129_v6 = vpop.permute.xlu1 %1381 }
 0x19f   : > { %v4131_v53 = vpop.permute.xlu0 %1379 }
 0x1a3   : > { %1514 = vrot.lane.b32.xlu2 %v3671_v44, %s2824_s11  ;;  %v5758_v44 = vld [vmem:[#allocation80_spill] sm:$0xff] }
 0x1a4   : > { %1512 = vrot.lane.b32.xlu1 %v5754_v59, %s2824_s11 }
 0x1a5   : > { %1510 = vrot.lane.b32.xlu0 %v5755_v4, %s2824_s11  ;;  %v4139_v57 = vpop.permute.xlu2 %1407 }
 0x1a6   : > { %5756 = vst [vmem:[#allocation165_spill] sm:$0xff] %v4139_v57  ;;  %v4141_v63 = vpop.permute.xlu1 %1387  ;;  %v5761_v57 = vld [vmem:[#allocation85_spill] sm:$0xff] }
 0x1a7   : > { %v4143_v28 = vpop.permute.xlu0 %1385 }
 0x1a8   : > { %5757 = vst [vmem:[#allocation166_spill] sm:$0xff] %v4143_v28 }
 0x1ab   : > { %1520 = vrot.lane.b32.xlu2 %v3695_v42, %s2824_s11 }
 0x1ac   : > { %1518 = vrot.lane.b32.xlu1 %v3665_v15, %s2824_s11 }
 0x1ad   : > { %1516 = vrot.lane.b32.xlu0 %v5758_v44, %s2824_s11  ;;  %v4151_v54 = vpop.permute.xlu2 %1413 }
 0x1ae   : > { %5759 = vst [vmem:[#allocation167_spill] sm:$0xff] %v4151_v54  ;;  %v4153_v59 = vpop.permute.xlu1 %1393  ;;  %v1472_v54 = vrot.slane %v3897_v36, 2 }
 0x1af   : > { %v4155_v4 = vpop.permute.xlu0 %1391 }
 0x1b0   : > { %5760 = vst [vmem:[#allocation168_spill] sm:$0xff] %v4155_v4  ;;  %v1474_v4 = vrot.slane %v3893_v0, 2 }
 0x1b3   : > { %1526 = vrot.lane.b32.xlu2 %v3720_v51, %s2824_s11  ;;  %v1470_v51 = vrot.slane %v3901_v43, 2 }
 0x1b4   : > { %1524 = vrot.lane.b32.xlu1 %v5761_v57, %s2824_s11 }
 0x1b5   : > { %1522 = vrot.lane.b32.xlu0 %v5762_v5, %s2824_s11  ;;  %v4163_v28 = vpop.permute.xlu2 %1419  ;;  %v4189_v13 = vsel %vm1094_vm1, %v1470_v51, %v1472_v54 }
 0x1b6   : > { %5763 = vst [vmem:[#allocation169_spill] sm:$0xff] %v4163_v28  ;;  %v4165_v42 = vpop.permute.xlu1 %1399  ;;  %v1469_v28 = vrot.slane %v3874_v40, 2 }
 0x1b7   : > { %v4167_v44 = vpop.permute.xlu0 %1397 }
 0x1b8   : > { %5764 = vst [vmem:[#allocation170_spill] sm:$0xff] %v4167_v44 }
 0x1bb   : > { %1532 = vrot.lane.b32.xlu2 %v3736_v21, %s2824_s11  ;;  %v4186_v21 = vsel %vm1094_vm1, %v1472_v54, %v1474_v4 }
 0x1bc   : > { %1530 = vrot.lane.b32.xlu1 %v3714_v39, %s2824_s11  ;;  %5767 = vst [vmem:[#allocation173_spill] sm:$0xff] %v4186_v21  ;;  %v4192_v39 = vsel %vm1094_vm1, %v1469_v28, %v1470_v51 }
 0x1bd   : > { %1528 = vrot.lane.b32.xlu0 %v3717_v49, %s2824_s11  ;;  %v4178_v57 = vpop.permute.xlu2 %1425 }
 0x1be   : > { %5765 = vst [vmem:[#allocation171_spill] sm:$0xff] %v4178_v57  ;;  %v4181_v5 = vpop.permute.xlu1 %1405 }
 0x1bf   : > { %v4183_v44 = vpop.permute.xlu0 %1403 }
 0x1c0   : > { %5766 = vst [vmem:[#allocation172_spill] sm:$0xff] %v4183_v44  ;;  %v1476_v44 = vrot.slane %v4039_v29, 2 }
 0x1c2   : > { %v4208_v51 = vsel %vm1094_vm1, %v1474_v4, %v1476_v44 }
 0x1c3   : > { %1538 = vrot.lane.b32.xlu2 %v4186_v21, %s2824_s11  ;;  %5770 = vst [vmem:[#allocation176_spill] sm:$0xff] %v4208_v51 }
 0x1c4   : > { %1536 = vrot.lane.b32.xlu1 %v4189_v13, %s2824_s11 }
 0x1c5   : > { %1534 = vrot.lane.b32.xlu0 %v4192_v39, %s2824_s11  ;;  %v4200_v49 = vpop.permute.xlu2 %1431 }
 0x1c6   : > { %v4202_v57 = vpop.permute.xlu1 %1411 }
 0x1c7   : > { %5768 = vst [vmem:[#allocation174_spill] sm:$0xff] %v4202_v57  ;;  %v4205_v54 = vpop.permute.xlu0 %1409  ;;  %v378_v57 = vld [vmem:[%s2925_s14 + $0x180] sm:$0xff] }
 0x1c8   : > { %5769 = vst [vmem:[#allocation175_spill] sm:$0xff] %v4205_v54 }
 0x1cb   : > { %1580 = vrot.lane.b32.xlu2 %v3087_v31, %s2825_s12 }
 0x1cc   : > { %1578 = vrot.lane.b32.xlu1 %v3083_v30, %s2825_s12  ;;  %v377_v30 = vld [vmem:[%s2925_s14 + $0x178] sm:$0xff] }
 0x1cd   : > { %1540 = vrot.lane.b32.xlu0 %v4208_v51, %s2824_s11  ;;  %v4216_v28 = vpop.permute.xlu2 %1478 }
 0x1ce   : > { %v4218_v21 = vpop.permute.xlu1 %1417 }
 0x1cf   : > { %5771 = vst [vmem:[#allocation177_spill] sm:$0xff] %v4218_v21  ;;  %v4220_v29 = vpop.permute.xlu0 %1415 }
 0x1d0   : > { %5772 = vst [vmem:[#allocation178_spill] sm:$0xff] %v4220_v29 }
 0x1d3   : > { %1586 = vrot.lane.b32.xlu2 %v3198_v50, %s2825_s12  ;;  %v5785_v50 = vld [vmem:[#allocation45_spill] sm:$0xff] }
 0x1d4   : > { %1584 = vrot.lane.b32.xlu1 %v3123_v62, %s2825_s12 }
 0x1d5   : > { %1582 = vrot.lane.b32.xlu0 %v3134_v11, %s2825_s12  ;;  %v4228_v4 = vpop.permute.xlu2 %1484 }
 0x1d6   : > { %v4230_v44 = vpop.permute.xlu1 %1423 }
 0x1d7   : > { %5773 = vst [vmem:[#allocation179_spill] sm:$0xff] %v4230_v44  ;;  %v4232_v51 = vpop.permute.xlu0 %1421 }
 0x1d8   : > { %5774 = vst [vmem:[#allocation180_spill] sm:$0xff] %v4232_v51 }
 0x1db   : > { %1592 = vrot.lane.b32.xlu2 %v3177_v35, %s2825_s12 }
 0x1dc   : > { %1590 = vrot.lane.b32.xlu1 %v3173_v34, %s2825_s12 }
 0x1dd   : > { %1588 = vrot.lane.b32.xlu0 %v3192_v48, %s2825_s12  ;;  %v4240_v29 = vpop.permute.xlu2 %1490 }
 0x1de   : > { %v4242_v54 = vpop.permute.xlu1 %1429 }
 0x1df   : > { %5775 = vst [vmem:[#allocation181_spill] sm:$0xff] %v4242_v54  ;;  %v4244_v21 = vpop.permute.xlu0 %1427 }
 0x1e0   : > { %5776 = vst [vmem:[#allocation182_spill] sm:$0xff] %v4244_v21 }
 0x1e3   : > { %1598 = vrot.lane.b32.xlu2 %v3243_v26, %s2825_s12 }
 0x1e4   : > { %1596 = vrot.lane.b32.xlu1 %v3239_v25, %s2825_s12 }
 0x1e5   : > { %1594 = vrot.lane.b32.xlu0 %v3250_v22, %s2825_s12  ;;  %v4252_v51 = vpop.permute.xlu2 %1496 }
 0x1e6   : > { %5777 = vst [vmem:[#allocation183_spill] sm:$0xff] %v4252_v51  ;;  %v4254_v44 = vpop.permute.xlu1 %1435 }
 0x1e7   : > { %v4256_v34 = vpop.permute.xlu0 %1433 }
 0x1eb   : > { %1604 = vrot.lane.b32.xlu2 %v3294_v23, %s2825_s12 }
 0x1ec   : > { %1602 = vrot.lane.b32.xlu1 %v3286_v19, %s2825_s12 }
 0x1ed   : > { %1600 = vrot.lane.b32.xlu0 %v3305_v8, %s2825_s12  ;;  %v4264_v21 = vpop.permute.xlu2 %1502 }
 0x1ee   : > { %5778 = vst [vmem:[#allocation184_spill] sm:$0xff] %v4264_v21  ;;  %v4266_v54 = vpop.permute.xlu1 %1482  ;;  %v375_v21 = vld [vmem:[%s2925_s14 + $0x168] sm:$0xff] }
 0x1ef   : > { %v4268_v25 = vpop.permute.xlu0 %1480 }
 0x1f3   : > { %1610 = vrot.lane.b32.xlu2 %v3407_v17, %s2825_s12  ;;  %v5780_v17 = vld [vmem:[#allocation41_spill] sm:$0xff] }
 0x1f4   : > { %1608 = vrot.lane.b32.xlu1 %v3335_v27, %s2825_s12 }
 0x1f5   : > { %1606 = vrot.lane.b32.xlu0 %v3346_v60, %s2825_s12  ;;  %v4276_v19 = vpop.permute.xlu2 %1508 }
 0x1f6   : > { %5779 = vst [vmem:[#allocation185_spill] sm:$0xff] %v4276_v19  ;;  %v4278_v23 = vpop.permute.xlu1 %1488 }
 0x1f7   : > { %v4280_v26 = vpop.permute.xlu0 %1486 }
 0x1fb   : > { %1616 = vrot.lane.b32.xlu2 %v3389_v9, %s2825_s12  ;;  %v5783_v9 = vld [vmem:[#allocation2_spill] sm:$0xff] }
 0x1fc   : > { %1614 = vrot.lane.b32.xlu1 %v3385_v61, %s2825_s12  ;;  %v548_v62 = vadd.s32 9, %v5783_v9  ;;  %v5784_v61 = vld [vmem:[#allocation44_spill] sm:$0xff] }
 0x1fd   : > { %1612 = vrot.lane.b32.xlu0 %v5780_v17, %s2825_s12  ;;  %v4288_v27 = vpop.permute.xlu2 %1514  ;;  %v429_v17 = vmul.f32 %v3831_v41, %v375_v21  ;;  %v376_v21 = vld [vmem:[%s2925_s14 + $0x170] sm:$0xff] }
 0x1fe   : > { %5781 = vst [vmem:[#allocation186_spill] sm:$0xff] %v4288_v27  ;;  %v4290_v35 = vpop.permute.xlu1 %1494  ;;  %vm564_vm10 = vcmp.ge.s32.totalorder %v548_v62, 1  ;;  %vm574_vm11 = vcmp.le.s32.totalorder %v548_v62, 32 }
 0x1ff   : > { %5782 = vst [vmem:[#allocation187_spill] sm:$0xff] %v4290_v35  ;;  %v4292_v19 = vpop.permute.xlu0 %1492  ;;  %v483_v51 = vadd.f32 %v3845_v46, %v429_v17  ;;  %vm4311_vm12 = vmand %vm564_vm10, %vm574_vm11  ;;  %v431_v17 = vmul.f32 %v3831_v41, %v377_v30  ;;  %vm2229_vm10 = vcmask 588800   ;;  %vm2276_vm11 = vcmask 621568  }
 0x200   : > { %vm665_vm13 = vmand %vm4311_vm12, %vm585_vm5  ;;  %vm1885_vm5 = vcmask 64512  }
 0x203   : > { %1622 = vrot.lane.b32.xlu2 %v3446_v16, %s2825_s12 }
 0x204   : > { %1620 = vrot.lane.b32.xlu1 %v5784_v61, %s2825_s12 }
 0x205   : > { %1618 = vrot.lane.b32.xlu0 %v5785_v50, %s2825_s12  ;;  %v4303_v27 = vpop.permute.xlu2 %1520  ;;  %v432_v50 = vmul.f32 %v3831_v41, %v378_v57 }
 0x206   : > { %5786 = vst [vmem:[#allocation2_spill] sm:$0xff] %v4303_v27  ;;  %v4305_v60 = vpop.permute.xlu1 %1500  ;;  %v533_v27 = vmax.f32 %v483_v51, 0.0 }
 0x207   : > { %5787 = vst [vmem:[#allocation44_spill] sm:$0xff] %v4305_v60  ;;  %v4307_v35 = vpop.permute.xlu0 %1498  ;;  %v486_v60 = vadd.f32 %v3845_v46, %v432_v50 }
 0x208   : > { %v4336_v57 = vsel %vm665_vm13, %v533_v27, 0.0  ;;  %vm734_vm13 = vmand %vm4311_vm12, %vm674_vm9 }
 0x209   : > { %v536_v30 = vmax.f32 %v486_v60, 0.0 }
 0x20b   : > { %1628 = vrot.lane.b32.xlu2 %v3901_v43, %s2825_s12 }
 0x20c   : > { %1626 = vrot.lane.b32.xlu1 %v3874_v40, %s2825_s12  ;;  %v430_v40 = vmul.f32 %v3831_v41, %v376_v21 }
 0x20d   : > { %1624 = vrot.lane.b32.xlu0 %v3482_v18, %s2825_s12  ;;  %v4324_v62 = vpop.permute.xlu2 %1526 }
 0x20e   : > { %5790 = vst [vmem:[#allocation188_spill] sm:$0xff] %v4324_v62  ;;  %v4331_v43 = vpop.permute.xlu1 %1506  ;;  %v485_v62 = vadd.f32 %v3845_v46, %v431_v17  ;;  %v484_v3 = vadd.f32 %v3845_v46, %v430_v40  ;;  %v4356_v46 = vsel %vm4311_vm12, %v536_v30, 0.0 }
 0x20f   : > { %5791 = vst [vmem:[#allocation189_spill] sm:$0xff] %v4331_v43  ;;  %v4334_v51 = vpop.permute.xlu0 %1504 }
 0x210   : > { %v535_v27 = vmax.f32 %v485_v62, 0.0  ;;  %v534_v50 = vmax.f32 %v484_v3, 0.0 }
 0x212   : > { %v4360_v60 = vsel %vm4311_vm12, %v535_v27, 0.0  ;;  %v4367_v62 = vsel %vm4311_vm12, %v534_v50, 0.0  ;;  %v5794_v50 = vld [vmem:[#allocation9_spill] sm:$0xff] }
 0x213   : > { %1634 = vrot.lane.b32.xlu2 %v4336_v57, %s2825_s12 }
 0x214   : > { %1632 = vrot.lane.b32.xlu1 %v3893_v0, %s2825_s12  ;;  %v5792_v0 = vld [vmem:[#allocation109_spill] sm:$0xff] }
 0x215   : > { %1630 = vrot.lane.b32.xlu0 %v3897_v36, %s2825_s12  ;;  %v4347_v41 = vpop.permute.xlu2 %1532  ;;  %v1916_v36 = vsel %vm1885_vm5, %v3446_v16, %v5792_v0 }
 0x216   : > { %v4349_v21 = vpop.permute.xlu1 %1512  ;;  %v1949_v17 = vsel %vm1918_vm14, %v1916_v36, %v3909_v37  ;;  %v5795_v36 = vld [vmem:[#allocation112_spill] sm:$0xff] }
 0x217   : > { %v4351_v43 = vpop.permute.xlu0 %1510  ;;  %v1982_v40 = vsel %vm1951_vm15, %v1949_v17, %v4105_v1  ;;  %v5793_v1 = vld [vmem:[#allocation68_spill] sm:$0xff] }
 0x218   : > { %v2015_v16 = vsel %vm1984_vm0, %v1982_v40, %v4256_v34  ;;  %v1887_v0 = vsel %vm1885_vm5, %v5794_v50, %v5793_v1 }
 0x219   : > { %v1920_v17 = vsel %vm1918_vm14, %v1887_v0, %v5795_v36  ;;  %v5797_v0 = vld [vmem:[#allocation51_spill] sm:$0xff] }
 0x21a   : > { %v1953_v34 = vsel %vm1951_vm15, %v1920_v17, %v3921_v38  ;;  %v5800_v17 = vld [vmem:[#allocation15_spill] sm:$0xff] }
 0x21b   : > { %1640 = vrot.lane.b32.xlu2 %v4356_v46, %s2825_s12  ;;  %v1986_v40 = vsel %vm1984_vm0, %v1953_v34, %v4117_v20  ;;  %v5798_v20 = vld [vmem:[#allocation4_spill] sm:$0xff] }
 0x21c   : > { %1638 = vrot.lane.b32.xlu1 %v4360_v60, %s2825_s12  ;;  %v1890_v36 = vsel %vm1885_vm5, %v5798_v20, %v5797_v0  ;;  %v5801_v0 = vld [vmem:[#allocation72_spill] sm:$0xff] }
 0x21d   : > { %1636 = vrot.lane.b32.xlu0 %v4367_v62, %s2825_s12  ;;  %v1539_v37 = vpop.permute.xlu2 %1538  ;;  %v5802_v20 = vld [vmem:[#allocation12_spill] sm:$0xff] }
 0x21e   : > { %v4381_v3 = vpop.permute.xlu1 %1518  ;;  %v4384_v30 = vsel %vm2017_vm2, %v2015_v16, %v1539_v37  ;;  %v2019_v16 = vsel %vm2017_vm2, %v1986_v40, %v4268_v25  ;;  %v5796_v37 = vld [vmem:[#allocation13_spill] sm:$0xff] }
 0x21f   : > { %v4386_v27 = vpop.permute.xlu0 %1516 }
 0x223   : > { %1688 = vrot.lane.b32.xlu2 %v5698_v45, %s2826_s21 }
 0x224   : > { %1686 = vrot.lane.b32.xlu1 %v3188_v47, %s2826_s21  ;;  %v5799_v47 = vld [vmem:[#allocation115_spill] sm:$0xff] }
 0x225   : > { %1684 = vrot.lane.b32.xlu0 %v5796_v37, %s2826_s21  ;;  %v1581_v38 = vpop.permute.xlu2 %1580  ;;  %v1923_v25 = vsel %vm1918_vm14, %v1890_v36, %v5799_v47  ;;  %v1893_v36 = vsel %vm1885_vm5, %v5802_v20, %v5801_v0  ;;  %v2157_v47 = vld [vmem:[%s4429_s29 + $0x40] sm:$0xff] }
 0x226   : > { %v4406_v1 = vpop.permute.xlu1 %1524  ;;  %v4409_v45 = vsel %vm2050_vm4, %v2019_v16, %v1581_v38  ;;  %v1956_v34 = vsel %vm1951_vm15, %v1923_v25, %v5800_v17  ;;  %v2161_v38 = vld [vmem:[%s4429_s29 + $0x60] sm:$0xff] }
 0x227   : > { %v4411_v50 = vpop.permute.xlu0 %1522  ;;  %v1989_v40 = vsel %vm1984_vm0, %v1956_v34, %v4129_v6  ;;  %v5803_v25 = vld [vmem:[#allocation118_spill] sm:$0xff]  ;;  %v5805_v34 = vld [vmem:[#allocation17_spill] sm:$0xff] }
 0x228   : > { %v2022_v16 = vsel %vm2017_vm2, %v1989_v40, %v4280_v26  ;;  %v1926_v26 = vsel %vm1918_vm14, %v1893_v36, %v5803_v25  ;;  %v5804_v17 = vld [vmem:[#allocation94_spill] sm:$0xff] }
 0x229   : > { %v1959_v40 = vsel %vm1951_vm15, %v1926_v26, %v5805_v34  ;;  %v5810_v34 = vld [vmem:[#allocation121_spill] sm:$0xff] }
 0x22a   : > { %v1992_v0 = vsel %vm1984_vm0, %v1959_v40, %v4141_v63  ;;  %v5811_v40 = vld [vmem:[#allocation98_spill] sm:$0xff] }
 0x22b   : > { %1821 = vrot.lane.b32.xlu2 %v3665_v15, %s2827_s18 }
 0x22c   : > { %1732 = vrot.lane.b32.xlu1 %v4037_v32, %s2826_s21 }
 0x22d   : > { %1716 = vrot.lane.b32.xlu0 %v3449_v56, %s2826_s21  ;;  %v1587_v15 = vpop.permute.xlu2 %1586  ;;  %v1915_v56 = vsel %vm1885_vm5, %v5784_v61, %v5804_v17  ;;  %v2025_v61 = vsel %vm2017_vm2, %v1992_v0, %v4292_v19  ;;  %v5808_v17 = vld [vmem:[#allocation62_spill] sm:$0xff]  ;;  %v5812_v0 = vld [vmem:[#allocation108_spill] sm:$0xff] }
 0x22e   : > { %v4435_v37 = vpop.permute.xlu1 %1530  ;;  %v4438_v6 = vsel %vm2050_vm4, %v2022_v16, %v1587_v15  ;;  %v5806_v16 = vld [vmem:[#allocation134_spill] sm:$0xff] }
 0x22f   : > { %v4440_v32 = vpop.permute.xlu0 %1528  ;;  %v1948_v15 = vsel %vm1918_vm14, %v1915_v56, %v5806_v16  ;;  %v5809_v56 = vld [vmem:[#allocation8_spill] sm:$0xff] }
 0x230   : > { %v1981_v20 = vsel %vm1951_vm15, %v1948_v15, %v4107_v12  ;;  %v5807_v12 = vld [vmem:[#allocation78_spill] sm:$0xff] }
 0x231   : > { %v1896_v19 = vsel %vm1885_vm5, %v3134_v11, %v5807_v12  ;;  %v1917_v11 = vsel %vm1885_vm5, %v3482_v18, %v5812_v0  ;;  %v5815_v18 = vld [vmem:[#allocation28_spill] sm:$0xff] }
 0x233   : > { %2205 = vrot.lane.b32.xlu2 %v2161_v38, %s2828_s30  ;;  %v2014_v38 = vsel %vm1984_vm0, %v1981_v20, %v4200_v49  ;;  %v1929_v49 = vsel %vm1918_vm14, %v1896_v19, %v5810_v34  ;;  %v5813_v20 = vld [vmem:[#allocation136_spill] sm:$0xff]  ;;  %v2149_v34 = vld [vmem:[%s4429_s29] sm:$0xff] }
 0x234   : > { %2197 = vrot.lane.b32.xlu1 %v2157_v47, %s2828_s30  ;;  %v1962_v15 = vsel %vm1951_vm15, %v1929_v49, %v3957_v55  ;;  %v5816_v49 = vld [vmem:[#allocation83_spill] sm:$0xff] }
 0x235   : > { %1837 = vrot.lane.b32.xlu0 %v4192_v39, %s2827_s18  ;;  %v1593_v36 = vpop.permute.xlu2 %1592  ;;  %v1886_v39 = vsel %vm1885_vm5, %v5809_v56, %v5808_v17 }
 0x236   : > { %v1537_v25 = vpop.permute.xlu1 %1536  ;;  %v4469_v26 = vsel %vm2050_vm4, %v2025_v61, %v1593_v36  ;;  %v1919_v16 = vsel %vm1918_vm14, %v1886_v39, %v5811_v40  ;;  %v1995_v36 = vsel %vm1984_vm0, %v1962_v15, %v4153_v59  ;;  %v5818_v40 = vld [vmem:[#allocation7_spill] sm:$0xff]  ;;  %v5819_v15 = vld [vmem:[#allocation124_spill] sm:$0xff] }
 0x237   : > { %v4472_v63 = vsel %vm2017_vm2, %v2014_v38, %v1537_v25  ;;  %v4474_v47 = vpop.permute.xlu0 %1534  ;;  %v1952_v61 = vsel %vm1951_vm15, %v1919_v16, %v5813_v20  ;;  %v5814_v38 = vld [vmem:[#allocation137_spill] sm:$0xff]  ;;  %v2028_v25 = vsel %vm2017_vm2, %v1995_v36, %v4307_v35 }
 0x238   : > { %v1950_v55 = vsel %vm1918_vm14, %v1917_v11, %v5814_v38  ;;  %v5821_v11 = vld [vmem:[#allocation6_spill] sm:$0xff] }
 0x239   : > { %v1983_v19 = vsel %vm1951_vm15, %v1950_v55, %v4067_v58  ;;  %v1899_v58 = vsel %vm1885_vm5, %v3192_v48, %v5816_v49  ;;  %v5823_v48 = vld [vmem:[#allocation111_spill] sm:$0xff]  ;;  %v5826_v49 = vld [vmem:[#allocation89_spill] sm:$0xff] }
 0x23a   : > { %v1932_v0 = vsel %vm1918_vm14, %v1899_v58, %v5819_v15  ;;  %v5827_v58 = vld [vmem:[#allocation73_spill] sm:$0xff]  ;;  %v2153_v15 = vld [vmem:[%s4429_s29 + $0x20] sm:$0xff] }
 0x23b   : > { %1805 = vrot.lane.b32.xlu2 %v3621_v33, %s2827_s18  ;;  %v1985_v33 = vsel %vm1984_vm0, %v1952_v61, %v4119_v24  ;;  %v2016_v24 = vsel %vm1984_vm0, %v1983_v19, %v4254_v44  ;;  %v5820_v44 = vld [vmem:[#allocation61_spill] sm:$0xff]  ;;  %v1965_v38 = vsel %vm1951_vm15, %v1932_v0, %v3969_v2 }
 0x23c   : > { %1789 = vrot.lane.b32.xlu1 %v5740_v52, %s2827_s18  ;;  %v2018_v59 = vsel %vm2017_vm2, %v1985_v33, %v4216_v28  ;;  %v5817_v28 = vld [vmem:[#allocation67_spill] sm:$0xff]  ;;  %v1888_v20 = vsel %vm1885_vm5, %v5821_v11, %v5820_v44  ;;  %v5822_v61 = vld [vmem:[#allocation101_spill] sm:$0xff]  ;;  %v5824_v33 = vld [vmem:[#allocation138_spill] sm:$0xff] }
 0x23d   : > { %1700 = vrot.lane.b32.xlu0 %v5815_v18, %s2826_s21  ;;  %v1599_v12 = vpop.permute.xlu2 %1598  ;;  %v1889_v16 = vsel %vm1885_vm5, %v5818_v40, %v5817_v28  ;;  %v1921_v55 = vsel %vm1918_vm14, %v1888_v20, %v5823_v48  ;;  %v1998_v18 = vsel %vm1984_vm0, %v1965_v38, %v4165_v42  ;;  %v5829_v40 = vld [vmem:[#allocation127_spill] sm:$0xff]  ;;  %v5831_v0 = vld [vmem:[#allocation5_spill] sm:$0xff]  ;;  %v5832_v11 = vld [vmem:[#allocation104_spill] sm:$0xff] }
 0x23e   : > { %v1579_v52 = vpop.permute.xlu1 %1578  ;;  %v4512_v17 = vsel %vm2050_vm4, %v2028_v25, %v1599_v12  ;;  %v1922_v36 = vsel %vm1918_vm14, %v1889_v16, %v5822_v61  ;;  %v5825_v12 = vld [vmem:[#allocation139_spill] sm:$0xff]  ;;  %v5833_v61 = vld [vmem:[#allocation140_spill] sm:$0xff]  ;;  %v5835_v48 = vld [vmem:[#allocation141_spill] sm:$0xff] }
 0x23f   : > { %v4517_v56 = vsel %vm2050_vm4, %v2018_v59, %v1579_v52  ;;  %v1541_v35 = vpop.permute.xlu0 %1540  ;;  %v1955_v25 = vsel %vm1951_vm15, %v1922_v36, %v5824_v33  ;;  %v1954_v19 = vsel %vm1951_vm15, %v1921_v55, %v5825_v12  ;;  %v2031_v59 = vsel %vm2017_vm2, %v1998_v18, %v4334_v51  ;;  %v5837_v18 = vld [vmem:[#allocation142_spill] sm:$0xff] }
 0x240   : > { %v4520_v39 = vsel %vm2017_vm2, %v2016_v24, %v1541_v35  ;;  %v1988_v2 = vsel %vm1984_vm0, %v1955_v25, %v4131_v53  ;;  %v1987_v42 = vsel %vm1984_vm0, %v1954_v19, %v4079_v10  ;;  %v1902_v10 = vsel %vm1885_vm5, %v3250_v22, %v5826_v49  ;;  %v5834_v22 = vld [vmem:[#allocation114_spill] sm:$0xff]  ;;  %v5836_v25 = vld [vmem:[#allocation87_spill] sm:$0xff] }
 0x241   : > { %v2020_v53 = vsel %vm2017_vm2, %v1987_v42, %v4266_v54  ;;  %v1935_v16 = vsel %vm1918_vm14, %v1902_v10, %v5829_v40  ;;  %v5830_v54 = vld [vmem:[#allocation53_spill] sm:$0xff]  ;;  %v5838_v19 = vld [vmem:[#allocation166_spill] sm:$0xff]  ;;  %v5840_v10 = vld [vmem:[#allocation95_spill] sm:$0xff] }
 0x242   : > { %v1891_v44 = vsel %vm1885_vm5, %v5831_v0, %v5830_v54  ;;  %v1968_v36 = vsel %vm1951_vm15, %v1935_v16, %v5833_v61  ;;  %v5842_v40 = vld [vmem:[#allocation129_spill] sm:$0xff]  ;;  %v5844_v54 = vld [vmem:[#allocation11_spill] sm:$0xff] }
 0x243   : > { %2181 = vrot.lane.b32.xlu2 %v2149_v34, %s2828_s30  ;;  %v1924_v38 = vsel %vm1918_vm14, %v1891_v44, %v5834_v22  ;;  %v2001_v33 = vsel %vm1984_vm0, %v1968_v36, %v4181_v5  ;;  %v5845_v44 = vld [vmem:[#allocation107_spill] sm:$0xff]  ;;  %v5848_v36 = vld [vmem:[#allocation117_spill] sm:$0xff]  ;;  %v5849_v22 = vld [vmem:[#allocation144_spill] sm:$0xff] }
 0x244   : > { %1734 = vrot.lane.b32.xlu1 %v4034_v7, %s2826_s21  ;;  %v2021_v7 = vsel %vm2017_vm2, %v1988_v2, %v4228_v4  ;;  %v5828_v4 = vld [vmem:[#allocation10_spill] sm:$0xff]  ;;  %v1957_v12 = vsel %vm1951_vm15, %v1924_v38, %v5837_v18  ;;  %v5852_v18 = vld [vmem:[#allocation168_spill] sm:$0xff] }
 0x245   : > { %1718 = vrot.lane.b32.xlu0 %v3438_v14, %s2826_s21  ;;  %v1605_v52 = vpop.permute.xlu2 %1604  ;;  %v1892_v28 = vsel %vm1885_vm5, %v5828_v4, %v5827_v58  ;;  %v1905_v58 = vsel %vm1885_vm5, %v3305_v8, %v5840_v10  ;;  %v2162_v4 = vld [vmem:[%s4429_s29 + $0x68] sm:$0xff]  ;;  %v5847_v8 = vld [vmem:[#allocation26_spill] sm:$0xff] }
 0x246   : > { %v1585_v24 = vpop.permute.xlu1 %1584  ;;  %v4560_v35 = vsel %vm2050_vm4, %v2031_v59, %v1605_v52  ;;  %v1925_v20 = vsel %vm1918_vm14, %v1892_v28, %v5832_v11  ;;  %v5839_v52 = vld [vmem:[#allocation55_spill] sm:$0xff]  ;;  %v1938_v16 = vsel %vm1918_vm14, %v1905_v58, %v5842_v40  ;;  %v5858_v40 = vld [vmem:[#allocation84_spill] sm:$0xff] }
 0x247   : > { %v4565_v34 = vsel %vm2050_vm4, %v2021_v7, %v1585_v24  ;;  %v1583_v51 = vpop.permute.xlu0 %1582  ;;  %v1958_v55 = vsel %vm1951_vm15, %v1925_v20, %v5835_v48  ;;  %v1990_v5 = vsel %vm1984_vm0, %v1957_v12, %v5839_v52  ;;  %v5846_v20 = vld [vmem:[#allocation143_spill] sm:$0xff]  ;;  %v5850_v48 = vld [vmem:[#allocation174_spill] sm:$0xff] }
 0x248   : > { %v4568_v14 = vsel %vm2050_vm4, %v2020_v53, %v1583_v51  ;;  %v1991_v2 = vsel %vm1984_vm0, %v1958_v55, %v5838_v19  ;;  %v2023_v53 = vsel %vm2017_vm2, %v1990_v5, %v4278_v23  ;;  %v2158_v23 = vld [vmem:[%s4429_s29 + $0x48] sm:$0xff]  ;;  %v1971_v61 = vsel %vm1951_vm15, %v1938_v16, %v5846_v20  ;;  %v5859_v16 = vld [vmem:[#allocation20_spill] sm:$0xff]  ;;  %v5863_v20 = vld [vmem:[#allocation110_spill] sm:$0xff] }
 0x249   : > { %v2024_v42 = vsel %vm2017_vm2, %v1991_v2, %v4240_v29  ;;  %v5841_v29 = vld [vmem:[#allocation79_spill] sm:$0xff]  ;;  %v2004_v55 = vsel %vm1984_vm0, %v1971_v61, %v5850_v48 }
 0x24a   : > { %v1895_v28 = vsel %vm1885_vm5, %v3087_v31, %v5841_v29  ;;  %v2037_v19 = vsel %vm2017_vm2, %v2004_v55, %v4386_v27  ;;  %v5854_v52 = vld [vmem:[#allocation183_spill] sm:$0xff]  ;;  %v5857_v29 = vld [vmem:[#allocation34_spill] sm:$0xff] }
 0x24b   : > { %1839 = vrot.lane.b32.xlu2 %v4189_v13, %s2827_s18  ;;  %v2034_v13 = vsel %vm2017_vm2, %v2001_v33, %v4351_v43  ;;  %v1928_v11 = vsel %vm1918_vm14, %v1895_v28, %v5845_v44  ;;  %v5851_v33 = vld [vmem:[#allocation145_spill] sm:$0xff]  ;;  %v5862_v44 = vld [vmem:[#allocation14_spill] sm:$0xff]  ;;  %v5867_v48 = vld [vmem:[#allocation147_spill] sm:$0xff] }
 0x24c   : > { %1823 = vrot.lane.b32.xlu1 %v5836_v25, %s2827_s18  ;;  %v1961_v38 = vsel %vm1951_vm15, %v1928_v11, %v5849_v22  ;;  %v5866_v22 = vld [vmem:[#allocation120_spill] sm:$0xff] }
 0x24d   : > { %2189 = vrot.lane.b32.xlu0 %v2153_v15, %s2828_s30  ;;  %v1611_v59 = vpop.permute.xlu2 %1610  ;;  %v5843_v15 = vld [vmem:[#allocation56_spill] sm:$0xff]  ;;  %v1994_v12 = vsel %vm1984_vm0, %v1961_v38, %v5852_v18  ;;  %v5869_v18 = vld [vmem:[#allocation70_spill] sm:$0xff] }
 0x24e   : > { %v1591_v7 = vpop.permute.xlu1 %1590  ;;  %v4608_v24 = vsel %vm2050_vm4, %v2034_v13, %v1611_v59  ;;  %v1894_v0 = vsel %vm1885_vm5, %v5844_v54, %v5843_v15  ;;  %v5853_v13 = vld [vmem:[#allocation162_spill] sm:$0xff]  ;;  %v2027_v5 = vsel %vm2017_vm2, %v1994_v12, %v5854_v52  ;;  %v5860_v15 = vld [vmem:[#allocation131_spill] sm:$0xff]  ;;  %v5870_v12 = vld [vmem:[#allocation148_spill] sm:$0xff] }
 0x24f   : > { %v4613_v51 = vsel %vm2050_vm4, %v2024_v42, %v1591_v7  ;;  %v1589_v43 = vpop.permute.xlu0 %1588  ;;  %v1927_v31 = vsel %vm1918_vm14, %v1894_v0, %v5848_v36  ;;  %v5861_v0 = vld [vmem:[#allocation60_spill] sm:$0xff]  ;;  %v5872_v52 = vld [vmem:[#allocation54_spill] sm:$0xff] }
 0x250   : > { %v4616_v49 = vsel %vm2050_vm4, %v2023_v53, %v1589_v43  ;;  %v1960_v25 = vsel %vm1951_vm15, %v1927_v31, %v5851_v33  ;;  %v5855_v53 = vld [vmem:[#allocation187_spill] sm:$0xff]  ;;  %v1897_v11 = vsel %vm1885_vm5, %v5862_v44, %v5861_v0  ;;  %v5868_v33 = vld [vmem:[#allocation177_spill] sm:$0xff] }
 0x251   : > { %v1993_v59 = vsel %vm1984_vm0, %v1960_v25, %v5853_v13  ;;  %v5865_v31 = vld [vmem:[#allocation43_spill] sm:$0xff]  ;;  %v1930_v38 = vsel %vm1918_vm14, %v1897_v11, %v5866_v22  ;;  %v5877_v0 = vld [vmem:[#allocation41_spill] sm:$0xff]  ;;  %v5881_v22 = vld [vmem:[#allocation66_spill] sm:$0xff] }
 0x252   : > { %v2026_v43 = vsel %vm2017_vm2, %v1993_v59, %v5855_v53  ;;  %v2150_v11 = vld [vmem:[%s4429_s29 + $0x8] sm:$0xff] }
 0x253   : > { %1702 = vrot.lane.b32.xlu2 %v5847_v8, %s2826_s21  ;;  %v5864_v8 = vld [vmem:[#allocation146_spill] sm:$0xff] }
 0x254   : > { %2207 = vrot.lane.b32.xlu1 %v2162_v4, %s2828_s30  ;;  %v5856_v4 = vld [vmem:[#allocation99_spill] sm:$0xff] }
 0x255   : > { %2199 = vrot.lane.b32.xlu0 %v2158_v23, %s2828_s30  ;;  %v1617_v2 = vpop.permute.xlu2 %1616  ;;  %v1908_v28 = vsel %vm1885_vm5, %v5857_v29, %v5856_v4  ;;  %v1898_v23 = vsel %vm1885_vm5, %v5859_v16, %v5858_v40 }
 0x256   : > { %v1597_v42 = vpop.permute.xlu1 %1596  ;;  %v4656_v7 = vsel %vm2050_vm4, %v2037_v19, %v1617_v2  ;;  %v1941_v54 = vsel %vm1918_vm14, %v1908_v28, %v5860_v15  ;;  %v1931_v61 = vsel %vm1918_vm14, %v1898_v23, %v5863_v20  ;;  %v1963_v19 = vsel %vm1951_vm15, %v1930_v38, %v5870_v12  ;;  %v5871_v2 = vld [vmem:[#allocation170_spill] sm:$0xff]  ;;  %v5875_v28 = vld [vmem:[#allocation44_spill] sm:$0xff]  ;;  %v2154_v15 = vld [vmem:[%s4429_s29 + $0x28] sm:$0xff] }
 0x257   : > { %v4661_v10 = vsel %vm2050_vm4, %v2027_v5, %v1597_v42  ;;  %v1595_v27 = vpop.permute.xlu0 %1594  ;;  %v1974_v36 = vsel %vm1951_vm15, %v1941_v54, %v5864_v8  ;;  %v1964_v55 = vsel %vm1951_vm15, %v1931_v61, %v5867_v48  ;;  %v5873_v42 = vld [vmem:[#allocation163_spill] sm:$0xff]  ;;  %v5876_v54 = vld [vmem:[#allocation102_spill] sm:$0xff] }
 0x258   : > { %v4664_v58 = vsel %vm2050_vm4, %v2026_v43, %v1595_v27  ;;  %v2007_v25 = vsel %vm1984_vm0, %v1974_v36, %v5868_v33  ;;  %v1997_v13 = vsel %vm1984_vm0, %v1964_v55, %v5871_v2  ;;  %v1996_v53 = vsel %vm1984_vm0, %v1963_v19, %v5873_v42  ;;  %v5874_v43 = vld [vmem:[#allocation184_spill] sm:$0xff]  ;;  %v5878_v20 = vld [vmem:[#allocation90_spill] sm:$0xff]  ;;  %v5879_v61 = vld [vmem:[#allocation19_spill] sm:$0xff] }
 0x259   : > { %v2040_v59 = vsel %vm2017_vm2, %v2007_v25, %v4411_v50  ;;  %v2030_v27 = vsel %vm2017_vm2, %v1997_v13, %v5874_v43  ;;  %v2029_v40 = vsel %vm2017_vm2, %v1996_v53, %v5875_v28  ;;  %v1911_v44 = vsel %vm1885_vm5, %v5877_v0, %v5876_v54  ;;  %v5880_v36 = vld [vmem:[#allocation133_spill] sm:$0xff]  ;;  %v5882_v38 = vld [vmem:[#allocation18_spill] sm:$0xff]  ;;  %v5885_v12 = vld [vmem:[#allocation123_spill] sm:$0xff] }
 0x25a   : > { %v1901_v8 = vsel %vm1885_vm5, %v5879_v61, %v5878_v20  ;;  %v1900_v48 = vsel %vm1885_vm5, %v5882_v38, %v5881_v22  ;;  %v5883_v55 = vld [vmem:[#allocation113_spill] sm:$0xff]  ;;  %v5886_v2 = vld [vmem:[#allocation150_spill] sm:$0xff]  ;;  %v5889_v53 = vld [vmem:[#allocation172_spill] sm:$0xff] }
 0x25b   : > { %1720 = vrot.lane.b32.xlu2 %v5865_v31, %s2826_s21  ;;  %v1944_v31 = vsel %vm1918_vm14, %v1911_v44, %v5880_v36  ;;  %v1934_v33 = vsel %vm1918_vm14, %v1901_v8, %v5883_v55  ;;  %v5884_v25 = vld [vmem:[#allocation149_spill] sm:$0xff]  ;;  %v1933_v19 = vsel %vm1918_vm14, %v1900_v48, %v5885_v12  ;;  %v2159_v36 = vld [vmem:[%s4429_s29 + $0x50] sm:$0xff]  ;;  %v5899_v12 = vld [vmem:[#allocation71_spill] sm:$0xff] }
 0x25c   : > { %1807 = vrot.lane.b32.xlu1 %v5869_v18, %s2827_s18  ;;  %v1977_v18 = vsel %vm1951_vm15, %v1944_v31, %v5884_v25  ;;  %v1967_v13 = vsel %vm1951_vm15, %v1934_v33, %v5886_v2  ;;  %v5894_v31 = vld [vmem:[#allocation105_spill] sm:$0xff]  ;;  %v5896_v48 = vld [vmem:[#allocation96_spill] sm:$0xff]  ;;  %v5898_v25 = vld [vmem:[#allocation135_spill] sm:$0xff] }
 0x25d   : > { %1791 = vrot.lane.b32.xlu0 %v5872_v52, %s2827_s18  ;;  %v1623_v5 = vpop.permute.xlu2 %1622  ;;  %v2000_v43 = vsel %vm1984_vm0, %v1967_v13, %v5889_v53  ;;  %v5895_v22 = vld [vmem:[#allocation45_spill] sm:$0xff]  ;;  %v5897_v55 = vld [vmem:[#allocation24_spill] sm:$0xff] }
 0x25e   : > { %v1603_v4 = vpop.permute.xlu1 %1602  ;;  %v4704_v29 = vsel %vm2050_vm4, %v2040_v59, %v1623_v5  ;;  %v5887_v59 = vld [vmem:[#allocation179_spill] sm:$0xff]  ;;  %v1914_v38 = vsel %vm1885_vm5, %v5895_v22, %v5894_v31  ;;  %v1904_v33 = vsel %vm1885_vm5, %v5897_v55, %v5896_v48  ;;  %v5901_v13 = vld [vmem:[#allocation116_spill] sm:$0xff]  ;;  %v5911_v22 = vld [vmem:[#allocation186_spill] sm:$0xff] }
 0x25f   : > { %v4709_v16 = vsel %vm2050_vm4, %v2030_v27, %v1603_v4  ;;  %v1601_v50 = vpop.permute.xlu0 %1600  ;;  %v2010_v52 = vsel %vm1984_vm0, %v1977_v18, %v5887_v59  ;;  %v5888_v5 = vld [vmem:[#allocation151_spill] sm:$0xff]  ;;  %v5890_v4 = vld [vmem:[#allocation156_spill] sm:$0xff]  ;;  %v1947_v18 = vsel %vm1918_vm14, %v1914_v38, %v5898_v25  ;;  %v1937_v59 = vsel %vm1918_vm14, %v1904_v33, %v5901_v13 }
 0x260   : > { %v4712_v23 = vsel %vm2050_vm4, %v2029_v40, %v1601_v50  ;;  %v1966_v42 = vsel %vm1951_vm15, %v1933_v19, %v5888_v5  ;;  %v2043_v27 = vsel %vm2017_vm2, %v2010_v52, %v4440_v32  ;;  %v5891_v40 = vld [vmem:[#allocation164_spill] sm:$0xff]  ;;  %v5900_v19 = vld [vmem:[#allocation23_spill] sm:$0xff] }
 0x261   : > { %v1999_v50 = vsel %vm1984_vm0, %v1966_v42, %v5891_v40  ;;  %v1903_v2 = vsel %vm1885_vm5, %v5900_v19, %v5899_v12  ;;  %v5902_v52 = vld [vmem:[#allocation152_spill] sm:$0xff]  ;;  %v5903_v42 = vld [vmem:[#allocation126_spill] sm:$0xff]  ;;  %v5906_v40 = vld [vmem:[#allocation173_spill] sm:$0xff] }
 0x262   : > { %v1980_v5 = vsel %vm1951_vm15, %v1947_v18, %v5902_v52  ;;  %v1936_v53 = vsel %vm1918_vm14, %v1903_v2, %v5903_v42  ;;  %v5912_v12 = vld [vmem:[#allocation100_spill] sm:$0xff]  ;;  %v5913_v19 = vld [vmem:[#allocation29_spill] sm:$0xff]  ;;  %v5915_v52 = vld [vmem:[#allocation27_spill] sm:$0xff] }
 0x263   : > { %2191 = vrot.lane.b32.xlu2 %v2154_v15, %s2828_s30  ;;  %v5892_v15 = vld [vmem:[#allocation185_spill] sm:$0xff]  ;;  %v1907_v2 = vsel %vm1885_vm5, %v5913_v19, %v5912_v12  ;;  %v2163_v13 = vld [vmem:[%s4429_s29 + $0x70] sm:$0xff]  ;;  %v5916_v42 = vld [vmem:[#allocation119_spill] sm:$0xff] }
 0x264   : > { %2183 = vrot.lane.b32.xlu1 %v2150_v11, %s2828_s30  ;;  %v2033_v54 = vsel %vm2017_vm2, %v2000_v43, %v5892_v15  ;;  %v5893_v11 = vld [vmem:[#allocation189_spill] sm:$0xff]  ;;  %v2270_v19 = vld [vmem:[%s5432_s4 + $0x40] sm:$0xff] }
 0x265   : > { %1736 = vrot.lane.b32.xlu0 %v5890_v4, %s2826_s21  ;;  %v1629_v28 = vpop.permute.xlu2 %1628  ;;  %v2032_v20 = vsel %vm2017_vm2, %v1999_v50, %v5893_v11  ;;  %v5904_v43 = vld [vmem:[#allocation153_spill] sm:$0xff]  ;;  %v5907_v50 = vld [vmem:[#allocation154_spill] sm:$0xff] }
 0x266   : > { %v1609_v0 = vpop.permute.xlu1 %1608  ;;  %v4752_v44 = vsel %vm2050_vm4, %v2043_v27, %v1629_v28  ;;  %v1970_v27 = vsel %vm1951_vm15, %v1937_v59, %v5904_v43  ;;  %v5905_v4 = vld [vmem:[#allocation181_spill] sm:$0xff]  ;;  %v1969_v15 = vsel %vm1951_vm15, %v1936_v53, %v5907_v50  ;;  %v1940_v53 = vsel %vm1918_vm14, %v1907_v2, %v5916_v42  ;;  %v5918_v43 = vld [vmem:[#allocation128_spill] sm:$0xff]  ;;  %v5921_v50 = vld [vmem:[#allocation158_spill] sm:$0xff] }
 0x267   : > { %v4757_v61 = vsel %vm2050_vm4, %v2033_v54, %v1609_v0  ;;  %v1607_v32 = vpop.permute.xlu0 %1606  ;;  %v2013_v28 = vsel %vm1984_vm0, %v1980_v5, %v5905_v4  ;;  %v5908_v54 = vld [vmem:[#allocation175_spill] sm:$0xff]  ;;  %v5914_v59 = vld [vmem:[#allocation77_spill] sm:$0xff]  ;;  %v1675_v2 = vrot.slane %v4336_v57, 1 }
 0x268   : > { %v4760_v8 = vsel %vm2050_vm4, %v2032_v20, %v1607_v32  ;;  %v2003_v0 = vsel %vm1984_vm0, %v1970_v27, %v5908_v54  ;;  %v2046_v11 = vsel %vm2017_vm2, %v2013_v28, %v4474_v47  ;;  %v5909_v20 = vld [vmem:[#allocation86_spill] sm:$0xff]  ;;  %v1906_v5 = vsel %vm1885_vm5, %v5915_v52, %v5914_v59  ;;  %v5919_v4 = vld [vmem:[#allocation157_spill] sm:$0xff]  ;;  %v2268_v59 = vld [vmem:[%s5432_s4 + $0x30] sm:$0xff] }
 0x269   : > { %v2036_v38 = vsel %vm2017_vm2, %v2003_v0, %v5911_v22  ;;  %v1939_v27 = vsel %vm1918_vm14, %v1906_v5, %v5918_v43  ;;  %v1973_v28 = vsel %vm1951_vm15, %v1940_v53, %v5919_v4  ;;  %v5922_v54 = vld [vmem:[#allocation178_spill] sm:$0xff]  ;;  %v5926_v5 = vld [vmem:[#allocation32_spill] sm:$0xff]  ;;  %v5927_v53 = vld [vmem:[#allocation155_spill] sm:$0xff] }
 0x26a   : > { %v2006_v0 = vsel %vm1984_vm0, %v1973_v28, %v5922_v54  ;;  %v5925_v52 = vld [vmem:[#allocation82_spill] sm:$0xff]  ;;  %v5930_v28 = vld [vmem:[#allocation159_spill] sm:$0xff] }
 0x26b   : > { %2201 = vrot.lane.b32.xlu2 %v2159_v36, %s2828_s30  ;;  %v5910_v36 = vld [vmem:[#allocation165_spill] sm:$0xff]  ;;  %v1909_v42 = vsel %vm1885_vm5, %v5926_v5, %v5925_v52  ;;  %v2267_v54 = vld [vmem:[%s5432_s4 + $0x28] sm:$0xff]  ;;  %v5935_v52 = vld [vmem:[#allocation88_spill] sm:$0xff] }
 0x26c   : > { %1841 = vrot.lane.b32.xlu1 %v5906_v40, %s2827_s18  ;;  %v2002_v31 = vsel %vm1984_vm0, %v1969_v15, %v5910_v36  ;;  %v5920_v40 = vld [vmem:[#allocation35_spill] sm:$0xff]  ;;  %v1972_v15 = vsel %vm1951_vm15, %v1939_v27, %v5921_v50  ;;  %v5929_v27 = vld [vmem:[#allocation48_spill] sm:$0xff]  ;;  %v5931_v50 = vld [vmem:[#allocation69_spill] sm:$0xff] }
 0x26d   : > { %1825 = vrot.lane.b32.xlu0 %v5909_v20, %s2827_s18  ;;  %v1635_v32 = vpop.permute.xlu2 %1634  ;;  %v2035_v33 = vsel %vm2017_vm2, %v2002_v31, %v4349_v21  ;;  %v5917_v21 = vld [vmem:[#allocation59_spill] sm:$0xff]  ;;  %v5924_v31 = vld [vmem:[#allocation2_spill] sm:$0xff] }
 0x26e   : > { %v1615_v48 = vpop.permute.xlu1 %1614  ;;  %v4800_v55 = vsel %vm2050_vm4, %v2046_v11, %v1635_v32  ;;  %v2271_v20 = vld [vmem:[%s5432_s4 + $0x48] sm:$0xf]  ;;  %v2039_v22 = vsel %vm2017_vm2, %v2006_v0, %v5924_v31  ;;  %v5932_v0 = vld [vmem:[#allocation169_spill] sm:$0xff]  ;;  %v5936_v5 = vld [vmem:[#allocation38_spill] sm:$0xff] }
 0x26f   : > { %v4805_v25 = vsel %vm2050_vm4, %v2036_v38, %v1615_v48  ;;  %v1613_v47 = vpop.permute.xlu0 %1612  ;;  %v5923_v32 = vld [vmem:[#allocation167_spill] sm:$0xff]  ;;  %2693 = vmatpush.msk.msra.mxu2 %vm2373_vm6, %v2271_v20  ;;  %2694 = vmatpush.msk.msra.mxu3 %vm2373_vm6, %v2271_v20 }
 0x270   : > { %v4808_v18 = vsel %vm2050_vm4, %v2035_v33, %v1613_v47  ;;  %v2005_v36 = vsel %vm1984_vm0, %v1972_v15, %v5923_v32  ;;  %2657 = vmatpush.msk.msra.mxu0 %vm2373_vm6, %v2271_v20  ;;  %2692 = vmatpush.msk.msra.mxu1 %vm2373_vm6, %v2271_v20 }
 0x271   : > { %v2038_v33 = vsel %vm2017_vm2, %v2005_v36, %v4381_v3  ;;  %2696 = vmatpush.msra.mxu2 %v2270_v19  ;;  %2697 = vmatpush.msra.mxu3 %v2270_v19  ;;  %v2269_v3 = vld [vmem:[%s5432_s4 + $0x38] sm:$0xff] }
 0x272   : > { %2384 = vmatpush.msra.mxu0 %v2270_v19  ;;  %2695 = vmatpush.msra.mxu1 %v2270_v19  ;;  %v5934_v19 = vld [vmem:[#allocation39_spill] sm:$0xff] }
 0x273   : > { %1793 = vrot.lane.b32.xlu2 %v5917_v21, %s2827_s18  ;;  %2699 = vmatpush.msra.mxu2 %v2269_v3  ;;  %v5928_v21 = vld [vmem:[#allocation130_spill] sm:$0xff] }
 0x274   : > { %1704 = vrot.lane.b32.xlu1 %v5920_v40, %s2826_s21  ;;  %2700 = vmatpush.msra.mxu3 %v2269_v3  ;;  %v1942_v43 = vsel %vm1918_vm14, %v1909_v42, %v5928_v21  ;;  %v1912_v42 = vsel %vm1885_vm5, %v5936_v5, %v5935_v52 }
 0x275   : > { %2209 = vrot.lane.b32.xlu0 %v2163_v13, %s2828_s30  ;;  %v1641_v11 = vpop.permute.xlu2 %1640  ;;  %2385 = vmatpush.msra.mxu0 %v2269_v3  ;;  %v1975_v40 = vsel %vm1951_vm15, %v1942_v43, %v5930_v28  ;;  %v5938_v43 = vld [vmem:[#allocation85_spill] sm:$0xff]  ;;  %v5940_v28 = vld [vmem:[#allocation160_spill] sm:$0xff] }
 0x276   : > { %v1621_v38 = vpop.permute.xlu1 %1620  ;;  %v4841_v48 = vsel %vm2050_vm4, %v4520_v39, %v1641_v11  ;;  %v1676_v39 = vrot.slane %v4367_v62, 1  ;;  %2702 = vmatpush.msra.mxu2 %v2268_v59  ;;  %2703 = vmatpush.msra.mxu3 %v2268_v59  ;;  %v2008_v11 = vsel %vm1984_vm0, %v1975_v40, %v5932_v0  ;;  %v5942_v0 = vld [vmem:[#allocation182_spill] sm:$0xff] }
 0x277   : > { %v4846_v47 = vsel %vm2050_vm4, %v2039_v22, %v1621_v38  ;;  %v1619_v12 = vpop.permute.xlu0 %1618  ;;  %2386 = vmatpush.msra.mxu0 %v2268_v59  ;;  %v2041_v36 = vsel %vm2017_vm2, %v2008_v11, %v4406_v1  ;;  %v2266_v22 = vld [vmem:[%s5432_s4 + $0x20] sm:$0xff]  ;;  %2698 = vmatpush.msra.mxu1 %v2269_v3  ;;  %v2264_v1 = vld [vmem:[%s5432_s4 + $0x10] sm:$0xff] }
 0x278   : > { %v4854_v13 = vsel %vm2050_vm4, %v2038_v33, %v1619_v12  ;;  %v4874_v4 = vsel %vm925_vm3, %v1675_v2, %v1676_v39  ;;  %2705 = vmatpush.msra.mxu2 %v2267_v54  ;;  %2706 = vmatpush.msra.mxu3 %v2267_v54  ;;  %v2155_v33 = vld [vmem:[%s4429_s29 + $0x30] sm:$0xff]  ;;  %v5933_v12 = vld [vmem:[#allocation106_spill] sm:$0xff] }
 0x279   : > { %2387 = vmatpush.msra.mxu0 %v2267_v54  ;;  %2701 = vmatpush.msra.mxu1 %v2268_v59  ;;  %v1913_v2 = vsel %vm1885_vm5, %v5934_v19, %v5933_v12  ;;  %v2151_v3 = vld [vmem:[%s4429_s29 + $0x10] sm:$0xff]  ;;  %v5943_v12 = vld [vmem:[#allocation171_spill] sm:$0xff] }
 0x27a   : > { %2708 = vmatpush.msra.mxu2 %v2266_v22  ;;  %2709 = vmatpush.msra.mxu3 %v2266_v22 }
 0x27b   : > { %1738 = vrot.lane.b32.xlu2 %v5927_v53, %s2826_s21  ;;  %2388 = vmatpush.msra.mxu0 %v2266_v22  ;;  %v5937_v53 = vld [vmem:[#allocation125_spill] sm:$0xff] }
 0x27c   : > { %1722 = vrot.lane.b32.xlu1 %v5929_v27, %s2826_s21  ;;  %v1946_v21 = vsel %vm1918_vm14, %v1913_v2, %v5937_v53  ;;  %v5939_v27 = vld [vmem:[#allocation132_spill] sm:$0xff]  ;;  %2704 = vmatpush.msra.mxu1 %v2267_v54  ;;  %v1780_v53 = vrot.slane %v4336_v57, 2 }
 0x27d   : > { %1809 = vrot.lane.b32.xlu0 %v5931_v50, %s2827_s18  ;;  %v1689_v15 = vpop.permute.xlu2 %1688  ;;  %v1945_v59 = vsel %vm1918_vm14, %v1912_v42, %v5939_v27  ;;  %v1979_v40 = vsel %vm1951_vm15, %v1946_v21, %v5940_v28  ;;  %v5941_v50 = vld [vmem:[#allocation161_spill] sm:$0xff]  ;;  %v2262_v42 = vld [vmem:[%s5432_s4] sm:$0xff]  ;;  %v5944_v57 = vld [vmem:[#allocation176_spill] sm:$0xff] }
 0x27e   : > { %v4885_v20 = vpop.permute.xlu1 %1626  ;;  %v4889_v32 = vsel %vm2083_vm7, %v4568_v14, %v1689_v15  ;;  %v2265_v14 = vld [vmem:[%s5432_s4 + $0x18] sm:$0xff]  ;;  %v1978_v15 = vsel %vm1951_vm15, %v1945_v59, %v5941_v50  ;;  %v2012_v11 = vsel %vm1984_vm0, %v1979_v40, %v5942_v0  ;;  %2707 = vmatpush.msra.mxu1 %v2266_v22  ;;  %v5945_v40 = vld [vmem:[#allocation58_spill] sm:$0xff] }
 0x27f   : > { %v1625_v31 = vpop.permute.xlu0 %1624  ;;  %2711 = vmatpush.msra.mxu2 %v2265_v14  ;;  %2712 = vmatpush.msra.mxu3 %v2265_v14  ;;  %v2045_v19 = vsel %vm2017_vm2, %v2012_v11, %v4347_v41  ;;  %v1781_v41 = vrot.slane %v4367_v62, 2  ;;  %v5946_v50 = vld [vmem:[#allocation33_spill] sm:$0xff]  ;;  %v1783_v11 = vrot.slane %v4360_v60, 2 }
 0x280   : > { %v4897_v38 = vsel %vm2050_vm4, %v2041_v36, %v1625_v31  ;;  %v2263_v31 = vld [vmem:[%s5432_s4 + $0x8] sm:$0xff]  ;;  %2389 = vmatpush.msra.mxu0 %v2265_v14  ;;  %2710 = vmatpush.msra.mxu1 %v2265_v14 }
 0x281   : > { %2714 = vmatpush.msra.mxu2 %v2264_v1  ;;  %2715 = vmatpush.msra.mxu3 %v2264_v1  ;;  %v1782_v54 = vsel %vm1094_vm1, %v1780_v53, %v1781_v41  ;;  %v2156_v53 = vld [vmem:[%s4429_s29 + $0x38] sm:$0xff] }
 0x282   : > { %2390 = vmatpush.msra.mxu0 %v2264_v1  ;;  %2713 = vmatpush.msra.mxu1 %v2264_v1  ;;  %v5947_v1 = vld [vmem:[#allocation16_spill] sm:$0xff] }
 0x283   : > { %1827 = vrot.lane.b32.xlu2 %v5938_v43, %s2827_s18  ;;  %2717 = vmatpush.msra.mxu2 %v2263_v31  ;;  %v2164_v43 = vld [vmem:[%s4429_s29 + $0x78] sm:$0xff] }
 0x284   : > { %2193 = vrot.lane.b32.xlu1 %v2155_v33, %s2828_s30  ;;  %v2011_v33 = vsel %vm1984_vm0, %v1978_v15, %v5943_v12  ;;  %2718 = vmatpush.msra.mxu3 %v2263_v31  ;;  %v1784_v12 = vsel %vm1094_vm1, %v1781_v41, %v1783_v11  ;;  %v2152_v41 = vld [vmem:[%s4429_s29 + $0x18] sm:$0xff] }
 0x285   : > { %2185 = vrot.lane.b32.xlu0 %v2151_v3, %s2828_s30  ;;  %v4927_v36 = vpop.permute.xlu2 %1821  ;;  %v2044_v3 = vsel %vm2017_vm2, %v2011_v33, %v4435_v37  ;;  %2720 = vmatpush.msra.mxu2 %v2262_v42  ;;  %v2160_v37 = vld [vmem:[%s4429_s29 + $0x58] sm:$0xff] }
 0x286   : > { %v1633_v2 = vpop.permute.xlu1 %1632  ;;  %2721 = vmatpush.msra.mxu3 %v2262_v42  ;;  %2391 = vmatpush.msra.mxu0 %v2263_v31 }
 0x287   : > { %v4939_v52 = vsel %vm2050_vm4, %v2045_v19, %v1633_v2  ;;  %v1631_v5 = vpop.permute.xlu0 %1630  ;;  %2716 = vmatpush.msra.mxu1 %v2263_v31  ;;  %v5948_v31 = vld [vmem:[#allocation47_spill] sm:$0xff]  ;;  %v5949_v19 = vld [vmem:[#allocation76_spill] sm:$0xff] }
 0x288   : > { %v4947_v21 = vsel %vm2050_vm4, %v2044_v3, %v1631_v5  ;;  %2392 = vmatpush.msra.mxu0 %v2262_v42 }
 0x289   : > { %2719 = vmatpush.msra.mxu1 %v2262_v42  ;;  %v5951_v42 = vld [vmem:[#allocation42_spill] sm:$0xff] }
 0x28b   : > { %2211 = vrot.lane.b32.xlu2 %v2164_v43, %s2828_s30  ;;  %v5952_v43 = vld [vmem:[#allocation122_spill] sm:$0xff] }
 0x28c   : > { %2203 = vrot.lane.b32.xlu1 %v2160_v37, %s2828_s30 }
 0x28d   : > { %1843 = vrot.lane.b32.xlu0 %v5944_v57, %s2827_s18  ;;  %v4956_v27 = vpop.permute.xlu2 %2205  ;;  %v5953_v57 = vld [vmem:[#allocation52_spill] sm:$0xff] }
 0x28e   : > { %v1639_v59 = vpop.permute.xlu1 %1638 }
 0x28f   : > { %v4960_v28 = vsel %vm2050_vm4, %v4384_v30, %v1639_v59  ;;  %v1637_v22 = vpop.permute.xlu0 %1636  ;;  %v5954_v59 = vld [vmem:[#allocation93_spill] sm:$0xff] }
 0x290   : > { %v4964_v14 = vsel %vm2050_vm4, %v4472_v63, %v1637_v22  ;;  %v1678_v63 = vrot.slane %v4360_v60, 1  ;;  %v5950_v60 = vld [vmem:[#allocation103_spill] sm:$0xff]  ;;  %v5955_v22 = vld [vmem:[#allocation180_spill] sm:$0xff] }
 0x292   : > { %v1679_v33 = vsel %vm925_vm3, %v1676_v39, %v1678_v63 }
 0x293   : > { %1795 = vrot.lane.b32.xlu2 %v5945_v40, %s2827_s18 }
 0x294   : > { %1706 = vrot.lane.b32.xlu1 %v5946_v50, %s2826_s21  ;;  %v5956_v50 = vld [vmem:[#allocation188_spill] sm:$0xff] }
 0x295   : > { %1690 = vrot.lane.b32.xlu0 %v5947_v1, %s2826_s21  ;;  %v4972_v15 = vpop.permute.xlu2 %1805 }
 0x296   : > { %v4974_v30 = vpop.permute.xlu1 %1686 }
 0x297   : > { %v1685_v0 = vpop.permute.xlu0 %1684 }
 0x29b   : > { %1740 = vrot.lane.b32.xlu2 %v4874_v4, %s2826_s21  ;;  %v1910_v4 = vsel %vm1885_vm5, %v5951_v42, %v5950_v60 }
 0x29c   : > { %1724 = vrot.lane.b32.xlu1 %v5948_v31, %s2826_s21  ;;  %v1943_v37 = vsel %vm1918_vm14, %v1910_v4, %v5952_v43 }
 0x29d   : > { %1811 = vrot.lane.b32.xlu0 %v5949_v19, %s2827_s18  ;;  %v4988_v2 = vpop.permute.xlu2 %2181  ;;  %v1976_v62 = vsel %vm1951_vm15, %v1943_v37, %v5953_v57  ;;  %v5957_v37 = vld [vmem:[#allocation31_spill] sm:$0xff] }
 0x29e   : > { %v1733_v3 = vpop.permute.xlu1 %1732  ;;  %v2009_v40 = vsel %vm1984_vm0, %v1976_v62, %v5955_v22  ;;  %v2084_v62 = vsel %vm2083_vm7, %v4517_v56, %v1685_v0  ;;  %v5961_v56 = vld [vmem:[#allocation57_spill] sm:$0xff] }
 0x29f   : > { %v1717_v5 = vpop.permute.xlu0 %1716  ;;  %v2042_v1 = vsel %vm2017_vm2, %v2009_v40, %v5956_v50  ;;  %v5959_v50 = vld [vmem:[#allocation46_spill] sm:$0xff] }
 0x2a0   : > { %v2100_v39 = vsel %vm2083_vm7, %v4608_v24, %v1717_v5  ;;  %v2075_v24 = vsel %vm2050_vm4, %v2042_v1, %v4885_v20 }
 0x2a1   : > { %v2133_v5 = vsel %vm2116_vm8, %v2100_v39, %v4927_v36  ;;  %v2108_v60 = vsel %vm2083_vm7, %v2075_v24, %v1733_v3  ;;  %v5958_v36 = vld [vmem:[#allocation25_spill] sm:$0xff] }
 0x2a3   : > { %1829 = vrot.lane.b32.xlu2 %v5954_v59, %s2827_s18 }
 0x2a4   : > { %2195 = vrot.lane.b32.xlu1 %v2156_v53, %s2828_s30  ;;  %v1680_v53 = vrot.slane %v4356_v46, 1 }
 0x2a5   : > { %2187 = vrot.lane.b32.xlu0 %v2152_v41, %s2828_s30  ;;  %v1840_v31 = vpop.permute.xlu2 %1839  ;;  %v1785_v41 = vrot.slane %v4356_v46, 2  ;;  %v5979_v46 = vld [vmem:[#allocation63_spill] sm:$0xff] }
 0x2a6   : > { %v5011_v19 = vpop.permute.xlu1 %2197  ;;  %v1681_v3 = vsel %vm925_vm3, %v1678_v63, %v1680_v53 }
 0x2a7   : > { %v1838_v42 = vpop.permute.xlu0 %1837  ;;  %v2246_v4 = vsel %vm2229_vm10, %v2133_v5, %v5011_v19  ;;  %v1786_v63 = vsel %vm1094_vm1, %v1783_v11, %v1785_v41 }
 0x2a8   : > { %v2141_v43 = vsel %vm2116_vm8, %v2108_v60, %v1838_v42  ;;  %2674 = vmatmul.msk.f32.vlgmr.msra.gmra.mxu2 %vm2276_vm11, %v2246_v4  ;;  %v5962_v60 = vld [vmem:[#allocation92_spill] sm:$0xff] }
 0x2a9   : > { %v2254_v20 = vsel %vm2229_vm10, %v2141_v43, %v4956_v27 }
 0x2aa   : > { %2682 = vmatmul.msk.f32.vlgmr.msra.gmra.mxu3 %vm2276_vm11, %v2254_v20 }
 0x2ab   : > { %1708 = vrot.lane.b32.xlu2 %v5957_v37, %s2826_s21  ;;  %v5965_v37 = vld [vmem:[#allocation22_spill] sm:$0xff] }
 0x2ac   : > { %1692 = vrot.lane.b32.xlu1 %v5958_v36, %s2826_s21 }
 0x2ad   : > { %1845 = vrot.lane.b32.xlu0 %v1782_v54, %s2827_s18  ;;  %v1703_v57 = vpop.permute.xlu2 %1702  ;;  %v5960_v54 = vld [vmem:[#allocation75_spill] sm:$0xff] }
 0x2ae   : > { %v1790_v39 = vpop.permute.xlu1 %1789 }
 0x2af   : > { %v2117_v59 = vsel %vm2116_vm8, %v2084_v62, %v1790_v39  ;;  %v1701_v22 = vpop.permute.xlu0 %1700 }
 0x2b0   : > { %v2230_v40 = vsel %vm2229_vm10, %v2117_v59, %v4988_v2  ;;  %v2092_v5 = vsel %vm2083_vm7, %v4664_v58, %v1701_v22 }
 0x2b1   : > { %2658 = vmatmul.msk.f32.vlgmr.msra.gmra.mxu0 %vm2276_vm11, %v2230_v40  ;;  %v2125_v43 = vsel %vm2116_vm8, %v2092_v5, %v4972_v15 }
 0x2b3   : > { %1726 = vrot.lane.b32.xlu2 %v5959_v50, %s2826_s21  ;;  %v5966_v50 = vld [vmem:[#allocation50_spill] sm:$0xff] }
 0x2b4   : > { %1813 = vrot.lane.b32.xlu1 %v5960_v54, %s2827_s18 }
 0x2b5   : > { %1797 = vrot.lane.b32.xlu0 %v5961_v56, %s2827_s18  ;;  %v1721_v0 = vpop.permute.xlu2 %1720  ;;  %v2093_v56 = vsel %vm2083_vm7, %v4661_v10, %v1703_v57  ;;  %v5968_v10 = vld [vmem:[#allocation21_spill] sm:$0xff]  ;;  %v2085_v57 = vsel %vm2083_vm7, %v4409_v45, %v4974_v30 }
 0x2b6   : > { %v1735_v1 = vpop.permute.xlu1 %1734  ;;  %v5971_v30 = vld [vmem:[#allocation81_spill] sm:$0xff] }
 0x2b7   : > { %v1719_v24 = vpop.permute.xlu0 %1718  ;;  %v2109_v58 = vsel %vm2083_vm7, %v4752_v44, %v1735_v1 }
 0x2b8   : > { %v2101_v15 = vsel %vm2083_vm7, %v4808_v18, %v1719_v24  ;;  %v2142_v39 = vsel %vm2116_vm8, %v2109_v58, %v1840_v31  ;;  %v379_v18 = vld [vmem:[%s2925_s14 + $0x188] sm:$0x3]  ;;  %v5967_v31 = vld [vmem:[#allocation74_spill] sm:$0xff] }
 0x2b9   : > { %v2778_v24 = vld [vmem:[%s5430_s2] ss:$0 sm:$0xff]  ;;  %v5969_v58 = vld [vmem:[#allocation91_spill] sm:$0xff] }
 0x2ba   : > { %v433_v5 = vmul.f32 %v2778_v24, %v379_v18 }
 0x2bb   : > { %1847 = vrot.lane.b32.xlu2 %v1784_v12, %s2827_s18  ;;  %v5963_v12 = vld [vmem:[#allocation65_spill] sm:$0xff] }
 0x2bc   : > { %1831 = vrot.lane.b32.xlu1 %v5962_v60, %s2827_s18 }
 0x2bd   : > { %1742 = vrot.lane.b32.xlu0 %v1679_v33, %s2826_s21  ;;  %v5054_v11 = vpop.permute.xlu2 %2191  ;;  %v5964_v33 = vld [vmem:[#allocation40_spill] sm:$0xff] }
 0x2be   : > { %v1824_v42 = vpop.permute.xlu1 %1823 }
 0x2bf   : > { %v5056_v4 = vpop.permute.xlu0 %2189  ;;  %v2134_v44 = vsel %vm2116_vm8, %v2101_v15, %v1824_v42 }
 0x2c0   : > { %v2238_v20 = vsel %vm2229_vm10, %v2125_v43, %v5056_v4  ;;  %v2779_v43 = vld [vmem:[%s5431_s3] ss:$0 sm:$0xff] }
 0x2c1   : > { %2666 = vmatmul.msk.f32.vlgmr.msra.gmra.mxu1 %vm2276_vm11, %v2238_v20  ;;  %v487_v20 = vadd.f32 %v2779_v43, %v433_v5 }
 0x2c3   : > { %1799 = vrot.lane.b32.xlu2 %v5963_v12, %s2827_s18  ;;  %v537_v15 = vmax.f32 %v487_v20, 0.0 }
 0x2c4   : > { %1710 = vrot.lane.b32.xlu1 %v5964_v33, %s2826_s21 }
 0x2c5   : > { %1694 = vrot.lane.b32.xlu0 %v5965_v37, %s2826_s21  ;;  %v5071_v36 = vpop.permute.xlu2 %2201  ;;  %v884_v45 = vsel %vm734_vm13, %v537_v15, 0.0 }
 0x2c6   : > { %v5075_v62 = vpop.permute.xlu1 %2207  ;;  %v1682_v18 = vrot.slane %v884_v45, 1 }
 0x2c7   : > { %v5079_v59 = vpop.permute.xlu0 %2199  ;;  %v2255_v22 = vsel %vm2229_vm10, %v2142_v39, %v5075_v62 }
 0x2c8   : > { %v2247_v40 = vsel %vm2229_vm10, %v2134_v44, %v5079_v59  ;;  %2683 = vmatmul.msk.f32.gmra.mxu3 %vm2276_vm11, %v2255_v22  ;;  %v1683_v5 = vsel %vm925_vm3, %v1680_v53, %v1682_v18 }
 0x2c9   : > { %2675 = vmatmul.msk.f32.gmra.mxu2 %vm2276_vm11, %v2247_v40  ;;  %v5973_v40 = vld [vmem:[#allocation37_spill] sm:$0xff] }
 0x2cb   : > { %1744 = vrot.lane.b32.xlu2 %v1681_v3, %s2826_s21 }
 0x2cc   : > { %1728 = vrot.lane.b32.xlu1 %v5966_v50, %s2826_s21 }
 0x2cd   : > { %1815 = vrot.lane.b32.xlu0 %v5967_v31, %s2827_s18  ;;  %v1794_v54 = vpop.permute.xlu2 %1793  ;;  %v2102_v31 = vsel %vm2083_vm7, %v4805_v25, %v1721_v0  ;;  %v5975_v25 = vld [vmem:[#allocation49_spill] sm:$0xff] }
 0x2ce   : > { %v1808_v1 = vpop.permute.xlu1 %1807 }
 0x2cf   : > { %v2126_v60 = vsel %vm2116_vm8, %v2093_v56, %v1808_v1  ;;  %v1792_v3 = vpop.permute.xlu0 %1791 }
 0x2d0   : > { %v2239_v42 = vsel %vm2229_vm10, %v2126_v60, %v5054_v11  ;;  %v2118_v33 = vsel %vm2116_vm8, %v2085_v57, %v1792_v3  ;;  %v5974_v60 = vld [vmem:[#allocation97_spill] sm:$0xff] }
 0x2d1   : > { %2667 = vmatmul.msk.f32.gmra.mxu1 %vm2276_vm11, %v2239_v42  ;;  %v1787_v42 = vrot.slane %v884_v45, 2 }
 0x2d3   : > { %1696 = vrot.lane.b32.xlu2 %v5968_v10, %s2826_s21  ;;  %v1788_v57 = vsel %vm1094_vm1, %v1785_v41, %v1787_v42 }
 0x2d4   : > { %1849 = vrot.lane.b32.xlu1 %v1786_v63, %s2827_s18  ;;  %v5972_v63 = vld [vmem:[#allocation64_spill] sm:$0xff] }
 0x2d5   : > { %1833 = vrot.lane.b32.xlu0 %v5969_v58, %s2827_s18  ;;  %v1739_v12 = vpop.permute.xlu2 %1738  ;;  %v5976_v58 = vld [vmem:[#allocation36_spill] sm:$0xff] }
 0x2d6   : > { %v5114_v37 = vpop.permute.xlu1 %2183 }
 0x2d7   : > { %v1737_v39 = vpop.permute.xlu0 %1736  ;;  %v2231_v44 = vsel %vm2229_vm10, %v2118_v33, %v5114_v37 }
 0x2d8   : > { %2659 = vmatmul.msk.f32.gmra.mxu0 %vm2276_vm11, %v2231_v44  ;;  %v2110_v0 = vsel %vm2083_vm7, %v4947_v21, %v1737_v39  ;;  %v5977_v21 = vld [vmem:[#allocation30_spill] sm:$0xff]  ;;  %v5978_v44 = vld [vmem:[#allocation80_spill] sm:$0xff] }
 0x2db   : > { %1817 = vrot.lane.b32.xlu2 %v5971_v30, %s2827_s18  ;;  %v2119_v30 = vsel %vm2116_vm8, %v4889_v32, %v1794_v54  ;;  %v2111_v54 = vsel %vm2083_vm7, %v4939_v52, %v1739_v12 }
 0x2dc   : > { %1801 = vrot.lane.b32.xlu1 %v5972_v63, %s2827_s18 }
 0x2dd   : > { %1712 = vrot.lane.b32.xlu0 %v5973_v40, %s2826_s21  ;;  %v1828_v56 = vpop.permute.xlu2 %1827 }
 0x2de   : > { %v1842_v50 = vpop.permute.xlu1 %1841 }
 0x2df   : > { %v1826_v9 = vpop.permute.xlu0 %1825  ;;  %v2143_v43 = vsel %vm2116_vm8, %v2110_v0, %v1842_v50 }
 0x2e0   : > { %v2135_v1 = vsel %vm2116_vm8, %v2102_v31, %v1826_v9 }
 0x2e1   : > { %v2248_v24 = vsel %vm2229_vm10, %v2135_v1, %v5071_v36 }
 0x2e2   : > { %2676 = vmatmul.msk.f32.gmra.mxu2 %vm2276_vm11, %v2248_v24 }
 0x2e3   : > { %1835 = vrot.lane.b32.xlu2 %v5974_v60, %s2827_s18 }
 0x2e4   : > { %1746 = vrot.lane.b32.xlu1 %v1683_v5, %s2826_s21 }
 0x2e5   : > { %1730 = vrot.lane.b32.xlu0 %v5975_v25, %s2826_s21  ;;  %v5150_v10 = vpop.permute.xlu2 %2211 }
 0x2e6   : > { %v1705_v3 = vpop.permute.xlu1 %1704 }
 0x2e7   : > { %v5146_v20 = vpop.permute.xlu0 %2209  ;;  %v2094_v22 = vsel %vm2083_vm7, %v4512_v17, %v1705_v3 }
 0x2e8   : > { %v2256_v53 = vsel %vm2229_vm10, %v2143_v43, %v5146_v20 }
 0x2e9   : > { %2684 = vmatmul.msk.f32.gmra.mxu3 %vm2276_vm11, %v2256_v53 }
 0x2eb   : > { %1714 = vrot.lane.b32.xlu2 %v5976_v58, %s2826_s21 }
 0x2ec   : > { %1698 = vrot.lane.b32.xlu1 %v5977_v21, %s2826_s21  ;;  %s2655_s21 = sshll.u32 %s2980_s19, 3 }
 0x2ed   : > { %1851 = vrot.lane.b32.xlu0 %v1788_v57, %s2827_s18  ;;  %v1796_v39 = vpop.permute.xlu2 %1795  ;;  %s5243_s19 = scalar_lea.vmem %s5434_s6, %s2655_s21 }
 0x2ee   : > { %v1723_v33 = vpop.permute.xlu1 %1722 }
 0x2ef   : > { %v1810_v15 = vpop.permute.xlu0 %1809  ;;  %v2103_v17 = vsel %vm2083_vm7, %v4656_v7, %v1723_v33 }
 0x2f0   : > { %v2127_v41 = vsel %vm2116_vm8, %v2094_v22, %v1810_v15  ;;  %v2136_v32 = vsel %vm2116_vm8, %v2103_v17, %v1828_v56 }
 0x2f4   : > { %1819 = vrot.lane.b32.xlu1 %v5978_v44, %s2827_s18 }
 0x2f5   : > { %1803 = vrot.lane.b32.xlu0 %v5979_v46, %s2827_s18  ;;  %v1741_v50 = vpop.permute.xlu2 %1740 }
 0x2f6   : > { %v5168_v45 = vpop.permute.xlu1 %2193  ;;  %v2112_v15 = vsel %vm2083_vm7, %v4800_v55, %v1741_v50 }
 0x2f7   : > { %v5172_v63 = vpop.permute.xlu0 %2185  ;;  %v2240_v40 = vsel %vm2229_vm10, %v2127_v41, %v5168_v45 }
 0x2f8   : > { %v2232_v18 = vsel %vm2229_vm10, %v2119_v30, %v5172_v63  ;;  %2668 = vmatmul.msk.f32.gmra.mxu1 %vm2276_vm11, %v2240_v40 }
 0x2f9   : > { %2660 = vmatmul.msk.f32.gmra.mxu0 %vm2276_vm11, %v2232_v18 }
 0x2fd   : > { %v1830_v60 = vpop.permute.xlu2 %1829 }
 0x2fe   : > { %v5182_v31 = vpop.permute.xlu1 %2203 }
 0x2ff   : > { %v1844_v9 = vpop.permute.xlu0 %1843  ;;  %v2249_v1 = vsel %vm2229_vm10, %v2136_v32, %v5182_v31 }
 0x300   : > { %v2144_v24 = vsel %vm2116_vm8, %v2111_v54, %v1844_v9  ;;  %2677 = vmatmul.msk.f32.gmra.mxu2 %vm2276_vm11, %v2249_v1 }
 0x301   : > { %v2257_v5 = vsel %vm2229_vm10, %v2144_v24, %v5150_v10 }
 0x302   : > { %2685 = vmatmul.msk.f32.gmra.mxu3 %vm2276_vm11, %v2257_v5 }
 0x305   : > { %v1709_v3 = vpop.permute.xlu2 %1708 }
 0x306   : > { %v1707_v7 = vpop.permute.xlu1 %1706  ;;  %v2096_v41 = vsel %vm2083_vm7, %v4709_v16, %v1709_v3 }
 0x307   : > { %v1691_v25 = vpop.permute.xlu0 %1690  ;;  %v2095_v53 = vsel %vm2083_vm7, %v4712_v23, %v1707_v7 }
 0x308   : > { %v2087_v43 = vsel %vm2083_vm7, %v4565_v34, %v1691_v25 }
 0x309   : > { %v2120_v21 = vsel %vm2116_vm8, %v2087_v43, %v1796_v39 }
 0x30d   : > { %v1727_v34 = vpop.permute.xlu2 %1726 }
 0x30e   : > { %v1725_v56 = vpop.permute.xlu1 %1724  ;;  %v2105_v54 = vsel %vm2083_vm7, %v4846_v47, %v1727_v34 }
 0x30f   : > { %v2104_v52 = vsel %vm2083_vm7, %v4854_v13, %v1725_v56  ;;  %v1812_v12 = vpop.permute.xlu0 %1811 }
 0x310   : > { %v2137_v0 = vsel %vm2116_vm8, %v2104_v52, %v1830_v60  ;;  %v2128_v57 = vsel %vm2116_vm8, %v2095_v53, %v1812_v12 }
 0x311   : > { %v2250_v42 = vsel %vm2229_vm10, %v2137_v0, %v5011_v19 }
 0x312   : > { %2678 = vmatmul.msk.f32.gmra.mxu2 %vm2276_vm11, %v2250_v42 }
 0x315   : > { %v1848_v46 = vpop.permute.xlu2 %1847 }
 0x316   : > { %v5205_v58 = vpop.permute.xlu1 %2195 }
 0x317   : > { %v5207_v13 = vpop.permute.xlu0 %2187  ;;  %v2241_v33 = vsel %vm2229_vm10, %v2128_v57, %v5205_v58 }
 0x318   : > { %v2233_v19 = vsel %vm2229_vm10, %v2120_v21, %v5207_v13  ;;  %2669 = vmatmul.msk.f32.gmra.mxu1 %vm2276_vm11, %v2241_v33 }
 0x319   : > { %2661 = vmatmul.msk.f32.gmra.mxu0 %vm2276_vm11, %v2233_v19 }
 0x31d   : > { %v1800_v24 = vpop.permute.xlu2 %1799 }
 0x31e   : > { %v1693_v23 = vpop.permute.xlu1 %1692 }
 0x31f   : > { %v1846_v44 = vpop.permute.xlu0 %1845  ;;  %v2088_v40 = vsel %vm2083_vm7, %v4438_v6, %v1693_v23 }
 0x320   : > { %v2145_v22 = vsel %vm2116_vm8, %v2112_v15, %v1846_v44 }
 0x321   : > { %v2258_v39 = vsel %vm2229_vm10, %v2145_v22, %v4956_v27  ;;  %v5234_v27 = vld [vmem:[%s5433_s5] ss:$0 sm:$0xff] }
 0x322   : > { %2686 = vmatmul.msk.f32.gmra.mxu3 %vm2276_vm11, %v2258_v39 }
 0x325   : > { %v1745_v3 = vpop.permute.xlu2 %1744 }
 0x326   : > { %v1814_v30 = vpop.permute.xlu1 %1813  ;;  %v2114_v19 = vsel %vm2083_vm7, %v4960_v28, %v1745_v3 }
 0x327   : > { %v2129_v18 = vsel %vm2116_vm8, %v2096_v41, %v1814_v30  ;;  %v1798_v17 = vpop.permute.xlu0 %1797 }
 0x328   : > { %v2121_v55 = vsel %vm2116_vm8, %v2088_v40, %v1798_v17  ;;  %v2242_v50 = vsel %vm2229_vm10, %v2129_v18, %v5056_v4 }
 0x329   : > { %v2234_v16 = vsel %vm2229_vm10, %v2121_v55, %v4988_v2  ;;  %2670 = vmatmul.msk.f32.gmra.mxu1 %vm2276_vm11, %v2242_v50 }
 0x32a   : > { %2662 = vmatmul.msk.f32.gmra.mxu0 %vm2276_vm11, %v2234_v16 }
 0x32b   : > { %v2442_v6 = vpop.f32.mrf.mxu2 }
 0x32c   : > { %v2443_v4 = vadd.f32 %v5234_v27, %v2442_v6 }
 0x32d   : > { %v2466_v32 = vpop.f32.mrf.mxu3 }
 0x32e   : > { %2506 = vst.msk [vmem:[%s5243_s19 + $0x80] sm:$0xff] %vm1885_vm5, %v2443_v4  ;;  %v2467_v2 = vadd.f32 %v5234_v27, %v2466_v32  ;;  %v1832_v9 = vpop.permute.xlu1 %1831  ;;  %v2394_v1 = vpop.f32.mrf.mxu0 }
 0x32f   : > { %v2138_v5 = vsel %vm2116_vm8, %v2105_v54, %v1832_v9  ;;  %v2395_v7 = vadd.f32 %v5234_v27, %v2394_v1  ;;  %v1743_v60 = vpop.permute.xlu0 %1742 }
 0x330   : > { %2514 = vst.msk [vmem:[%s5243_s19 + $0xc0] sm:$0xff] %vm1885_vm5, %v2467_v2  ;;  %v2113_v25 = vsel %vm2083_vm7, %v4964_v14, %v1743_v60  ;;  %v2251_v47 = vsel %vm2229_vm10, %v2138_v5, %v5079_v59 }
 0x331   : > { %2490 = vst.msk [vmem:[%s5243_s19] sm:$0xff] %vm1885_vm5, %v2395_v7  ;;  %2679 = vmatmul.msk.f32.gmra.mxu2 %vm2276_vm11, %v2251_v47  ;;  %v2146_v56 = vsel %vm2116_vm8, %v2113_v25, %v1848_v46 }
 0x332   : > { %v2259_v52 = vsel %vm2229_vm10, %v2146_v56, %v5075_v62 }
 0x333   : > { %2687 = vmatmul.msk.f32.gmra.mxu3 %vm2276_vm11, %v2259_v52 }
 0x336   : > { %v1711_v12 = vpop.permute.xlu1 %1710 }
 0x337   : > { %v1695_v0 = vpop.permute.xlu0 %1694  ;;  %v2097_v62 = vsel %vm2083_vm7, %v4560_v35, %v1711_v12 }
 0x338   : > { %v2089_v14 = vsel %vm2083_vm7, %v4616_v49, %v1695_v0 }
 0x339   : > { %v2122_v59 = vsel %vm2116_vm8, %v2089_v14, %v1800_v24 }
 0x33a   : > { %v2235_v42 = vsel %vm2229_vm10, %v2122_v59, %v5114_v37  ;;  %v1697_v37 = vpop.permute.xlu2 %1696 }
 0x33b   : > { %2663 = vmatmul.msk.f32.gmra.mxu0 %vm2276_vm11, %v2235_v42  ;;  %v2090_v30 = vsel %vm2083_vm7, %v4613_v51, %v1697_v37 }
 0x33e   : > { %v2418_v43 = vpop.f32.mrf.mxu1  ;;  %v1729_v53 = vpop.permute.xlu1 %1728 }
 0x33f   : > { %v2419_v57 = vadd.f32 %v5234_v27, %v2418_v43  ;;  %v1816_v21 = vpop.permute.xlu0 %1815  ;;  %v2106_v35 = vsel %vm2083_vm7, %v4704_v29, %v1729_v53 }
 0x340   : > { %v2130_v33 = vsel %vm2116_vm8, %v2097_v62, %v1816_v21 }
 0x341   : > { %2498 = vst.msk [vmem:[%s5243_s19 + $0x40] sm:$0xff] %vm1885_vm5, %v2419_v57  ;;  %v2243_v49 = vsel %vm2229_vm10, %v2130_v33, %v5054_v11 }
 0x342   : > { %2671 = vmatmul.msk.f32.gmra.mxu1 %vm2276_vm11, %v2243_v49  ;;  %v1818_v46 = vpop.permute.xlu2 %1817 }
 0x346   : > { %v1850_v34 = vpop.permute.xlu1 %1849 }
 0x347   : > { %v2147_v23 = vsel %vm2116_vm8, %v2114_v19, %v1850_v34  ;;  %v1834_v15 = vpop.permute.xlu0 %1833 }
 0x348   : > { %v2139_v44 = vsel %vm2116_vm8, %v2106_v35, %v1834_v15  ;;  %v2260_v11 = vsel %vm2229_vm10, %v2147_v23, %v5146_v20 }
 0x349   : > { %v2252_v22 = vsel %vm2229_vm10, %v2139_v44, %v5071_v36  ;;  %2688 = vmatmul.msk.f32.gmra.mxu3 %vm2276_vm11, %v2260_v11 }
 0x34a   : > { %2680 = vmatmul.msk.f32.gmra.mxu2 %vm2276_vm11, %v2252_v22 }
 0x34b   : > { %v2469_v28 = vpop.f32.mrf.mxu3 }
 0x34c   : > { %v2445_v39 = vpop.f32.mrf.mxu2  ;;  %v2470_v29 = vadd.f32 %v5234_v27, %v2469_v28 }
 0x34d   : > { %v2446_v41 = vadd.f32 %v5234_v27, %v2445_v39 }
 0x34e   : > { %2515 = vst.msk [vmem:[%s5243_s19 + $0xc8] sm:$0xff] %vm1885_vm5, %v2470_v29  ;;  %v1802_v20 = vpop.permute.xlu1 %1801  ;;  %v2421_v40 = vpop.f32.mrf.mxu1 }
 0x34f   : > { %2507 = vst.msk [vmem:[%s5243_s19 + $0x88] sm:$0xff] %vm1885_vm5, %v2446_v41  ;;  %v2123_v36 = vsel %vm2116_vm8, %v2090_v30, %v1802_v20  ;;  %v2422_v18 = vadd.f32 %v5234_v27, %v2421_v40  ;;  %v1713_v17 = vpop.permute.xlu0 %1712 }
 0x350   : > { %v2098_v55 = vsel %vm2083_vm7, %v4760_v8, %v1713_v17  ;;  %v2236_v50 = vsel %vm2229_vm10, %v2123_v36, %v5172_v63  ;;  %v1836_v8 = vpop.permute.xlu2 %1835 }
 0x351   : > { %2499 = vst.msk [vmem:[%s5243_s19 + $0x48] sm:$0xff] %vm1885_vm5, %v2422_v18  ;;  %2664 = vmatmul.msk.f32.gmra.mxu0 %vm2276_vm11, %v2236_v50  ;;  %v2131_v51 = vsel %vm2116_vm8, %v2098_v55, %v1818_v46 }
 0x352   : > { %v2244_v16 = vsel %vm2229_vm10, %v2131_v51, %v5168_v45 }
 0x353   : > { %2672 = vmatmul.msk.f32.gmra.mxu1 %vm2276_vm11, %v2244_v16 }
 0x355   : > { %v2397_v6 = vpop.f32.mrf.mxu0 }
 0x356   : > { %v2398_v4 = vadd.f32 %v5234_v27, %v2397_v6  ;;  %v1747_v32 = vpop.permute.xlu1 %1746 }
 0x357   : > { %v1731_v54 = vpop.permute.xlu0 %1730  ;;  %v2115_v1 = vsel %vm2083_vm7, %v4841_v48, %v1747_v32 }
 0x358   : > { %2491 = vst.msk [vmem:[%s5243_s19 + $0x8] sm:$0xff] %vm1885_vm5, %v2398_v4  ;;  %v2107_v63 = vsel %vm2083_vm7, %v4897_v38, %v1731_v54  ;;  %v1715_v38 = vpop.permute.xlu2 %1714 }
 0x359   : > { %v2140_v2 = vsel %vm2116_vm8, %v2107_v63, %v1836_v8 }
 0x35a   : > { %v2253_v9 = vsel %vm2229_vm10, %v2140_v2, %v5182_v31  ;;  %v2099_v31 = vsel %vm2083_vm7, %v4757_v61, %v1715_v38 }
 0x35b   : > { %2681 = vmatmul.msk.f32.gmra.mxu2 %vm2276_vm11, %v2253_v9 }
 0x35e   : > { %v1699_v45 = vpop.permute.xlu1 %1698 }
 0x35f   : > { %v1852_v24 = vpop.permute.xlu0 %1851  ;;  %v2091_v48 = vsel %vm2083_vm7, %v4469_v26, %v1699_v45 }
 0x360   : > { %v2148_v5 = vsel %vm2116_vm8, %v2115_v1, %v1852_v24 }
 0x361   : > { %v2261_v7 = vsel %vm2229_vm10, %v2148_v5, %v5150_v10 }
 0x362   : > { %2689 = vmatmul.msk.f32.gmra.mxu3 %vm2276_vm11, %v2261_v7 }
 0x365   : > { %v2448_v60 = vpop.f32.mrf.mxu2 }
 0x366   : > { %v2449_v25 = vadd.f32 %v5234_v27, %v2448_v60  ;;  %v1820_v47 = vpop.permute.xlu1 %1819 }
 0x367   : > { %v2132_v56 = vsel %vm2116_vm8, %v2099_v31, %v1820_v47  ;;  %v1804_v52 = vpop.permute.xlu0 %1803 }
 0x368   : > { %2508 = vst.msk [vmem:[%s5243_s19 + $0x90] sm:$0xff] %vm1885_vm5, %v2449_v25  ;;  %v2124_v10 = vsel %vm2116_vm8, %v2091_v48, %v1804_v52  ;;  %v2245_v12 = vsel %vm2229_vm10, %v2132_v56, %v5205_v58 }
 0x369   : > { %v2237_v61 = vsel %vm2229_vm10, %v2124_v10, %v5207_v13  ;;  %2673 = vmatmul.msk.f32.gmra.mxu1 %vm2276_vm11, %v2245_v12 }
 0x36a   : > { %2665 = vmatmul.msk.f32.gmra.mxu0 %vm2276_vm11, %v2237_v61 }
 0x36c   : > { %v2472_v26 = vpop.f32.mrf.mxu3 }
 0x36d   : > { %v2473_v0 = vadd.f32 %v5234_v27, %v2472_v26 }
 0x36f   : > { %2516 = vst.msk [vmem:[%s5243_s19 + $0xd0] sm:$0xff] %vm1885_vm5, %v2473_v0 }
 0x375   : > { %v2424_v14 = vpop.f32.mrf.mxu1 }
 0x376   : > { %v2400_v3 = vpop.f32.mrf.mxu0  ;;  %v2425_v59 = vadd.f32 %v5234_v27, %v2424_v14 }
 0x377   : > { %v2401_v58 = vadd.f32 %v5234_v27, %v2400_v3 }
 0x378   : > { %2500 = vst.msk [vmem:[%s5243_s19 + $0x50] sm:$0xff] %vm1885_vm5, %v2425_v59 }
 0x379   : > { %2492 = vst.msk [vmem:[%s5243_s19 + $0x10] sm:$0xff] %vm1885_vm5, %v2401_v58 }
 0x383   : > { %v2451_v13 = vpop.f32.mrf.mxu2 }
 0x384   : > { %v2452_v42 = vadd.f32 %v5234_v27, %v2451_v13 }
 0x385   : > { %v2475_v43 = vpop.f32.mrf.mxu3 }
 0x386   : > { %2509 = vst.msk [vmem:[%s5243_s19 + $0x98] sm:$0xff] %vm1885_vm5, %v2452_v42  ;;  %v2476_v53 = vadd.f32 %v5234_v27, %v2475_v43 }
 0x388   : > { %2517 = vst.msk [vmem:[%s5243_s19 + $0xd8] sm:$0xff] %vm1885_vm5, %v2476_v53 }
 0x395   : > { %v2427_v62 = vpop.f32.mrf.mxu1  ;;  %v2454_v57 = vpop.f32.mrf.mxu2 }
 0x396   : > { %v2403_v21 = vpop.f32.mrf.mxu0  ;;  %v2428_v33 = vadd.f32 %v5234_v27, %v2427_v62  ;;  %v2455_v49 = vadd.f32 %v5234_v27, %v2454_v57 }
 0x397   : > { %v2404_v37 = vadd.f32 %v5234_v27, %v2403_v21 }
 0x398   : > { %2501 = vst.msk [vmem:[%s5243_s19 + $0x58] sm:$0xff] %vm1885_vm5, %v2428_v33 }
 0x399   : > { %2493 = vst.msk [vmem:[%s5243_s19 + $0x18] sm:$0xff] %vm1885_vm5, %v2404_v37 }
 0x39a   : > { %2510 = vst.msk [vmem:[%s5243_s19 + $0xa0] sm:$0xff] %vm1885_vm5, %v2455_v49 }
 0x3a5   : > { %v2478_v19 = vpop.f32.mrf.mxu3 }
 0x3a6   : > { %v2479_v34 = vadd.f32 %v5234_v27, %v2478_v19  ;;  %v2430_v35 = vpop.f32.mrf.mxu1 }
 0x3a7   : > { %v2406_v23 = vpop.f32.mrf.mxu0  ;;  %v2431_v15 = vadd.f32 %v5234_v27, %v2430_v35 }
 0x3a8   : > { %2518 = vst.msk [vmem:[%s5243_s19 + $0xe0] sm:$0xff] %vm1885_vm5, %v2479_v34  ;;  %v2407_v44 = vadd.f32 %v5234_v27, %v2406_v23 }
 0x3a9   : > { %2502 = vst.msk [vmem:[%s5243_s19 + $0x60] sm:$0xff] %vm1885_vm5, %v2431_v15 }
 0x3aa   : > { %2494 = vst.msk [vmem:[%s5243_s19 + $0x20] sm:$0xff] %vm1885_vm5, %v2407_v44 }
 0x3b4   : > { %v2457_v11 = vpop.f32.mrf.mxu2 }
 0x3b5   : > { %v2458_v22 = vadd.f32 %v5234_v27, %v2457_v11 }
 0x3b6   : > { %v2481_v28 = vpop.f32.mrf.mxu3 }
 0x3b7   : > { %2511 = vst.msk [vmem:[%s5243_s19 + $0xa8] sm:$0xff] %vm1885_vm5, %v2458_v22  ;;  %v2482_v39 = vadd.f32 %v5234_v27, %v2481_v28 }
 0x3b8   : > { %v2409_v29 = vpop.f32.mrf.mxu0 }
 0x3b9   : > { %2519 = vst.msk [vmem:[%s5243_s19 + $0xe8] sm:$0xff] %vm1885_vm5, %v2482_v39  ;;  %v2410_v46 = vadd.f32 %v5234_v27, %v2409_v29 }
 0x3bb   : > { %2495 = vst.msk [vmem:[%s5243_s19 + $0x28] sm:$0xff] %vm1885_vm5, %v2410_v46 }
 0x3bf   : > { %v2433_v41 = vpop.f32.mrf.mxu1 }
 0x3c0   : > { %v2434_v30 = vadd.f32 %v5234_v27, %v2433_v41 }
 0x3c2   : > { %2503 = vst.msk [vmem:[%s5243_s19 + $0x68] sm:$0xff] %vm1885_vm5, %v2434_v30 }
 0x3cc   : > { %v2484_v20 = vpop.f32.mrf.mxu3 }
 0x3cd   : > { %v2460_v40 = vpop.f32.mrf.mxu2  ;;  %v2485_v36 = vadd.f32 %v5234_v27, %v2484_v20 }
 0x3ce   : > { %v2461_v18 = vadd.f32 %v5234_v27, %v2460_v40  ;;  %v2412_v17 = vpop.f32.mrf.mxu0 }
 0x3cf   : > { %2520 = vst.msk [vmem:[%s5243_s19 + $0xf0] sm:$0xff] %vm1885_vm5, %v2485_v36  ;;  %v2413_v55 = vadd.f32 %v5234_v27, %v2412_v17 }
 0x3d0   : > { %2512 = vst.msk [vmem:[%s5243_s19 + $0xb0] sm:$0xff] %vm1885_vm5, %v2461_v18  ;;  %v2436_v50 = vpop.f32.mrf.mxu1 }
 0x3d1   : > { %2496 = vst.msk [vmem:[%s5243_s19 + $0x30] sm:$0xff] %vm1885_vm5, %v2413_v55  ;;  %v2437_v51 = vadd.f32 %v5234_v27, %v2436_v50 }
 0x3d3   : > { %2504 = vst.msk [vmem:[%s5243_s19 + $0x70] sm:$0xff] %vm1885_vm5, %v2437_v51 }
 0x3de   : > { %v2463_v16 = vpop.f32.mrf.mxu2 }
 0x3df   : > { %v2464_v6 = vadd.f32 %v5234_v27, %v2463_v16 }
 0x3e1   : > { %2513 = vst.msk [vmem:[%s5243_s19 + $0xb8] sm:$0xff] %vm1885_vm5, %v2464_v6 }
 0x3e5   : > { %v2487_v4 = vpop.f32.mrf.mxu3 }
 0x3e6   : > { %v2488_v32 = vadd.f32 %v5234_v27, %v2487_v4  ;;  %v2439_v54 = vpop.f32.mrf.mxu1 }
 0x3e7   : > { %v2415_v8 = vpop.f32.mrf.mxu0  ;;  %v2440_v63 = vadd.f32 %v5234_v27, %v2439_v54 }
 0x3e8   : > { %2521 = vst.msk [vmem:[%s5243_s19 + $0xf8] sm:$0xff] %vm1885_vm5, %v2488_v32  ;;  %v2416_v2 = vadd.f32 %v5234_v27, %v2415_v8 }
 0x3e9   : > { %2505 = vst.msk [vmem:[%s5243_s19 + $0x78] sm:$0xff] %vm1885_vm5, %v2440_v63 }
 0x3ea   : > { %2497 = vst.msk [vmem:[%s5243_s19 + $0x38] sm:$0xff] %vm1885_vm5, %v2416_v2 }
 0x3eb PF: > { %s16_s25 = sadd.s32 1, %s2818_s25   ;;  %s5980_s21 = smov %s2810_s23 }
 0x3ec   : > { %p13_p9 = scmp.ge.s32.totalorder %s16_s25, 10   ;;  %s5981_s22 = smov %s2814_s24 }
 0x3ed   : > { %s5982_s23 = smov %s5985_s26  ;;  %s5983_s24 = smov %s5989_s27 }
 0x3ee   :  { %15 = sbr.rel (!%p13_p9) target bundleno = 3 (0x3), region = 77 }

</bundles_post_ra>
